<compile_context>
chip_gen: v5e
topology: v5e:2x2
jax: 0.10.0
libtpu: 0.0.40
codegen_flags: <defaults>
</compile_context>

<pallas_src>
import jax
import jax.numpy as jnp
from jax.experimental import pallas as pl
from jax.experimental.pallas import tpu as pltpu


def _make_encoder_kernel(T: int, B: int, H: int):
    """Fused kernel: 2 layers x 2 directions of a GRU, hidden-only output."""
    H2, H3 = 2 * H, 3 * H

    def kernel(x_ref, w0_ref, w1_ref, whh_ref, bi_ref, bhn_ref,
               hid_ref, l0_scr, gi_scr):
        # ---------------- fused-gate GRU cell (f32 math) ---------------------
        def cell(h, gi, W, bhn_row):
            # Single (H, 3H) recurrent matmul; b_hn pre-packed into the n lanes
            # of bhn_row (zeros elsewhere), so it stays inside the r*(...) term.
            gh = jnp.dot(h, W, preferred_element_type=jnp.float32) + bhn_row
            rz = jax.nn.sigmoid(gi[:, :H2] + gh[:, :H2])        # fused r|z
            r = rz[:, :H]
            z = rz[:, H:H2]
            n = jnp.tanh(gi[:, H2:H3] + r * gh[:, H2:H3])
            return (1.0 - z) * n + z * h

        # ------------- one bidirectional layer, fwd/bwd interleaved ----------
        def run_layer(uf, ub, store_l0):
            # Hoist loop-invariant loads (fused recurrent weights + n-gate bias).
            Wf = whh_ref[uf]                       # (H, 3H)
            Wb = whh_ref[ub]
            bnf = bhn_ref[uf:uf + 1, :]            # (1, 3H), zeros outside n lanes
            bnb = bhn_ref[ub:ub + 1, :]
            hf = jnp.zeros((B, H), jnp.float32)
            hb = jnp.zeros((B, H), jnp.float32)
            for i in range(T):                     # fully unrolled (T=8)
                tf, tb = i, T - 1 - i
                gif = gi_scr[0, tf * B:(tf + 1) * B, :]    # (B, 3H) ref loads
                gib = gi_scr[1, tb * B:(tb + 1) * B, :]
                hf = cell(hf, gif, Wf, bnf)
                hb = cell(hb, gib, Wb, bnb)
                if store_l0:                       # layer-0 seq -> (T*B, 2H) scratch
                    l0_scr[tf * B:(tf + 1) * B, 0:H] = hf
                    l0_scr[tb * B:(tb + 1) * B, H:H2] = hb
            return hf, hb

        # -------- layer 0: one bulk fused-gate projection per direction ------
        x = x_ref[...].astype(jnp.float32)         # (T*B, D0), row = t*B + b
        gi_scr[0, :, :] = (jnp.dot(x, w0_ref[0],
                                   preferred_element_type=jnp.float32)
                           + bi_ref[0:1, :])
        gi_scr[1, :, :] = (jnp.dot(x, w0_ref[1],
                                   preferred_element_type=jnp.float32)
                           + bi_ref[1:2, :])
        hf0, hb0 = run_layer(0, 1, store_l0=True)

        # -------- layer 1: lane-contiguous (T*B, 2H) scratch feeds projection -
        # TODO(synk): nn.GRU inter-layer dropout is train-mode only; this is the
        # deterministic eval forward, so it is intentionally a no-op here.
        x1 = l0_scr[...]                           # (T*B, 2H), no concat needed
        gi_scr[0, :, :] = (jnp.dot(x1, w1_ref[0],
                                   preferred_element_type=jnp.float32)
                           + bi_ref[2:3, :])
        gi_scr[1, :, :] = (jnp.dot(x1, w1_ref[1],
                                   preferred_element_type=jnp.float32)
                           + bi_ref[3:4, :])
        hf1, hb1 = run_layer(2, 3, store_l0=False)

        # Single lane-dense (B, 4H=128) store, torch h_n order [l0f, l0b, l1f, l1b].
        # TODO(synk): on v7x the two directions could additionally be split over
        # the 2 TensorCores (core_map + cross-core barrier between layers).
        hid_ref[...] = jnp.concatenate([hf0, hb0, hf1, hb1],
                                       axis=-1).astype(hid_ref.dtype)

    return kernel


def _pack_encoder_params(params, H):
    """Torch-layout GRU params -> fused-gate, lane-dense kernel operands."""
    H2 = 2 * H
    units = [params[0]["fwd"], params[0]["bwd"],
             params[1]["fwd"], params[1]["bwd"]]

    # (3H, D) -> (D, 3H); gate order (r, z, n) preserved along the 3H lanes.
    w0 = jnp.stack([jnp.transpose(u["w_ih"]) for u in units[:2]], axis=0)  # (2, D0, 3H)
    w1 = jnp.stack([jnp.transpose(u["w_ih"]) for u in units[2:]], axis=0)  # (2, 2H, 3H)
    whh = jnp.stack([jnp.transpose(u["w_hh"]) for u in units], axis=0)     # (4, H, 3H)

    def comb_bias(u):     # r,z lanes: b_ih + b_hh; n lanes: b_ih only
        return u["b_ih"] + jnp.concatenate(
            [u["b_hh"][:H2], jnp.zeros((H,), u["b_hh"].dtype)])

    def n_bias(u):        # zeros outside the n lanes, b_hn in the n lanes
        return jnp.concatenate([jnp.zeros((H2,), u["b_hh"].dtype),
                                u["b_hh"][H2:]])

    bi = jnp.stack([comb_bias(u) for u in units], axis=0)    # (4, 3H) lane-dense
    bhn = jnp.stack([n_bias(u) for u in units], axis=0)      # (4, 3H) lane-dense
    return w0, w1, whh, bi, bhn


def encoder_forward(x, params):
    """x: (B, T, INPUT_SIZE) batch-first. Returns hidden: (B, 4*HIDDEN_SIZE)."""
    assert len(params) == 2, "reference forward() assumes num_layers=2, bidirectional"
    B, T, D0 = x.shape
    H = params[0]["fwd"]["w_hh"].shape[1]

    w0, w1, whh, bi, bhn = _pack_encoder_params(params, H)
    # Time-major flat rows: row index = t*B + b (layout plumbing wrapper-side).
    x_flat = jnp.transpose(x, (1, 0, 2)).reshape(T * B, D0)

    kernel = _make_encoder_kernel(T, B, H)
    hidden = pl.pallas_call(
        kernel,
        grid=(1,),
        in_specs=[
            pl.BlockSpec((T * B, D0), lambda i: (0, 0)),
            pl.BlockSpec(w0.shape, lambda i: (0, 0, 0)),
            pl.BlockSpec(w1.shape, lambda i: (0, 0, 0)),
            pl.BlockSpec(whh.shape, lambda i: (0, 0, 0)),
            pl.BlockSpec(bi.shape, lambda i: (0, 0)),
            pl.BlockSpec(bhn.shape, lambda i: (0, 0)),
        ],
        out_specs=pl.BlockSpec((B, 4 * H), lambda i: (0, 0)),
        out_shape=jax.ShapeDtypeStruct((B, 4 * H), x.dtype),
        scratch_shapes=[pltpu.VMEM((T * B, 2 * H), jnp.float32),   # layer-0 outputs
                        pltpu.VMEM((2, T * B, 3 * H), jnp.float32)],  # gate slabs
        compiler_params=pltpu.CompilerParams(
            dimension_semantics=("arbitrary",)),
    )(x_flat, w0, w1, whh, bi, bhn)
    return hidden


# ----------------------------- pure-JAX reference ----------------------------
def _gru_cell_ref(x_t, h, w_ih, w_hh, b_ih, b_hh, H):
    gi = x_t @ w_ih.T + b_ih
    gh = h @ w_hh.T + b_hh
    r = jax.nn.sigmoid(gi[:, 0:H] + gh[:, 0:H])
    z = jax.nn.sigmoid(gi[:, H:2 * H] + gh[:, H:2 * H])
    n = jnp.tanh(gi[:, 2 * H:3 * H] + r * gh[:, 2 * H:3 * H])
    return (1.0 - z) * n + z * h


def encoder_ref(x, params, H):
    B, T, _ = x.shape
    layer_in = x
    finals = []
    for layer in params:
        outs = {}
        for name, reverse in (("fwd", False), ("bwd", True)):
            p = layer[name]
            h = jnp.zeros((B, H), x.dtype)
            out_t = [None] * T
            order = range(T - 1, -1, -1) if reverse else range(T)
            for t in order:
                h = _gru_cell_ref(layer_in[:, t, :], h, p["w_ih"], p["w_hh"],
                                  p["b_ih"], p["b_hh"], H)
                out_t[t] = h
            outs[name] = jnp.stack(out_t, axis=1)
            finals.append(h)
        layer_in = jnp.concatenate([outs["fwd"], outs["bwd"]], axis=-1)
    return jnp.concatenate(finals, axis=1)


def init_gru_params(key, input_size, hidden_size, num_layers):
    """Deterministic init matching torch.nn.GRU param shapes (U(-1/sqrt(H), 1/sqrt(H)))."""
    k = 1.0 / (hidden_size ** 0.5)
    params = []
    for layer_idx in range(num_layers):
        in_sz = input_size if layer_idx == 0 else 2 * hidden_size
        layer = {}
        for name in ("fwd", "bwd"):
            key, k0, k1, k2, k3 = jax.random.split(key, 5)
            layer[name] = dict(
                w_ih=jax.random.uniform(k0, (3 * hidden_size, in_sz),
                                        jnp.float32, -k, k),
                w_hh=jax.random.uniform(k1, (3 * hidden_size, hidden_size),
                                        jnp.float32, -k, k),
                b_ih=jax.random.uniform(k2, (3 * hidden_size,),
                                        jnp.float32, -k, k),
                b_hh=jax.random.uniform(k3, (3 * hidden_size,),
                                        jnp.float32, -k, k),
            )
        params.append(layer)
    return params


if __name__ == "__main__":
    # forward() indexes hidden[0..3] => num_layers * num_directions = 4
    # => NUM_LAYERS = 2 with bidirectional=True.
    INPUT_SIZE, HIDDEN_SIZE, NUM_LAYERS, DROP_END = 16, 32, 2, 0.1
    BATCH, SEQ = 2, 8

    key = jax.random.PRNGKey(0)
    kx, kp = jax.random.split(key)
    x = jax.random.normal(kx, (BATCH, SEQ, INPUT_SIZE), jnp.float32)
    params = init_gru_params(kp, INPUT_SIZE, HIDDEN_SIZE, NUM_LAYERS)

    hidden = jax.jit(encoder_forward)(x, params)
    jax.block_until_ready(hidden)
    assert hidden.shape == (BATCH, 2 * NUM_LAYERS * HIDDEN_SIZE), hidden.shape
    assert bool(jnp.all(jnp.isfinite(hidden)))

    ref = encoder_ref(x, params, HIDDEN_SIZE)
    max_err = float(jnp.max(jnp.abs(hidden - ref)))
    assert max_err < 1e-3, f"mismatch vs reference: {max_err}"
    print("KERNEL_OK")
</pallas_src>

<mosaic_0001>
module attributes {stable_mosaic.version = 11 : i64} {
  func.func @kernel(%arg0: i32, %arg1: memref<16x16xf32, #tpu.memory_space<vmem>>, %arg2: memref<2x16x96xf32, #tpu.memory_space<vmem>>, %arg3: memref<2x64x96xf32, #tpu.memory_space<vmem>>, %arg4: memref<4x32x96xf32, #tpu.memory_space<vmem>>, %arg5: memref<4x96xf32, #tpu.memory_space<vmem>>, %arg6: memref<4x96xf32, #tpu.memory_space<vmem>>, %arg7: memref<2x128xf32, #tpu.memory_space<vmem>>, %arg8: memref<16x64xf32, #tpu.memory_space<vmem>>, %arg9: memref<2x16x96xf32, #tpu.memory_space<vmem>>) attributes {dimension_semantics = [#tpu.dimension_semantics<arbitrary>], iteration_bounds = array<i64: 1>, scalar_prefetch = 0 : i64, scratch_operands = 2 : i64, tpu.core_type = #tpu.core_type<tc>, window_params = [{pipeline_mode = #tpu.pipeline_mode<synchronous>, transform_indices = @transform_0, window_bounds = array<i64: 16, 16>}, {pipeline_mode = #tpu.pipeline_mode<synchronous>, transform_indices = @transform_1, window_bounds = array<i64: 2, 16, 96>}, {pipeline_mode = #tpu.pipeline_mode<synchronous>, transform_indices = @transform_2, window_bounds = array<i64: 2, 64, 96>}, {pipeline_mode = #tpu.pipeline_mode<synchronous>, transform_indices = @transform_3, window_bounds = array<i64: 4, 32, 96>}, {pipeline_mode = #tpu.pipeline_mode<synchronous>, transform_indices = @transform_4, window_bounds = array<i64: 4, 96>}, {pipeline_mode = #tpu.pipeline_mode<synchronous>, transform_indices = @transform_5, window_bounds = array<i64: 4, 96>}, {pipeline_mode = #tpu.pipeline_mode<synchronous>, transform_indices = @transform_6, window_bounds = array<i64: 2, 128>}]} {
    %c0 = arith.constant 0 : index
    %c0_0 = arith.constant 0 : index
    %0 = vector.load %arg1[%c0, %c0_0] : memref<16x16xf32, #tpu.memory_space<vmem>>, vector<16x16xf32>
    %c0_1 = arith.constant 0 : index
    %c0_2 = arith.constant 0 : index
    %c0_3 = arith.constant 0 : index
    %1 = vector.load %arg2[%c0_1, %c0_2, %c0_3] : memref<2x16x96xf32, #tpu.memory_space<vmem>>, vector<1x16x96xf32>
    %2 = vector.shape_cast %1 : vector<1x16x96xf32> to vector<16x96xf32>
    %cst = arith.constant dense<0.000000e+00> : vector<16x96xf32>
    %3 = tpu.matmul %0, %2, %cst {dimension_numbers = #tpu.dot_dimension_numbers<[1], [0], [0], [1], [0, 0, 1, 1], [], []>} : vector<16x16xf32>, vector<16x96xf32>, vector<16x96xf32> -> vector<16x96xf32>
    %c0_4 = arith.constant 0 : index
    %c0_5 = arith.constant 0 : index
    %4 = vector.load %arg5[%c0_4, %c0_5] : memref<4x96xf32, #tpu.memory_space<vmem>>, vector<1x96xf32>
    %5 = vector.broadcast %4 : vector<1x96xf32> to vector<16x96xf32>
    %6 = arith.addf %3, %5 : vector<16x96xf32>
    %c0_6 = arith.constant 0 : index
    %c0_7 = arith.constant 0 : index
    %c0_8 = arith.constant 0 : index
    %7 = vector.load %arg9[%c0_6, %c0_7, %c0_8] : memref<2x16x96xf32, #tpu.memory_space<vmem>>, vector<1x16x96xf32>
    %8 = vector.shape_cast %7 : vector<1x16x96xf32> to vector<16x96xf32>
    %9 = vector.shape_cast %6 : vector<16x96xf32> to vector<1x16x96xf32>
    tpu.vector_store %arg9[%c0_6, %c0_7, %c0_8], %9 {strides = array<i32>} : memref<2x16x96xf32, #tpu.memory_space<vmem>>, vector<1x16x96xf32>,
    %c1 = arith.constant 1 : index
    %c0_9 = arith.constant 0 : index
    %c0_10 = arith.constant 0 : index
    %10 = vector.load %arg2[%c1, %c0_9, %c0_10] : memref<2x16x96xf32, #tpu.memory_space<vmem>>, vector<1x16x96xf32>
    %11 = vector.shape_cast %10 : vector<1x16x96xf32> to vector<16x96xf32>
    %cst_11 = arith.constant dense<0.000000e+00> : vector<16x96xf32>
    %12 = tpu.matmul %0, %11, %cst_11 {dimension_numbers = #tpu.dot_dimension_numbers<[1], [0], [0], [1], [0, 0, 1, 1], [], []>} : vector<16x16xf32>, vector<16x96xf32>, vector<16x96xf32> -> vector<16x96xf32>
    %c1_12 = arith.constant 1 : index
    %c0_13 = arith.constant 0 : index
    %13 = vector.load %arg5[%c1_12, %c0_13] : memref<4x96xf32, #tpu.memory_space<vmem>>, vector<1x96xf32>
    %14 = vector.broadcast %13 : vector<1x96xf32> to vector<16x96xf32>
    %15 = arith.addf %12, %14 : vector<16x96xf32>
    %c1_14 = arith.constant 1 : index
    %c0_15 = arith.constant 0 : index
    %c0_16 = arith.constant 0 : index
    %16 = vector.load %arg9[%c1_14, %c0_15, %c0_16] : memref<2x16x96xf32, #tpu.memory_space<vmem>>, vector<1x16x96xf32>
    %17 = vector.shape_cast %16 : vector<1x16x96xf32> to vector<16x96xf32>
    %18 = vector.shape_cast %15 : vector<16x96xf32> to vector<1x16x96xf32>
    tpu.vector_store %arg9[%c1_14, %c0_15, %c0_16], %18 {strides = array<i32>} : memref<2x16x96xf32, #tpu.memory_space<vmem>>, vector<1x16x96xf32>,
    %c0_17 = arith.constant 0 : index
    %c0_18 = arith.constant 0 : index
    %c0_19 = arith.constant 0 : index
    %19 = vector.load %arg4[%c0_17, %c0_18, %c0_19] : memref<4x32x96xf32, #tpu.memory_space<vmem>>, vector<1x32x96xf32>
    %20 = vector.shape_cast %19 : vector<1x32x96xf32> to vector<32x96xf32>
    %c1_20 = arith.constant 1 : index
    %c0_21 = arith.constant 0 : index
    %c0_22 = arith.constant 0 : index
    %21 = vector.load %arg4[%c1_20, %c0_21, %c0_22] : memref<4x32x96xf32, #tpu.memory_space<vmem>>, vector<1x32x96xf32>
    %22 = vector.shape_cast %21 : vector<1x32x96xf32> to vector<32x96xf32>
    %c0_23 = arith.constant 0 : index
    %c0_24 = arith.constant 0 : index
    %23 = vector.load %arg6[%c0_23, %c0_24] : memref<4x96xf32, #tpu.memory_space<vmem>>, vector<1x96xf32>
    %c1_25 = arith.constant 1 : index
    %c0_26 = arith.constant 0 : index
    %24 = vector.load %arg6[%c1_25, %c0_26] : memref<4x96xf32, #tpu.memory_space<vmem>>, vector<1x96xf32>
    %cst_27 = arith.constant 0.000000e+00 : f32
    %25 = vector.broadcast %cst_27 : f32 to vector<2x32xf32>
    %cst_28 = arith.constant 0.000000e+00 : f32
    %26 = vector.broadcast %cst_28 : f32 to vector<2x32xf32>
    %c0_29 = arith.constant 0 : index
    %c0_30 = arith.constant 0 : index
    %c0_31 = arith.constant 0 : index
    %27 = vector.load %arg9[%c0_29, %c0_30, %c0_31] : memref<2x16x96xf32, #tpu.memory_space<vmem>>, vector<1x2x96xf32>
    %28 = vector.shape_cast %27 : vector<1x2x96xf32> to vector<2x96xf32>
    %c1_32 = arith.constant 1 : index
    %c14 = arith.constant 14 : index
    %c0_33 = arith.constant 0 : index
    %29 = vector.load %arg9[%c1_32, %c14, %c0_33] : memref<2x16x96xf32, #tpu.memory_space<vmem>>, vector<1x2x96xf32>
    %30 = vector.shape_cast %29 : vector<1x2x96xf32> to vector<2x96xf32>
    %cst_34 = arith.constant dense<0.000000e+00> : vector<2x96xf32>
    %31 = tpu.matmul %25, %20, %cst_34 {dimension_numbers = #tpu.dot_dimension_numbers<[1], [0], [0], [1], [0, 0, 1, 1], [], []>} : vector<2x32xf32>, vector<32x96xf32>, vector<2x96xf32> -> vector<2x96xf32>
    %32 = vector.broadcast %23 : vector<1x96xf32> to vector<2x96xf32>
    %33 = arith.addf %31, %32 : vector<2x96xf32>
    %34 = vector.extract_strided_slice %28 {offsets = [0, 0], sizes = [2, 64], strides = [1, 1]} : vector<2x96xf32> to vector<2x64xf32>
    %35 = vector.extract_strided_slice %33 {offsets = [0, 0], sizes = [2, 64], strides = [1, 1]} : vector<2x96xf32> to vector<2x64xf32>
    %36 = arith.addf %34, %35 : vector<2x64xf32>
    %37 = arith.negf %36 : vector<2x64xf32>
    %38 = math.exp %37 : vector<2x64xf32>
    %cst_35 = arith.constant 1.000000e+00 : f32
    %39 = vector.broadcast %cst_35 : f32 to vector<2x64xf32>
    %40 = arith.addf %39, %38 : vector<2x64xf32>
    %41 = arith.divf %39, %40 : vector<2x64xf32>
    %42 = vector.extract_strided_slice %41 {offsets = [0, 0], sizes = [2, 32], strides = [1, 1]} : vector<2x64xf32> to vector<2x32xf32>
    %43 = vector.extract_strided_slice %41 {offsets = [0, 32], sizes = [2, 32], strides = [1, 1]} : vector<2x64xf32> to vector<2x32xf32>
    %44 = vector.extract_strided_slice %28 {offsets = [0, 64], sizes = [2, 32], strides = [1, 1]} : vector<2x96xf32> to vector<2x32xf32>
    %45 = vector.extract_strided_slice %33 {offsets = [0, 64], sizes = [2, 32], strides = [1, 1]} : vector<2x96xf32> to vector<2x32xf32>
    %46 = arith.mulf %42, %45 : vector<2x32xf32>
    %47 = arith.addf %44, %46 : vector<2x32xf32>
    %48 = math.tanh %47 : vector<2x32xf32>
    %cst_36 = arith.constant 1.000000e+00 : f32
    %49 = vector.broadcast %cst_36 : f32 to vector<2x32xf32>
    %50 = arith.subf %49, %43 : vector<2x32xf32>
    %51 = arith.mulf %50, %48 : vector<2x32xf32>
    %52 = arith.mulf %43, %25 : vector<2x32xf32>
    %53 = arith.addf %51, %52 : vector<2x32xf32>
    %cst_37 = arith.constant dense<0.000000e+00> : vector<2x96xf32>
    %54 = tpu.matmul %26, %22, %cst_37 {dimension_numbers = #tpu.dot_dimension_numbers<[1], [0], [0], [1], [0, 0, 1, 1], [], []>} : vector<2x32xf32>, vector<32x96xf32>, vector<2x96xf32> -> vector<2x96xf32>
    %55 = vector.broadcast %24 : vector<1x96xf32> to vector<2x96xf32>
    %56 = arith.addf %54, %55 : vector<2x96xf32>
    %57 = vector.extract_strided_slice %30 {offsets = [0, 0], sizes = [2, 64], strides = [1, 1]} : vector<2x96xf32> to vector<2x64xf32>
    %58 = vector.extract_strided_slice %56 {offsets = [0, 0], sizes = [2, 64], strides = [1, 1]} : vector<2x96xf32> to vector<2x64xf32>
    %59 = arith.addf %57, %58 : vector<2x64xf32>
    %60 = arith.negf %59 : vector<2x64xf32>
    %61 = math.exp %60 : vector<2x64xf32>
    %cst_38 = arith.constant 1.000000e+00 : f32
    %62 = vector.broadcast %cst_38 : f32 to vector<2x64xf32>
    %63 = arith.addf %62, %61 : vector<2x64xf32>
    %64 = arith.divf %62, %63 : vector<2x64xf32>
    %65 = vector.extract_strided_slice %64 {offsets = [0, 0], sizes = [2, 32], strides = [1, 1]} : vector<2x64xf32> to vector<2x32xf32>
    %66 = vector.extract_strided_slice %64 {offsets = [0, 32], sizes = [2, 32], strides = [1, 1]} : vector<2x64xf32> to vector<2x32xf32>
    %67 = vector.extract_strided_slice %30 {offsets = [0, 64], sizes = [2, 32], strides = [1, 1]} : vector<2x96xf32> to vector<2x32xf32>
    %68 = vector.extract_strided_slice %56 {offsets = [0, 64], sizes = [2, 32], strides = [1, 1]} : vector<2x96xf32> to vector<2x32xf32>
    %69 = arith.mulf %65, %68 : vector<2x32xf32>
    %70 = arith.addf %67, %69 : vector<2x32xf32>
    %71 = math.tanh %70 : vector<2x32xf32>
    %cst_39 = arith.constant 1.000000e+00 : f32
    %72 = vector.broadcast %cst_39 : f32 to vector<2x32xf32>
    %73 = arith.subf %72, %66 : vector<2x32xf32>
    %74 = arith.mulf %73, %71 : vector<2x32xf32>
    %75 = arith.mulf %66, %26 : vector<2x32xf32>
    %76 = arith.addf %74, %75 : vector<2x32xf32>
    %c0_40 = arith.constant 0 : index
    %c0_41 = arith.constant 0 : index
    %77 = vector.load %arg8[%c0_40, %c0_41] : memref<16x64xf32, #tpu.memory_space<vmem>>, vector<2x32xf32>
    tpu.vector_store %arg8[%c0_40, %c0_41], %53 {strides = array<i32>} : memref<16x64xf32, #tpu.memory_space<vmem>>, vector<2x32xf32>,
    %c14_42 = arith.constant 14 : index
    %c32 = arith.constant 32 : index
    %78 = vector.load %arg8[%c14_42, %c32] : memref<16x64xf32, #tpu.memory_space<vmem>>, vector<2x32xf32>
    tpu.vector_store %arg8[%c14_42, %c32], %76 {strides = array<i32>} : memref<16x64xf32, #tpu.memory_space<vmem>>, vector<2x32xf32>,
    %c0_43 = arith.constant 0 : index
    %c2 = arith.constant 2 : index
    %c0_44 = arith.constant 0 : index
    %79 = vector.load %arg9[%c0_43, %c2, %c0_44] : memref<2x16x96xf32, #tpu.memory_space<vmem>>, vector<1x2x96xf32>
    %80 = vector.shape_cast %79 : vector<1x2x96xf32> to vector<2x96xf32>
    %c1_45 = arith.constant 1 : index
    %c12 = arith.constant 12 : index
    %c0_46 = arith.constant 0 : index
    %81 = vector.load %arg9[%c1_45, %c12, %c0_46] : memref<2x16x96xf32, #tpu.memory_space<vmem>>, vector<1x2x96xf32>
    %82 = vector.shape_cast %81 : vector<1x2x96xf32> to vector<2x96xf32>
    %cst_47 = arith.constant dense<0.000000e+00> : vector<2x96xf32>
    %83 = tpu.matmul %53, %20, %cst_47 {dimension_numbers = #tpu.dot_dimension_numbers<[1], [0], [0], [1], [0, 0, 1, 1], [], []>} : vector<2x32xf32>, vector<32x96xf32>, vector<2x96xf32> -> vector<2x96xf32>
    %84 = vector.broadcast %23 : vector<1x96xf32> to vector<2x96xf32>
    %85 = arith.addf %83, %84 : vector<2x96xf32>
    %86 = vector.extract_strided_slice %80 {offsets = [0, 0], sizes = [2, 64], strides = [1, 1]} : vector<2x96xf32> to vector<2x64xf32>
    %87 = vector.extract_strided_slice %85 {offsets = [0, 0], sizes = [2, 64], strides = [1, 1]} : vector<2x96xf32> to vector<2x64xf32>
    %88 = arith.addf %86, %87 : vector<2x64xf32>
    %89 = arith.negf %88 : vector<2x64xf32>
    %90 = math.exp %89 : vector<2x64xf32>
    %cst_48 = arith.constant 1.000000e+00 : f32
    %91 = vector.broadcast %cst_48 : f32 to vector<2x64xf32>
    %92 = arith.addf %91, %90 : vector<2x64xf32>
    %93 = arith.divf %91, %92 : vector<2x64xf32>
    %94 = vector.extract_strided_slice %93 {offsets = [0, 0], sizes = [2, 32], strides = [1, 1]} : vector<2x64xf32> to vector<2x32xf32>
    %95 = vector.extract_strided_slice %93 {offsets = [0, 32], sizes = [2, 32], strides = [1, 1]} : vector<2x64xf32> to vector<2x32xf32>
    %96 = vector.extract_strided_slice %80 {offsets = [0, 64], sizes = [2, 32], strides = [1, 1]} : vector<2x96xf32> to vector<2x32xf32>
    %97 = vector.extract_strided_slice %85 {offsets = [0, 64], sizes = [2, 32], strides = [1, 1]} : vector<2x96xf32> to vector<2x32xf32>
    %98 = arith.mulf %94, %97 : vector<2x32xf32>
    %99 = arith.addf %96, %98 : vector<2x32xf32>
    %100 = math.tanh %99 : vector<2x32xf32>
    %cst_49 = arith.constant 1.000000e+00 : f32
    %101 = vector.broadcast %cst_49 : f32 to vector<2x32xf32>
    %102 = arith.subf %101, %95 : vector<2x32xf32>
    %103 = arith.mulf %102, %100 : vector<2x32xf32>
    %104 = arith.mulf %95, %53 : vector<2x32xf32>
    %105 = arith.addf %103, %104 : vector<2x32xf32>
    %cst_50 = arith.constant dense<0.000000e+00> : vector<2x96xf32>
    %106 = tpu.matmul %76, %22, %cst_50 {dimension_numbers = #tpu.dot_dimension_numbers<[1], [0], [0], [1], [0, 0, 1, 1], [], []>} : vector<2x32xf32>, vector<32x96xf32>, vector<2x96xf32> -> vector<2x96xf32>
    %107 = vector.broadcast %24 : vector<1x96xf32> to vector<2x96xf32>
    %108 = arith.addf %106, %107 : vector<2x96xf32>
    %109 = vector.extract_strided_slice %82 {offsets = [0, 0], sizes = [2, 64], strides = [1, 1]} : vector<2x96xf32> to vector<2x64xf32>
    %110 = vector.extract_strided_slice %108 {offsets = [0, 0], sizes = [2, 64], strides = [1, 1]} : vector<2x96xf32> to vector<2x64xf32>
    %111 = arith.addf %109, %110 : vector<2x64xf32>
    %112 = arith.negf %111 : vector<2x64xf32>
    %113 = math.exp %112 : vector<2x64xf32>
    %cst_51 = arith.constant 1.000000e+00 : f32
    %114 = vector.broadcast %cst_51 : f32 to vector<2x64xf32>
    %115 = arith.addf %114, %113 : vector<2x64xf32>
    %116 = arith.divf %114, %115 : vector<2x64xf32>
    %117 = vector.extract_strided_slice %116 {offsets = [0, 0], sizes = [2, 32], strides = [1, 1]} : vector<2x64xf32> to vector<2x32xf32>
    %118 = vector.extract_strided_slice %116 {offsets = [0, 32], sizes = [2, 32], strides = [1, 1]} : vector<2x64xf32> to vector<2x32xf32>
    %119 = vector.extract_strided_slice %82 {offsets = [0, 64], sizes = [2, 32], strides = [1, 1]} : vector<2x96xf32> to vector<2x32xf32>
    %120 = vector.extract_strided_slice %108 {offsets = [0, 64], sizes = [2, 32], strides = [1, 1]} : vector<2x96xf32> to vector<2x32xf32>
    %121 = arith.mulf %117, %120 : vector<2x32xf32>
    %122 = arith.addf %119, %121 : vector<2x32xf32>
    %123 = math.tanh %122 : vector<2x32xf32>
    %cst_52 = arith.constant 1.000000e+00 : f32
    %124 = vector.broadcast %cst_52 : f32 to vector<2x32xf32>
    %125 = arith.subf %124, %118 : vector<2x32xf32>
    %126 = arith.mulf %125, %123 : vector<2x32xf32>
    %127 = arith.mulf %118, %76 : vector<2x32xf32>
    %128 = arith.addf %126, %127 : vector<2x32xf32>
    %c2_53 = arith.constant 2 : index
    %c0_54 = arith.constant 0 : index
    %129 = vector.load %arg8[%c2_53, %c0_54] : memref<16x64xf32, #tpu.memory_space<vmem>>, vector<2x32xf32>
    tpu.vector_store %arg8[%c2_53, %c0_54], %105 {strides = array<i32>} : memref<16x64xf32, #tpu.memory_space<vmem>>, vector<2x32xf32>,
    %c12_55 = arith.constant 12 : index
    %c32_56 = arith.constant 32 : index
    %130 = vector.load %arg8[%c12_55, %c32_56] : memref<16x64xf32, #tpu.memory_space<vmem>>, vector<2x32xf32>
    tpu.vector_store %arg8[%c12_55, %c32_56], %128 {strides = array<i32>} : memref<16x64xf32, #tpu.memory_space<vmem>>, vector<2x32xf32>,
    %c0_57 = arith.constant 0 : index
    %c4 = arith.constant 4 : index
    %c0_58 = arith.constant 0 : index
    %131 = vector.load %arg9[%c0_57, %c4, %c0_58] : memref<2x16x96xf32, #tpu.memory_space<vmem>>, vector<1x2x96xf32>
    %132 = vector.shape_cast %131 : vector<1x2x96xf32> to vector<2x96xf32>
    %c1_59 = arith.constant 1 : index
    %c10 = arith.constant 10 : index
    %c0_60 = arith.constant 0 : index
    %133 = vector.load %arg9[%c1_59, %c10, %c0_60] : memref<2x16x96xf32, #tpu.memory_space<vmem>>, vector<1x2x96xf32>
    %134 = vector.shape_cast %133 : vector<1x2x96xf32> to vector<2x96xf32>
    %cst_61 = arith.constant dense<0.000000e+00> : vector<2x96xf32>
    %135 = tpu.matmul %105, %20, %cst_61 {dimension_numbers = #tpu.dot_dimension_numbers<[1], [0], [0], [1], [0, 0, 1, 1], [], []>} : vector<2x32xf32>, vector<32x96xf32>, vector<2x96xf32> -> vector<2x96xf32>
    %136 = vector.broadcast %23 : vector<1x96xf32> to vector<2x96xf32>
    %137 = arith.addf %135, %136 : vector<2x96xf32>
    %138 = vector.extract_strided_slice %132 {offsets = [0, 0], sizes = [2, 64], strides = [1, 1]} : vector<2x96xf32> to vector<2x64xf32>
    %139 = vector.extract_strided_slice %137 {offsets = [0, 0], sizes = [2, 64], strides = [1, 1]} : vector<2x96xf32> to vector<2x64xf32>
    %140 = arith.addf %138, %139 : vector<2x64xf32>
    %141 = arith.negf %140 : vector<2x64xf32>
    %142 = math.exp %141 : vector<2x64xf32>
    %cst_62 = arith.constant 1.000000e+00 : f32
    %143 = vector.broadcast %cst_62 : f32 to vector<2x64xf32>
    %144 = arith.addf %143, %142 : vector<2x64xf32>
    %145 = arith.divf %143, %144 : vector<2x64xf32>
    %146 = vector.extract_strided_slice %145 {offsets = [0, 0], sizes = [2, 32], strides = [1, 1]} : vector<2x64xf32> to vector<2x32xf32>
    %147 = vector.extract_strided_slice %145 {offsets = [0, 32], sizes = [2, 32], strides = [1, 1]} : vector<2x64xf32> to vector<2x32xf32>
    %148 = vector.extract_strided_slice %132 {offsets = [0, 64], sizes = [2, 32], strides = [1, 1]} : vector<2x96xf32> to vector<2x32xf32>
    %149 = vector.extract_strided_slice %137 {offsets = [0, 64], sizes = [2, 32], strides = [1, 1]} : vector<2x96xf32> to vector<2x32xf32>
    %150 = arith.mulf %146, %149 : vector<2x32xf32>
    %151 = arith.addf %148, %150 : vector<2x32xf32>
    %152 = math.tanh %151 : vector<2x32xf32>
    %cst_63 = arith.constant 1.000000e+00 : f32
    %153 = vector.broadcast %cst_63 : f32 to vector<2x32xf32>
    %154 = arith.subf %153, %147 : vector<2x32xf32>
    %155 = arith.mulf %154, %152 : vector<2x32xf32>
    %156 = arith.mulf %147, %105 : vector<2x32xf32>
    %157 = arith.addf %155, %156 : vector<2x32xf32>
    %cst_64 = arith.constant dense<0.000000e+00> : vector<2x96xf32>
    %158 = tpu.matmul %128, %22, %cst_64 {dimension_numbers = #tpu.dot_dimension_numbers<[1], [0], [0], [1], [0, 0, 1, 1], [], []>} : vector<2x32xf32>, vector<32x96xf32>, vector<2x96xf32> -> vector<2x96xf32>
    %159 = vector.broadcast %24 : vector<1x96xf32> to vector<2x96xf32>
    %160 = arith.addf %158, %159 : vector<2x96xf32>
    %161 = vector.extract_strided_slice %134 {offsets = [0, 0], sizes = [2, 64], strides = [1, 1]} : vector<2x96xf32> to vector<2x64xf32>
    %162 = vector.extract_strided_slice %160 {offsets = [0, 0], sizes = [2, 64], strides = [1, 1]} : vector<2x96xf32> to vector<2x64xf32>
    %163 = arith.addf %161, %162 : vector<2x64xf32>
    %164 = arith.negf %163 : vector<2x64xf32>
    %165 = math.exp %164 : vector<2x64xf32>
    %cst_65 = arith.constant 1.000000e+00 : f32
    %166 = vector.broadcast %cst_65 : f32 to vector<2x64xf32>
    %167 = arith.addf %166, %165 : vector<2x64xf32>
    %168 = arith.divf %166, %167 : vector<2x64xf32>
    %169 = vector.extract_strided_slice %168 {offsets = [0, 0], sizes = [2, 32], strides = [1, 1]} : vector<2x64xf32> to vector<2x32xf32>
    %170 = vector.extract_strided_slice %168 {offsets = [0, 32], sizes = [2, 32], strides = [1, 1]} : vector<2x64xf32> to vector<2x32xf32>
    %171 = vector.extract_strided_slice %134 {offsets = [0, 64], sizes = [2, 32], strides = [1, 1]} : vector<2x96xf32> to vector<2x32xf32>
    %172 = vector.extract_strided_slice %160 {offsets = [0, 64], sizes = [2, 32], strides = [1, 1]} : vector<2x96xf32> to vector<2x32xf32>
    %173 = arith.mulf %169, %172 : vector<2x32xf32>
    %174 = arith.addf %171, %173 : vector<2x32xf32>
    %175 = math.tanh %174 : vector<2x32xf32>
    %cst_66 = arith.constant 1.000000e+00 : f32
    %176 = vector.broadcast %cst_66 : f32 to vector<2x32xf32>
    %177 = arith.subf %176, %170 : vector<2x32xf32>
    %178 = arith.mulf %177, %175 : vector<2x32xf32>
    %179 = arith.mulf %170, %128 : vector<2x32xf32>
    %180 = arith.addf %178, %179 : vector<2x32xf32>
    %c4_67 = arith.constant 4 : index
    %c0_68 = arith.constant 0 : index
    %181 = vector.load %arg8[%c4_67, %c0_68] : memref<16x64xf32, #tpu.memory_space<vmem>>, vector<2x32xf32>
    tpu.vector_store %arg8[%c4_67, %c0_68], %157 {strides = array<i32>} : memref<16x64xf32, #tpu.memory_space<vmem>>, vector<2x32xf32>,
    %c10_69 = arith.constant 10 : index
    %c32_70 = arith.constant 32 : index
    %182 = vector.load %arg8[%c10_69, %c32_70] : memref<16x64xf32, #tpu.memory_space<vmem>>, vector<2x32xf32>
    tpu.vector_store %arg8[%c10_69, %c32_70], %180 {strides = array<i32>} : memref<16x64xf32, #tpu.memory_space<vmem>>, vector<2x32xf32>,
    %c0_71 = arith.constant 0 : index
    %c6 = arith.constant 6 : index
    %c0_72 = arith.constant 0 : index
    %183 = vector.load %arg9[%c0_71, %c6, %c0_72] : memref<2x16x96xf32, #tpu.memory_space<vmem>>, vector<1x2x96xf32>
    %184 = vector.shape_cast %183 : vector<1x2x96xf32> to vector<2x96xf32>
    %c1_73 = arith.constant 1 : index
    %c8 = arith.constant 8 : index
    %c0_74 = arith.constant 0 : index
    %185 = vector.load %arg9[%c1_73, %c8, %c0_74] : memref<2x16x96xf32, #tpu.memory_space<vmem>>, vector<1x2x96xf32>
    %186 = vector.shape_cast %185 : vector<1x2x96xf32> to vector<2x96xf32>
    %cst_75 = arith.constant dense<0.000000e+00> : vector<2x96xf32>
    %187 = tpu.matmul %157, %20, %cst_75 {dimension_numbers = #tpu.dot_dimension_numbers<[1], [0], [0], [1], [0, 0, 1, 1], [], []>} : vector<2x32xf32>, vector<32x96xf32>, vector<2x96xf32> -> vector<2x96xf32>
    %188 = vector.broadcast %23 : vector<1x96xf32> to vector<2x96xf32>
    %189 = arith.addf %187, %188 : vector<2x96xf32>
    %190 = vector.extract_strided_slice %184 {offsets = [0, 0], sizes = [2, 64], strides = [1, 1]} : vector<2x96xf32> to vector<2x64xf32>
    %191 = vector.extract_strided_slice %189 {offsets = [0, 0], sizes = [2, 64], strides = [1, 1]} : vector<2x96xf32> to vector<2x64xf32>
    %192 = arith.addf %190, %191 : vector<2x64xf32>
    %193 = arith.negf %192 : vector<2x64xf32>
    %194 = math.exp %193 : vector<2x64xf32>
    %cst_76 = arith.constant 1.000000e+00 : f32
    %195 = vector.broadcast %cst_76 : f32 to vector<2x64xf32>
    %196 = arith.addf %195, %194 : vector<2x64xf32>
    %197 = arith.divf %195, %196 : vector<2x64xf32>
    %198 = vector.extract_strided_slice %197 {offsets = [0, 0], sizes = [2, 32], strides = [1, 1]} : vector<2x64xf32> to vector<2x32xf32>
    %199 = vector.extract_strided_slice %197 {offsets = [0, 32], sizes = [2, 32], strides = [1, 1]} : vector<2x64xf32> to vector<2x32xf32>
    %200 = vector.extract_strided_slice %184 {offsets = [0, 64], sizes = [2, 32], strides = [1, 1]} : vector<2x96xf32> to vector<2x32xf32>
    %201 = vector.extract_strided_slice %189 {offsets = [0, 64], sizes = [2, 32], strides = [1, 1]} : vector<2x96xf32> to vector<2x32xf32>
    %202 = arith.mulf %198, %201 : vector<2x32xf32>
    %203 = arith.addf %200, %202 : vector<2x32xf32>
    %204 = math.tanh %203 : vector<2x32xf32>
    %cst_77 = arith.constant 1.000000e+00 : f32
    %205 = vector.broadcast %cst_77 : f32 to vector<2x32xf32>
    %206 = arith.subf %205, %199 : vector<2x32xf32>
    %207 = arith.mulf %206, %204 : vector<2x32xf32>
    %208 = arith.mulf %199, %157 : vector<2x32xf32>
    %209 = arith.addf %207, %208 : vector<2x32xf32>
    %cst_78 = arith.constant dense<0.000000e+00> : vector<2x96xf32>
    %210 = tpu.matmul %180, %22, %cst_78 {dimension_numbers = #tpu.dot_dimension_numbers<[1], [0], [0], [1], [0, 0, 1, 1], [], []>} : vector<2x32xf32>, vector<32x96xf32>, vector<2x96xf32> -> vector<2x96xf32>
    %211 = vector.broadcast %24 : vector<1x96xf32> to vector<2x96xf32>
    %212 = arith.addf %210, %211 : vector<2x96xf32>
    %213 = vector.extract_strided_slice %186 {offsets = [0, 0], sizes = [2, 64], strides = [1, 1]} : vector<2x96xf32> to vector<2x64xf32>
    %214 = vector.extract_strided_slice %212 {offsets = [0, 0], sizes = [2, 64], strides = [1, 1]} : vector<2x96xf32> to vector<2x64xf32>
    %215 = arith.addf %213, %214 : vector<2x64xf32>
    %216 = arith.negf %215 : vector<2x64xf32>
    %217 = math.exp %216 : vector<2x64xf32>
    %cst_79 = arith.constant 1.000000e+00 : f32
    %218 = vector.broadcast %cst_79 : f32 to vector<2x64xf32>
    %219 = arith.addf %218, %217 : vector<2x64xf32>
    %220 = arith.divf %218, %219 : vector<2x64xf32>
    %221 = vector.extract_strided_slice %220 {offsets = [0, 0], sizes = [2, 32], strides = [1, 1]} : vector<2x64xf32> to vector<2x32xf32>
    %222 = vector.extract_strided_slice %220 {offsets = [0, 32], sizes = [2, 32], strides = [1, 1]} : vector<2x64xf32> to vector<2x32xf32>
    %223 = vector.extract_strided_slice %186 {offsets = [0, 64], sizes = [2, 32], strides = [1, 1]} : vector<2x96xf32> to vector<2x32xf32>
    %224 = vector.extract_strided_slice %212 {offsets = [0, 64], sizes = [2, 32], strides = [1, 1]} : vector<2x96xf32> to vector<2x32xf32>
    %225 = arith.mulf %221, %224 : vector<2x32xf32>
    %226 = arith.addf %223, %225 : vector<2x32xf32>
    %227 = math.tanh %226 : vector<2x32xf32>
    %cst_80 = arith.constant 1.000000e+00 : f32
    %228 = vector.broadcast %cst_80 : f32 to vector<2x32xf32>
    %229 = arith.subf %228, %222 : vector<2x32xf32>
    %230 = arith.mulf %229, %227 : vector<2x32xf32>
    %231 = arith.mulf %222, %180 : vector<2x32xf32>
    %232 = arith.addf %230, %231 : vector<2x32xf32>
    %c6_81 = arith.constant 6 : index
    %c0_82 = arith.constant 0 : index
    %233 = vector.load %arg8[%c6_81, %c0_82] : memref<16x64xf32, #tpu.memory_space<vmem>>, vector<2x32xf32>
    tpu.vector_store %arg8[%c6_81, %c0_82], %209 {strides = array<i32>} : memref<16x64xf32, #tpu.memory_space<vmem>>, vector<2x32xf32>,
    %c8_83 = arith.constant 8 : index
    %c32_84 = arith.constant 32 : index
    %234 = vector.load %arg8[%c8_83, %c32_84] : memref<16x64xf32, #tpu.memory_space<vmem>>, vector<2x32xf32>
    tpu.vector_store %arg8[%c8_83, %c32_84], %232 {strides = array<i32>} : memref<16x64xf32, #tpu.memory_space<vmem>>, vector<2x32xf32>,
    %c0_85 = arith.constant 0 : index
    %c8_86 = arith.constant 8 : index
    %c0_87 = arith.constant 0 : index
    %235 = vector.load %arg9[%c0_85, %c8_86, %c0_87] : memref<2x16x96xf32, #tpu.memory_space<vmem>>, vector<1x2x96xf32>
    %236 = vector.shape_cast %235 : vector<1x2x96xf32> to vector<2x96xf32>
    %c1_88 = arith.constant 1 : index
    %c6_89 = arith.constant 6 : index
    %c0_90 = arith.constant 0 : index
    %237 = vector.load %arg9[%c1_88, %c6_89, %c0_90] : memref<2x16x96xf32, #tpu.memory_space<vmem>>, vector<1x2x96xf32>
    %238 = vector.shape_cast %237 : vector<1x2x96xf32> to vector<2x96xf32>
    %cst_91 = arith.constant dense<0.000000e+00> : vector<2x96xf32>
    %239 = tpu.matmul %209, %20, %cst_91 {dimension_numbers = #tpu.dot_dimension_numbers<[1], [0], [0], [1], [0, 0, 1, 1], [], []>} : vector<2x32xf32>, vector<32x96xf32>, vector<2x96xf32> -> vector<2x96xf32>
    %240 = vector.broadcast %23 : vector<1x96xf32> to vector<2x96xf32>
    %241 = arith.addf %239, %240 : vector<2x96xf32>
    %242 = vector.extract_strided_slice %236 {offsets = [0, 0], sizes = [2, 64], strides = [1, 1]} : vector<2x96xf32> to vector<2x64xf32>
    %243 = vector.extract_strided_slice %241 {offsets = [0, 0], sizes = [2, 64], strides = [1, 1]} : vector<2x96xf32> to vector<2x64xf32>
    %244 = arith.addf %242, %243 : vector<2x64xf32>
    %245 = arith.negf %244 : vector<2x64xf32>
    %246 = math.exp %245 : vector<2x64xf32>
    %cst_92 = arith.constant 1.000000e+00 : f32
    %247 = vector.broadcast %cst_92 : f32 to vector<2x64xf32>
    %248 = arith.addf %247, %246 : vector<2x64xf32>
    %249 = arith.divf %247, %248 : vector<2x64xf32>
    %250 = vector.extract_strided_slice %249 {offsets = [0, 0], sizes = [2, 32], strides = [1, 1]} : vector<2x64xf32> to vector<2x32xf32>
    %251 = vector.extract_strided_slice %249 {offsets = [0, 32], sizes = [2, 32], strides = [1, 1]} : vector<2x64xf32> to vector<2x32xf32>
    %252 = vector.extract_strided_slice %236 {offsets = [0, 64], sizes = [2, 32], strides = [1, 1]} : vector<2x96xf32> to vector<2x32xf32>
    %253 = vector.extract_strided_slice %241 {offsets = [0, 64], sizes = [2, 32], strides = [1, 1]} : vector<2x96xf32> to vector<2x32xf32>
    %254 = arith.mulf %250, %253 : vector<2x32xf32>
    %255 = arith.addf %252, %254 : vector<2x32xf32>
    %256 = math.tanh %255 : vector<2x32xf32>
    %cst_93 = arith.constant 1.000000e+00 : f32
    %257 = vector.broadcast %cst_93 : f32 to vector<2x32xf32>
    %258 = arith.subf %257, %251 : vector<2x32xf32>
    %259 = arith.mulf %258, %256 : vector<2x32xf32>
    %260 = arith.mulf %251, %209 : vector<2x32xf32>
    %261 = arith.addf %259, %260 : vector<2x32xf32>
    %cst_94 = arith.constant dense<0.000000e+00> : vector<2x96xf32>
    %262 = tpu.matmul %232, %22, %cst_94 {dimension_numbers = #tpu.dot_dimension_numbers<[1], [0], [0], [1], [0, 0, 1, 1], [], []>} : vector<2x32xf32>, vector<32x96xf32>, vector<2x96xf32> -> vector<2x96xf32>
    %263 = vector.broadcast %24 : vector<1x96xf32> to vector<2x96xf32>
    %264 = arith.addf %262, %263 : vector<2x96xf32>
    %265 = vector.extract_strided_slice %238 {offsets = [0, 0], sizes = [2, 64], strides = [1, 1]} : vector<2x96xf32> to vector<2x64xf32>
    %266 = vector.extract_strided_slice %264 {offsets = [0, 0], sizes = [2, 64], strides = [1, 1]} : vector<2x96xf32> to vector<2x64xf32>
    %267 = arith.addf %265, %266 : vector<2x64xf32>
    %268 = arith.negf %267 : vector<2x64xf32>
    %269 = math.exp %268 : vector<2x64xf32>
    %cst_95 = arith.constant 1.000000e+00 : f32
    %270 = vector.broadcast %cst_95 : f32 to vector<2x64xf32>
    %271 = arith.addf %270, %269 : vector<2x64xf32>
    %272 = arith.divf %270, %271 : vector<2x64xf32>
    %273 = vector.extract_strided_slice %272 {offsets = [0, 0], sizes = [2, 32], strides = [1, 1]} : vector<2x64xf32> to vector<2x32xf32>
    %274 = vector.extract_strided_slice %272 {offsets = [0, 32], sizes = [2, 32], strides = [1, 1]} : vector<2x64xf32> to vector<2x32xf32>
    %275 = vector.extract_strided_slice %238 {offsets = [0, 64], sizes = [2, 32], strides = [1, 1]} : vector<2x96xf32> to vector<2x32xf32>
    %276 = vector.extract_strided_slice %264 {offsets = [0, 64], sizes = [2, 32], strides = [1, 1]} : vector<2x96xf32> to vector<2x32xf32>
    %277 = arith.mulf %273, %276 : vector<2x32xf32>
    %278 = arith.addf %275, %277 : vector<2x32xf32>
    %279 = math.tanh %278 : vector<2x32xf32>
    %cst_96 = arith.constant 1.000000e+00 : f32
    %280 = vector.broadcast %cst_96 : f32 to vector<2x32xf32>
    %281 = arith.subf %280, %274 : vector<2x32xf32>
    %282 = arith.mulf %281, %279 : vector<2x32xf32>
    %283 = arith.mulf %274, %232 : vector<2x32xf32>
    %284 = arith.addf %282, %283 : vector<2x32xf32>
    %c8_97 = arith.constant 8 : index
    %c0_98 = arith.constant 0 : index
    %285 = vector.load %arg8[%c8_97, %c0_98] : memref<16x64xf32, #tpu.memory_space<vmem>>, vector<2x32xf32>
    tpu.vector_store %arg8[%c8_97, %c0_98], %261 {strides = array<i32>} : memref<16x64xf32, #tpu.memory_space<vmem>>, vector<2x32xf32>,
    %c6_99 = arith.constant 6 : index
    %c32_100 = arith.constant 32 : index
    %286 = vector.load %arg8[%c6_99, %c32_100] : memref<16x64xf32, #tpu.memory_space<vmem>>, vector<2x32xf32>
    tpu.vector_store %arg8[%c6_99, %c32_100], %284 {strides = array<i32>} : memref<16x64xf32, #tpu.memory_space<vmem>>, vector<2x32xf32>,
    %c0_101 = arith.constant 0 : index
    %c10_102 = arith.constant 10 : index
    %c0_103 = arith.constant 0 : index
    %287 = vector.load %arg9[%c0_101, %c10_102, %c0_103] : memref<2x16x96xf32, #tpu.memory_space<vmem>>, vector<1x2x96xf32>
    %288 = vector.shape_cast %287 : vector<1x2x96xf32> to vector<2x96xf32>
    %c1_104 = arith.constant 1 : index
    %c4_105 = arith.constant 4 : index
    %c0_106 = arith.constant 0 : index
    %289 = vector.load %arg9[%c1_104, %c4_105, %c0_106] : memref<2x16x96xf32, #tpu.memory_space<vmem>>, vector<1x2x96xf32>
    %290 = vector.shape_cast %289 : vector<1x2x96xf32> to vector<2x96xf32>
    %cst_107 = arith.constant dense<0.000000e+00> : vector<2x96xf32>
    %291 = tpu.matmul %261, %20, %cst_107 {dimension_numbers = #tpu.dot_dimension_numbers<[1], [0], [0], [1], [0, 0, 1, 1], [], []>} : vector<2x32xf32>, vector<32x96xf32>, vector<2x96xf32> -> vector<2x96xf32>
    %292 = vector.broadcast %23 : vector<1x96xf32> to vector<2x96xf32>
    %293 = arith.addf %291, %292 : vector<2x96xf32>
    %294 = vector.extract_strided_slice %288 {offsets = [0, 0], sizes = [2, 64], strides = [1, 1]} : vector<2x96xf32> to vector<2x64xf32>
    %295 = vector.extract_strided_slice %293 {offsets = [0, 0], sizes = [2, 64], strides = [1, 1]} : vector<2x96xf32> to vector<2x64xf32>
    %296 = arith.addf %294, %295 : vector<2x64xf32>
    %297 = arith.negf %296 : vector<2x64xf32>
    %298 = math.exp %297 : vector<2x64xf32>
    %cst_108 = arith.constant 1.000000e+00 : f32
    %299 = vector.broadcast %cst_108 : f32 to vector<2x64xf32>
    %300 = arith.addf %299, %298 : vector<2x64xf32>
    %301 = arith.divf %299, %300 : vector<2x64xf32>
    %302 = vector.extract_strided_slice %301 {offsets = [0, 0], sizes = [2, 32], strides = [1, 1]} : vector<2x64xf32> to vector<2x32xf32>
    %303 = vector.extract_strided_slice %301 {offsets = [0, 32], sizes = [2, 32], strides = [1, 1]} : vector<2x64xf32> to vector<2x32xf32>
    %304 = vector.extract_strided_slice %288 {offsets = [0, 64], sizes = [2, 32], strides = [1, 1]} : vector<2x96xf32> to vector<2x32xf32>
    %305 = vector.extract_strided_slice %293 {offsets = [0, 64], sizes = [2, 32], strides = [1, 1]} : vector<2x96xf32> to vector<2x32xf32>
    %306 = arith.mulf %302, %305 : vector<2x32xf32>
    %307 = arith.addf %304, %306 : vector<2x32xf32>
    %308 = math.tanh %307 : vector<2x32xf32>
    %cst_109 = arith.constant 1.000000e+00 : f32
    %309 = vector.broadcast %cst_109 : f32 to vector<2x32xf32>
    %310 = arith.subf %309, %303 : vector<2x32xf32>
    %311 = arith.mulf %310, %308 : vector<2x32xf32>
    %312 = arith.mulf %303, %261 : vector<2x32xf32>
    %313 = arith.addf %311, %312 : vector<2x32xf32>
    %cst_110 = arith.constant dense<0.000000e+00> : vector<2x96xf32>
    %314 = tpu.matmul %284, %22, %cst_110 {dimension_numbers = #tpu.dot_dimension_numbers<[1], [0], [0], [1], [0, 0, 1, 1], [], []>} : vector<2x32xf32>, vector<32x96xf32>, vector<2x96xf32> -> vector<2x96xf32>
    %315 = vector.broadcast %24 : vector<1x96xf32> to vector<2x96xf32>
    %316 = arith.addf %314, %315 : vector<2x96xf32>
    %317 = vector.extract_strided_slice %290 {offsets = [0, 0], sizes = [2, 64], strides = [1, 1]} : vector<2x96xf32> to vector<2x64xf32>
    %318 = vector.extract_strided_slice %316 {offsets = [0, 0], sizes = [2, 64], strides = [1, 1]} : vector<2x96xf32> to vector<2x64xf32>
    %319 = arith.addf %317, %318 : vector<2x64xf32>
    %320 = arith.negf %319 : vector<2x64xf32>
    %321 = math.exp %320 : vector<2x64xf32>
    %cst_111 = arith.constant 1.000000e+00 : f32
    %322 = vector.broadcast %cst_111 : f32 to vector<2x64xf32>
    %323 = arith.addf %322, %321 : vector<2x64xf32>
    %324 = arith.divf %322, %323 : vector<2x64xf32>
    %325 = vector.extract_strided_slice %324 {offsets = [0, 0], sizes = [2, 32], strides = [1, 1]} : vector<2x64xf32> to vector<2x32xf32>
    %326 = vector.extract_strided_slice %324 {offsets = [0, 32], sizes = [2, 32], strides = [1, 1]} : vector<2x64xf32> to vector<2x32xf32>
    %327 = vector.extract_strided_slice %290 {offsets = [0, 64], sizes = [2, 32], strides = [1, 1]} : vector<2x96xf32> to vector<2x32xf32>
    %328 = vector.extract_strided_slice %316 {offsets = [0, 64], sizes = [2, 32], strides = [1, 1]} : vector<2x96xf32> to vector<2x32xf32>
    %329 = arith.mulf %325, %328 : vector<2x32xf32>
    %330 = arith.addf %327, %329 : vector<2x32xf32>
    %331 = math.tanh %330 : vector<2x32xf32>
    %cst_112 = arith.constant 1.000000e+00 : f32
    %332 = vector.broadcast %cst_112 : f32 to vector<2x32xf32>
    %333 = arith.subf %332, %326 : vector<2x32xf32>
    %334 = arith.mulf %333, %331 : vector<2x32xf32>
    %335 = arith.mulf %326, %284 : vector<2x32xf32>
    %336 = arith.addf %334, %335 : vector<2x32xf32>
    %c10_113 = arith.constant 10 : index
    %c0_114 = arith.constant 0 : index
    %337 = vector.load %arg8[%c10_113, %c0_114] : memref<16x64xf32, #tpu.memory_space<vmem>>, vector<2x32xf32>
    tpu.vector_store %arg8[%c10_113, %c0_114], %313 {strides = array<i32>} : memref<16x64xf32, #tpu.memory_space<vmem>>, vector<2x32xf32>,
    %c4_115 = arith.constant 4 : index
    %c32_116 = arith.constant 32 : index
    %338 = vector.load %arg8[%c4_115, %c32_116] : memref<16x64xf32, #tpu.memory_space<vmem>>, vector<2x32xf32>
    tpu.vector_store %arg8[%c4_115, %c32_116], %336 {strides = array<i32>} : memref<16x64xf32, #tpu.memory_space<vmem>>, vector<2x32xf32>,
    %c0_117 = arith.constant 0 : index
    %c12_118 = arith.constant 12 : index
    %c0_119 = arith.constant 0 : index
    %339 = vector.load %arg9[%c0_117, %c12_118, %c0_119] : memref<2x16x96xf32, #tpu.memory_space<vmem>>, vector<1x2x96xf32>
    %340 = vector.shape_cast %339 : vector<1x2x96xf32> to vector<2x96xf32>
    %c1_120 = arith.constant 1 : index
    %c2_121 = arith.constant 2 : index
    %c0_122 = arith.constant 0 : index
    %341 = vector.load %arg9[%c1_120, %c2_121, %c0_122] : memref<2x16x96xf32, #tpu.memory_space<vmem>>, vector<1x2x96xf32>
    %342 = vector.shape_cast %341 : vector<1x2x96xf32> to vector<2x96xf32>
    %cst_123 = arith.constant dense<0.000000e+00> : vector<2x96xf32>
    %343 = tpu.matmul %313, %20, %cst_123 {dimension_numbers = #tpu.dot_dimension_numbers<[1], [0], [0], [1], [0, 0, 1, 1], [], []>} : vector<2x32xf32>, vector<32x96xf32>, vector<2x96xf32> -> vector<2x96xf32>
    %344 = vector.broadcast %23 : vector<1x96xf32> to vector<2x96xf32>
    %345 = arith.addf %343, %344 : vector<2x96xf32>
    %346 = vector.extract_strided_slice %340 {offsets = [0, 0], sizes = [2, 64], strides = [1, 1]} : vector<2x96xf32> to vector<2x64xf32>
    %347 = vector.extract_strided_slice %345 {offsets = [0, 0], sizes = [2, 64], strides = [1, 1]} : vector<2x96xf32> to vector<2x64xf32>
    %348 = arith.addf %346, %347 : vector<2x64xf32>
    %349 = arith.negf %348 : vector<2x64xf32>
    %350 = math.exp %349 : vector<2x64xf32>
    %cst_124 = arith.constant 1.000000e+00 : f32
    %351 = vector.broadcast %cst_124 : f32 to vector<2x64xf32>
    %352 = arith.addf %351, %350 : vector<2x64xf32>
    %353 = arith.divf %351, %352 : vector<2x64xf32>
    %354 = vector.extract_strided_slice %353 {offsets = [0, 0], sizes = [2, 32], strides = [1, 1]} : vector<2x64xf32> to vector<2x32xf32>
    %355 = vector.extract_strided_slice %353 {offsets = [0, 32], sizes = [2, 32], strides = [1, 1]} : vector<2x64xf32> to vector<2x32xf32>
    %356 = vector.extract_strided_slice %340 {offsets = [0, 64], sizes = [2, 32], strides = [1, 1]} : vector<2x96xf32> to vector<2x32xf32>
    %357 = vector.extract_strided_slice %345 {offsets = [0, 64], sizes = [2, 32], strides = [1, 1]} : vector<2x96xf32> to vector<2x32xf32>
    %358 = arith.mulf %354, %357 : vector<2x32xf32>
    %359 = arith.addf %356, %358 : vector<2x32xf32>
    %360 = math.tanh %359 : vector<2x32xf32>
    %cst_125 = arith.constant 1.000000e+00 : f32
    %361 = vector.broadcast %cst_125 : f32 to vector<2x32xf32>
    %362 = arith.subf %361, %355 : vector<2x32xf32>
    %363 = arith.mulf %362, %360 : vector<2x32xf32>
    %364 = arith.mulf %355, %313 : vector<2x32xf32>
    %365 = arith.addf %363, %364 : vector<2x32xf32>
    %cst_126 = arith.constant dense<0.000000e+00> : vector<2x96xf32>
    %366 = tpu.matmul %336, %22, %cst_126 {dimension_numbers = #tpu.dot_dimension_numbers<[1], [0], [0], [1], [0, 0, 1, 1], [], []>} : vector<2x32xf32>, vector<32x96xf32>, vector<2x96xf32> -> vector<2x96xf32>
    %367 = vector.broadcast %24 : vector<1x96xf32> to vector<2x96xf32>
    %368 = arith.addf %366, %367 : vector<2x96xf32>
    %369 = vector.extract_strided_slice %342 {offsets = [0, 0], sizes = [2, 64], strides = [1, 1]} : vector<2x96xf32> to vector<2x64xf32>
    %370 = vector.extract_strided_slice %368 {offsets = [0, 0], sizes = [2, 64], strides = [1, 1]} : vector<2x96xf32> to vector<2x64xf32>
    %371 = arith.addf %369, %370 : vector<2x64xf32>
    %372 = arith.negf %371 : vector<2x64xf32>
    %373 = math.exp %372 : vector<2x64xf32>
    %cst_127 = arith.constant 1.000000e+00 : f32
    %374 = vector.broadcast %cst_127 : f32 to vector<2x64xf32>
    %375 = arith.addf %374, %373 : vector<2x64xf32>
    %376 = arith.divf %374, %375 : vector<2x64xf32>
    %377 = vector.extract_strided_slice %376 {offsets = [0, 0], sizes = [2, 32], strides = [1, 1]} : vector<2x64xf32> to vector<2x32xf32>
    %378 = vector.extract_strided_slice %376 {offsets = [0, 32], sizes = [2, 32], strides = [1, 1]} : vector<2x64xf32> to vector<2x32xf32>
    %379 = vector.extract_strided_slice %342 {offsets = [0, 64], sizes = [2, 32], strides = [1, 1]} : vector<2x96xf32> to vector<2x32xf32>
    %380 = vector.extract_strided_slice %368 {offsets = [0, 64], sizes = [2, 32], strides = [1, 1]} : vector<2x96xf32> to vector<2x32xf32>
    %381 = arith.mulf %377, %380 : vector<2x32xf32>
    %382 = arith.addf %379, %381 : vector<2x32xf32>
    %383 = math.tanh %382 : vector<2x32xf32>
    %cst_128 = arith.constant 1.000000e+00 : f32
    %384 = vector.broadcast %cst_128 : f32 to vector<2x32xf32>
    %385 = arith.subf %384, %378 : vector<2x32xf32>
    %386 = arith.mulf %385, %383 : vector<2x32xf32>
    %387 = arith.mulf %378, %336 : vector<2x32xf32>
    %388 = arith.addf %386, %387 : vector<2x32xf32>
    %c12_129 = arith.constant 12 : index
    %c0_130 = arith.constant 0 : index
    %389 = vector.load %arg8[%c12_129, %c0_130] : memref<16x64xf32, #tpu.memory_space<vmem>>, vector<2x32xf32>
    tpu.vector_store %arg8[%c12_129, %c0_130], %365 {strides = array<i32>} : memref<16x64xf32, #tpu.memory_space<vmem>>, vector<2x32xf32>,
    %c2_131 = arith.constant 2 : index
    %c32_132 = arith.constant 32 : index
    %390 = vector.load %arg8[%c2_131, %c32_132] : memref<16x64xf32, #tpu.memory_space<vmem>>, vector<2x32xf32>
    tpu.vector_store %arg8[%c2_131, %c32_132], %388 {strides = array<i32>} : memref<16x64xf32, #tpu.memory_space<vmem>>, vector<2x32xf32>,
    %c0_133 = arith.constant 0 : index
    %c14_134 = arith.constant 14 : index
    %c0_135 = arith.constant 0 : index
    %391 = vector.load %arg9[%c0_133, %c14_134, %c0_135] : memref<2x16x96xf32, #tpu.memory_space<vmem>>, vector<1x2x96xf32>
    %392 = vector.shape_cast %391 : vector<1x2x96xf32> to vector<2x96xf32>
    %c1_136 = arith.constant 1 : index
    %c0_137 = arith.constant 0 : index
    %c0_138 = arith.constant 0 : index
    %393 = vector.load %arg9[%c1_136, %c0_137, %c0_138] : memref<2x16x96xf32, #tpu.memory_space<vmem>>, vector<1x2x96xf32>
    %394 = vector.shape_cast %393 : vector<1x2x96xf32> to vector<2x96xf32>
    %cst_139 = arith.constant dense<0.000000e+00> : vector<2x96xf32>
    %395 = tpu.matmul %365, %20, %cst_139 {dimension_numbers = #tpu.dot_dimension_numbers<[1], [0], [0], [1], [0, 0, 1, 1], [], []>} : vector<2x32xf32>, vector<32x96xf32>, vector<2x96xf32> -> vector<2x96xf32>
    %396 = vector.broadcast %23 : vector<1x96xf32> to vector<2x96xf32>
    %397 = arith.addf %395, %396 : vector<2x96xf32>
    %398 = vector.extract_strided_slice %392 {offsets = [0, 0], sizes = [2, 64], strides = [1, 1]} : vector<2x96xf32> to vector<2x64xf32>
    %399 = vector.extract_strided_slice %397 {offsets = [0, 0], sizes = [2, 64], strides = [1, 1]} : vector<2x96xf32> to vector<2x64xf32>
    %400 = arith.addf %398, %399 : vector<2x64xf32>
    %401 = arith.negf %400 : vector<2x64xf32>
    %402 = math.exp %401 : vector<2x64xf32>
    %cst_140 = arith.constant 1.000000e+00 : f32
    %403 = vector.broadcast %cst_140 : f32 to vector<2x64xf32>
    %404 = arith.addf %403, %402 : vector<2x64xf32>
    %405 = arith.divf %403, %404 : vector<2x64xf32>
    %406 = vector.extract_strided_slice %405 {offsets = [0, 0], sizes = [2, 32], strides = [1, 1]} : vector<2x64xf32> to vector<2x32xf32>
    %407 = vector.extract_strided_slice %405 {offsets = [0, 32], sizes = [2, 32], strides = [1, 1]} : vector<2x64xf32> to vector<2x32xf32>
    %408 = vector.extract_strided_slice %392 {offsets = [0, 64], sizes = [2, 32], strides = [1, 1]} : vector<2x96xf32> to vector<2x32xf32>
    %409 = vector.extract_strided_slice %397 {offsets = [0, 64], sizes = [2, 32], strides = [1, 1]} : vector<2x96xf32> to vector<2x32xf32>
    %410 = arith.mulf %406, %409 : vector<2x32xf32>
    %411 = arith.addf %408, %410 : vector<2x32xf32>
    %412 = math.tanh %411 : vector<2x32xf32>
    %cst_141 = arith.constant 1.000000e+00 : f32
    %413 = vector.broadcast %cst_141 : f32 to vector<2x32xf32>
    %414 = arith.subf %413, %407 : vector<2x32xf32>
    %415 = arith.mulf %414, %412 : vector<2x32xf32>
    %416 = arith.mulf %407, %365 : vector<2x32xf32>
    %417 = arith.addf %415, %416 : vector<2x32xf32>
    %cst_142 = arith.constant dense<0.000000e+00> : vector<2x96xf32>
    %418 = tpu.matmul %388, %22, %cst_142 {dimension_numbers = #tpu.dot_dimension_numbers<[1], [0], [0], [1], [0, 0, 1, 1], [], []>} : vector<2x32xf32>, vector<32x96xf32>, vector<2x96xf32> -> vector<2x96xf32>
    %419 = vector.broadcast %24 : vector<1x96xf32> to vector<2x96xf32>
    %420 = arith.addf %418, %419 : vector<2x96xf32>
    %421 = vector.extract_strided_slice %394 {offsets = [0, 0], sizes = [2, 64], strides = [1, 1]} : vector<2x96xf32> to vector<2x64xf32>
    %422 = vector.extract_strided_slice %420 {offsets = [0, 0], sizes = [2, 64], strides = [1, 1]} : vector<2x96xf32> to vector<2x64xf32>
    %423 = arith.addf %421, %422 : vector<2x64xf32>
    %424 = arith.negf %423 : vector<2x64xf32>
    %425 = math.exp %424 : vector<2x64xf32>
    %cst_143 = arith.constant 1.000000e+00 : f32
    %426 = vector.broadcast %cst_143 : f32 to vector<2x64xf32>
    %427 = arith.addf %426, %425 : vector<2x64xf32>
    %428 = arith.divf %426, %427 : vector<2x64xf32>
    %429 = vector.extract_strided_slice %428 {offsets = [0, 0], sizes = [2, 32], strides = [1, 1]} : vector<2x64xf32> to vector<2x32xf32>
    %430 = vector.extract_strided_slice %428 {offsets = [0, 32], sizes = [2, 32], strides = [1, 1]} : vector<2x64xf32> to vector<2x32xf32>
    %431 = vector.extract_strided_slice %394 {offsets = [0, 64], sizes = [2, 32], strides = [1, 1]} : vector<2x96xf32> to vector<2x32xf32>
    %432 = vector.extract_strided_slice %420 {offsets = [0, 64], sizes = [2, 32], strides = [1, 1]} : vector<2x96xf32> to vector<2x32xf32>
    %433 = arith.mulf %429, %432 : vector<2x32xf32>
    %434 = arith.addf %431, %433 : vector<2x32xf32>
    %435 = math.tanh %434 : vector<2x32xf32>
    %cst_144 = arith.constant 1.000000e+00 : f32
    %436 = vector.broadcast %cst_144 : f32 to vector<2x32xf32>
    %437 = arith.subf %436, %430 : vector<2x32xf32>
    %438 = arith.mulf %437, %435 : vector<2x32xf32>
    %439 = arith.mulf %430, %388 : vector<2x32xf32>
    %440 = arith.addf %438, %439 : vector<2x32xf32>
    %c14_145 = arith.constant 14 : index
    %c0_146 = arith.constant 0 : index
    %441 = vector.load %arg8[%c14_145, %c0_146] : memref<16x64xf32, #tpu.memory_space<vmem>>, vector<2x32xf32>
    tpu.vector_store %arg8[%c14_145, %c0_146], %417 {strides = array<i32>} : memref<16x64xf32, #tpu.memory_space<vmem>>, vector<2x32xf32>,
    %c0_147 = arith.constant 0 : index
    %c32_148 = arith.constant 32 : index
    %442 = vector.load %arg8[%c0_147, %c32_148] : memref<16x64xf32, #tpu.memory_space<vmem>>, vector<2x32xf32>
    tpu.vector_store %arg8[%c0_147, %c32_148], %440 {strides = array<i32>} : memref<16x64xf32, #tpu.memory_space<vmem>>, vector<2x32xf32>,
    %c0_149 = arith.constant 0 : index
    %c0_150 = arith.constant 0 : index
    %443 = vector.load %arg8[%c0_149, %c0_150] : memref<16x64xf32, #tpu.memory_space<vmem>>, vector<16x64xf32>
    %c0_151 = arith.constant 0 : index
    %c0_152 = arith.constant 0 : index
    %c0_153 = arith.constant 0 : index
    %444 = vector.load %arg3[%c0_151, %c0_152, %c0_153] : memref<2x64x96xf32, #tpu.memory_space<vmem>>, vector<1x64x96xf32>
    %445 = vector.shape_cast %444 : vector<1x64x96xf32> to vector<64x96xf32>
    %cst_154 = arith.constant dense<0.000000e+00> : vector<16x96xf32>
    %446 = tpu.matmul %443, %445, %cst_154 {dimension_numbers = #tpu.dot_dimension_numbers<[1], [0], [0], [1], [0, 0, 1, 1], [], []>} : vector<16x64xf32>, vector<64x96xf32>, vector<16x96xf32> -> vector<16x96xf32>
    %c2_155 = arith.constant 2 : index
    %c0_156 = arith.constant 0 : index
    %447 = vector.load %arg5[%c2_155, %c0_156] : memref<4x96xf32, #tpu.memory_space<vmem>>, vector<1x96xf32>
    %448 = vector.broadcast %447 : vector<1x96xf32> to vector<16x96xf32>
    %449 = arith.addf %446, %448 : vector<16x96xf32>
    %c0_157 = arith.constant 0 : index
    %c0_158 = arith.constant 0 : index
    %c0_159 = arith.constant 0 : index
    %450 = vector.load %arg9[%c0_157, %c0_158, %c0_159] : memref<2x16x96xf32, #tpu.memory_space<vmem>>, vector<1x16x96xf32>
    %451 = vector.shape_cast %450 : vector<1x16x96xf32> to vector<16x96xf32>
    %452 = vector.shape_cast %449 : vector<16x96xf32> to vector<1x16x96xf32>
    tpu.vector_store %arg9[%c0_157, %c0_158, %c0_159], %452 {strides = array<i32>} : memref<2x16x96xf32, #tpu.memory_space<vmem>>, vector<1x16x96xf32>,
    %c1_160 = arith.constant 1 : index
    %c0_161 = arith.constant 0 : index
    %c0_162 = arith.constant 0 : index
    %453 = vector.load %arg3[%c1_160, %c0_161, %c0_162] : memref<2x64x96xf32, #tpu.memory_space<vmem>>, vector<1x64x96xf32>
    %454 = vector.shape_cast %453 : vector<1x64x96xf32> to vector<64x96xf32>
    %cst_163 = arith.constant dense<0.000000e+00> : vector<16x96xf32>
    %455 = tpu.matmul %443, %454, %cst_163 {dimension_numbers = #tpu.dot_dimension_numbers<[1], [0], [0], [1], [0, 0, 1, 1], [], []>} : vector<16x64xf32>, vector<64x96xf32>, vector<16x96xf32> -> vector<16x96xf32>
    %c3 = arith.constant 3 : index
    %c0_164 = arith.constant 0 : index
    %456 = vector.load %arg5[%c3, %c0_164] : memref<4x96xf32, #tpu.memory_space<vmem>>, vector<1x96xf32>
    %457 = vector.broadcast %456 : vector<1x96xf32> to vector<16x96xf32>
    %458 = arith.addf %455, %457 : vector<16x96xf32>
    %c1_165 = arith.constant 1 : index
    %c0_166 = arith.constant 0 : index
    %c0_167 = arith.constant 0 : index
    %459 = vector.load %arg9[%c1_165, %c0_166, %c0_167] : memref<2x16x96xf32, #tpu.memory_space<vmem>>, vector<1x16x96xf32>
    %460 = vector.shape_cast %459 : vector<1x16x96xf32> to vector<16x96xf32>
    %461 = vector.shape_cast %458 : vector<16x96xf32> to vector<1x16x96xf32>
    tpu.vector_store %arg9[%c1_165, %c0_166, %c0_167], %461 {strides = array<i32>} : memref<2x16x96xf32, #tpu.memory_space<vmem>>, vector<1x16x96xf32>,
    %c2_168 = arith.constant 2 : index
    %c0_169 = arith.constant 0 : index
    %c0_170 = arith.constant 0 : index
    %462 = vector.load %arg4[%c2_168, %c0_169, %c0_170] : memref<4x32x96xf32, #tpu.memory_space<vmem>>, vector<1x32x96xf32>
    %463 = vector.shape_cast %462 : vector<1x32x96xf32> to vector<32x96xf32>
    %c3_171 = arith.constant 3 : index
    %c0_172 = arith.constant 0 : index
    %c0_173 = arith.constant 0 : index
    %464 = vector.load %arg4[%c3_171, %c0_172, %c0_173] : memref<4x32x96xf32, #tpu.memory_space<vmem>>, vector<1x32x96xf32>
    %465 = vector.shape_cast %464 : vector<1x32x96xf32> to vector<32x96xf32>
    %c2_174 = arith.constant 2 : index
    %c0_175 = arith.constant 0 : index
    %466 = vector.load %arg6[%c2_174, %c0_175] : memref<4x96xf32, #tpu.memory_space<vmem>>, vector<1x96xf32>
    %c3_176 = arith.constant 3 : index
    %c0_177 = arith.constant 0 : index
    %467 = vector.load %arg6[%c3_176, %c0_177] : memref<4x96xf32, #tpu.memory_space<vmem>>, vector<1x96xf32>
    %cst_178 = arith.constant 0.000000e+00 : f32
    %468 = vector.broadcast %cst_178 : f32 to vector<2x32xf32>
    %cst_179 = arith.constant 0.000000e+00 : f32
    %469 = vector.broadcast %cst_179 : f32 to vector<2x32xf32>
    %c0_180 = arith.constant 0 : index
    %c0_181 = arith.constant 0 : index
    %c0_182 = arith.constant 0 : index
    %470 = vector.load %arg9[%c0_180, %c0_181, %c0_182] : memref<2x16x96xf32, #tpu.memory_space<vmem>>, vector<1x2x96xf32>
    %471 = vector.shape_cast %470 : vector<1x2x96xf32> to vector<2x96xf32>
    %c1_183 = arith.constant 1 : index
    %c14_184 = arith.constant 14 : index
    %c0_185 = arith.constant 0 : index
    %472 = vector.load %arg9[%c1_183, %c14_184, %c0_185] : memref<2x16x96xf32, #tpu.memory_space<vmem>>, vector<1x2x96xf32>
    %473 = vector.shape_cast %472 : vector<1x2x96xf32> to vector<2x96xf32>
    %cst_186 = arith.constant dense<0.000000e+00> : vector<2x96xf32>
    %474 = tpu.matmul %468, %463, %cst_186 {dimension_numbers = #tpu.dot_dimension_numbers<[1], [0], [0], [1], [0, 0, 1, 1], [], []>} : vector<2x32xf32>, vector<32x96xf32>, vector<2x96xf32> -> vector<2x96xf32>
    %475 = vector.broadcast %466 : vector<1x96xf32> to vector<2x96xf32>
    %476 = arith.addf %474, %475 : vector<2x96xf32>
    %477 = vector.extract_strided_slice %471 {offsets = [0, 0], sizes = [2, 64], strides = [1, 1]} : vector<2x96xf32> to vector<2x64xf32>
    %478 = vector.extract_strided_slice %476 {offsets = [0, 0], sizes = [2, 64], strides = [1, 1]} : vector<2x96xf32> to vector<2x64xf32>
    %479 = arith.addf %477, %478 : vector<2x64xf32>
    %480 = arith.negf %479 : vector<2x64xf32>
    %481 = math.exp %480 : vector<2x64xf32>
    %cst_187 = arith.constant 1.000000e+00 : f32
    %482 = vector.broadcast %cst_187 : f32 to vector<2x64xf32>
    %483 = arith.addf %482, %481 : vector<2x64xf32>
    %484 = arith.divf %482, %483 : vector<2x64xf32>
    %485 = vector.extract_strided_slice %484 {offsets = [0, 0], sizes = [2, 32], strides = [1, 1]} : vector<2x64xf32> to vector<2x32xf32>
    %486 = vector.extract_strided_slice %484 {offsets = [0, 32], sizes = [2, 32], strides = [1, 1]} : vector<2x64xf32> to vector<2x32xf32>
    %487 = vector.extract_strided_slice %471 {offsets = [0, 64], sizes = [2, 32], strides = [1, 1]} : vector<2x96xf32> to vector<2x32xf32>
    %488 = vector.extract_strided_slice %476 {offsets = [0, 64], sizes = [2, 32], strides = [1, 1]} : vector<2x96xf32> to vector<2x32xf32>
    %489 = arith.mulf %485, %488 : vector<2x32xf32>
    %490 = arith.addf %487, %489 : vector<2x32xf32>
    %491 = math.tanh %490 : vector<2x32xf32>
    %cst_188 = arith.constant 1.000000e+00 : f32
    %492 = vector.broadcast %cst_188 : f32 to vector<2x32xf32>
    %493 = arith.subf %492, %486 : vector<2x32xf32>
    %494 = arith.mulf %493, %491 : vector<2x32xf32>
    %495 = arith.mulf %486, %468 : vector<2x32xf32>
    %496 = arith.addf %494, %495 : vector<2x32xf32>
    %cst_189 = arith.constant dense<0.000000e+00> : vector<2x96xf32>
    %497 = tpu.matmul %469, %465, %cst_189 {dimension_numbers = #tpu.dot_dimension_numbers<[1], [0], [0], [1], [0, 0, 1, 1], [], []>} : vector<2x32xf32>, vector<32x96xf32>, vector<2x96xf32> -> vector<2x96xf32>
    %498 = vector.broadcast %467 : vector<1x96xf32> to vector<2x96xf32>
    %499 = arith.addf %497, %498 : vector<2x96xf32>
    %500 = vector.extract_strided_slice %473 {offsets = [0, 0], sizes = [2, 64], strides = [1, 1]} : vector<2x96xf32> to vector<2x64xf32>
    %501 = vector.extract_strided_slice %499 {offsets = [0, 0], sizes = [2, 64], strides = [1, 1]} : vector<2x96xf32> to vector<2x64xf32>
    %502 = arith.addf %500, %501 : vector<2x64xf32>
    %503 = arith.negf %502 : vector<2x64xf32>
    %504 = math.exp %503 : vector<2x64xf32>
    %cst_190 = arith.constant 1.000000e+00 : f32
    %505 = vector.broadcast %cst_190 : f32 to vector<2x64xf32>
    %506 = arith.addf %505, %504 : vector<2x64xf32>
    %507 = arith.divf %505, %506 : vector<2x64xf32>
    %508 = vector.extract_strided_slice %507 {offsets = [0, 0], sizes = [2, 32], strides = [1, 1]} : vector<2x64xf32> to vector<2x32xf32>
    %509 = vector.extract_strided_slice %507 {offsets = [0, 32], sizes = [2, 32], strides = [1, 1]} : vector<2x64xf32> to vector<2x32xf32>
    %510 = vector.extract_strided_slice %473 {offsets = [0, 64], sizes = [2, 32], strides = [1, 1]} : vector<2x96xf32> to vector<2x32xf32>
    %511 = vector.extract_strided_slice %499 {offsets = [0, 64], sizes = [2, 32], strides = [1, 1]} : vector<2x96xf32> to vector<2x32xf32>
    %512 = arith.mulf %508, %511 : vector<2x32xf32>
    %513 = arith.addf %510, %512 : vector<2x32xf32>
    %514 = math.tanh %513 : vector<2x32xf32>
    %cst_191 = arith.constant 1.000000e+00 : f32
    %515 = vector.broadcast %cst_191 : f32 to vector<2x32xf32>
    %516 = arith.subf %515, %509 : vector<2x32xf32>
    %517 = arith.mulf %516, %514 : vector<2x32xf32>
    %518 = arith.mulf %509, %469 : vector<2x32xf32>
    %519 = arith.addf %517, %518 : vector<2x32xf32>
    %c0_192 = arith.constant 0 : index
    %c2_193 = arith.constant 2 : index
    %c0_194 = arith.constant 0 : index
    %520 = vector.load %arg9[%c0_192, %c2_193, %c0_194] : memref<2x16x96xf32, #tpu.memory_space<vmem>>, vector<1x2x96xf32>
    %521 = vector.shape_cast %520 : vector<1x2x96xf32> to vector<2x96xf32>
    %c1_195 = arith.constant 1 : index
    %c12_196 = arith.constant 12 : index
    %c0_197 = arith.constant 0 : index
    %522 = vector.load %arg9[%c1_195, %c12_196, %c0_197] : memref<2x16x96xf32, #tpu.memory_space<vmem>>, vector<1x2x96xf32>
    %523 = vector.shape_cast %522 : vector<1x2x96xf32> to vector<2x96xf32>
    %cst_198 = arith.constant dense<0.000000e+00> : vector<2x96xf32>
    %524 = tpu.matmul %496, %463, %cst_198 {dimension_numbers = #tpu.dot_dimension_numbers<[1], [0], [0], [1], [0, 0, 1, 1], [], []>} : vector<2x32xf32>, vector<32x96xf32>, vector<2x96xf32> -> vector<2x96xf32>
    %525 = vector.broadcast %466 : vector<1x96xf32> to vector<2x96xf32>
    %526 = arith.addf %524, %525 : vector<2x96xf32>
    %527 = vector.extract_strided_slice %521 {offsets = [0, 0], sizes = [2, 64], strides = [1, 1]} : vector<2x96xf32> to vector<2x64xf32>
    %528 = vector.extract_strided_slice %526 {offsets = [0, 0], sizes = [2, 64], strides = [1, 1]} : vector<2x96xf32> to vector<2x64xf32>
    %529 = arith.addf %527, %528 : vector<2x64xf32>
    %530 = arith.negf %529 : vector<2x64xf32>
    %531 = math.exp %530 : vector<2x64xf32>
    %cst_199 = arith.constant 1.000000e+00 : f32
    %532 = vector.broadcast %cst_199 : f32 to vector<2x64xf32>
    %533 = arith.addf %532, %531 : vector<2x64xf32>
    %534 = arith.divf %532, %533 : vector<2x64xf32>
    %535 = vector.extract_strided_slice %534 {offsets = [0, 0], sizes = [2, 32], strides = [1, 1]} : vector<2x64xf32> to vector<2x32xf32>
    %536 = vector.extract_strided_slice %534 {offsets = [0, 32], sizes = [2, 32], strides = [1, 1]} : vector<2x64xf32> to vector<2x32xf32>
    %537 = vector.extract_strided_slice %521 {offsets = [0, 64], sizes = [2, 32], strides = [1, 1]} : vector<2x96xf32> to vector<2x32xf32>
    %538 = vector.extract_strided_slice %526 {offsets = [0, 64], sizes = [2, 32], strides = [1, 1]} : vector<2x96xf32> to vector<2x32xf32>
    %539 = arith.mulf %535, %538 : vector<2x32xf32>
    %540 = arith.addf %537, %539 : vector<2x32xf32>
    %541 = math.tanh %540 : vector<2x32xf32>
    %cst_200 = arith.constant 1.000000e+00 : f32
    %542 = vector.broadcast %cst_200 : f32 to vector<2x32xf32>
    %543 = arith.subf %542, %536 : vector<2x32xf32>
    %544 = arith.mulf %543, %541 : vector<2x32xf32>
    %545 = arith.mulf %536, %496 : vector<2x32xf32>
    %546 = arith.addf %544, %545 : vector<2x32xf32>
    %cst_201 = arith.constant dense<0.000000e+00> : vector<2x96xf32>
    %547 = tpu.matmul %519, %465, %cst_201 {dimension_numbers = #tpu.dot_dimension_numbers<[1], [0], [0], [1], [0, 0, 1, 1], [], []>} : vector<2x32xf32>, vector<32x96xf32>, vector<2x96xf32> -> vector<2x96xf32>
    %548 = vector.broadcast %467 : vector<1x96xf32> to vector<2x96xf32>
    %549 = arith.addf %547, %548 : vector<2x96xf32>
    %550 = vector.extract_strided_slice %523 {offsets = [0, 0], sizes = [2, 64], strides = [1, 1]} : vector<2x96xf32> to vector<2x64xf32>
    %551 = vector.extract_strided_slice %549 {offsets = [0, 0], sizes = [2, 64], strides = [1, 1]} : vector<2x96xf32> to vector<2x64xf32>
    %552 = arith.addf %550, %551 : vector<2x64xf32>
    %553 = arith.negf %552 : vector<2x64xf32>
    %554 = math.exp %553 : vector<2x64xf32>
    %cst_202 = arith.constant 1.000000e+00 : f32
    %555 = vector.broadcast %cst_202 : f32 to vector<2x64xf32>
    %556 = arith.addf %555, %554 : vector<2x64xf32>
    %557 = arith.divf %555, %556 : vector<2x64xf32>
    %558 = vector.extract_strided_slice %557 {offsets = [0, 0], sizes = [2, 32], strides = [1, 1]} : vector<2x64xf32> to vector<2x32xf32>
    %559 = vector.extract_strided_slice %557 {offsets = [0, 32], sizes = [2, 32], strides = [1, 1]} : vector<2x64xf32> to vector<2x32xf32>
    %560 = vector.extract_strided_slice %523 {offsets = [0, 64], sizes = [2, 32], strides = [1, 1]} : vector<2x96xf32> to vector<2x32xf32>
    %561 = vector.extract_strided_slice %549 {offsets = [0, 64], sizes = [2, 32], strides = [1, 1]} : vector<2x96xf32> to vector<2x32xf32>
    %562 = arith.mulf %558, %561 : vector<2x32xf32>
    %563 = arith.addf %560, %562 : vector<2x32xf32>
    %564 = math.tanh %563 : vector<2x32xf32>
    %cst_203 = arith.constant 1.000000e+00 : f32
    %565 = vector.broadcast %cst_203 : f32 to vector<2x32xf32>
    %566 = arith.subf %565, %559 : vector<2x32xf32>
    %567 = arith.mulf %566, %564 : vector<2x32xf32>
    %568 = arith.mulf %559, %519 : vector<2x32xf32>
    %569 = arith.addf %567, %568 : vector<2x32xf32>
    %c0_204 = arith.constant 0 : index
    %c4_205 = arith.constant 4 : index
    %c0_206 = arith.constant 0 : index
    %570 = vector.load %arg9[%c0_204, %c4_205, %c0_206] : memref<2x16x96xf32, #tpu.memory_space<vmem>>, vector<1x2x96xf32>
    %571 = vector.shape_cast %570 : vector<1x2x96xf32> to vector<2x96xf32>
    %c1_207 = arith.constant 1 : index
    %c10_208 = arith.constant 10 : index
    %c0_209 = arith.constant 0 : index
    %572 = vector.load %arg9[%c1_207, %c10_208, %c0_209] : memref<2x16x96xf32, #tpu.memory_space<vmem>>, vector<1x2x96xf32>
    %573 = vector.shape_cast %572 : vector<1x2x96xf32> to vector<2x96xf32>
    %cst_210 = arith.constant dense<0.000000e+00> : vector<2x96xf32>
    %574 = tpu.matmul %546, %463, %cst_210 {dimension_numbers = #tpu.dot_dimension_numbers<[1], [0], [0], [1], [0, 0, 1, 1], [], []>} : vector<2x32xf32>, vector<32x96xf32>, vector<2x96xf32> -> vector<2x96xf32>
    %575 = vector.broadcast %466 : vector<1x96xf32> to vector<2x96xf32>
    %576 = arith.addf %574, %575 : vector<2x96xf32>
    %577 = vector.extract_strided_slice %571 {offsets = [0, 0], sizes = [2, 64], strides = [1, 1]} : vector<2x96xf32> to vector<2x64xf32>
    %578 = vector.extract_strided_slice %576 {offsets = [0, 0], sizes = [2, 64], strides = [1, 1]} : vector<2x96xf32> to vector<2x64xf32>
    %579 = arith.addf %577, %578 : vector<2x64xf32>
    %580 = arith.negf %579 : vector<2x64xf32>
    %581 = math.exp %580 : vector<2x64xf32>
    %cst_211 = arith.constant 1.000000e+00 : f32
    %582 = vector.broadcast %cst_211 : f32 to vector<2x64xf32>
    %583 = arith.addf %582, %581 : vector<2x64xf32>
    %584 = arith.divf %582, %583 : vector<2x64xf32>
    %585 = vector.extract_strided_slice %584 {offsets = [0, 0], sizes = [2, 32], strides = [1, 1]} : vector<2x64xf32> to vector<2x32xf32>
    %586 = vector.extract_strided_slice %584 {offsets = [0, 32], sizes = [2, 32], strides = [1, 1]} : vector<2x64xf32> to vector<2x32xf32>
    %587 = vector.extract_strided_slice %571 {offsets = [0, 64], sizes = [2, 32], strides = [1, 1]} : vector<2x96xf32> to vector<2x32xf32>
    %588 = vector.extract_strided_slice %576 {offsets = [0, 64], sizes = [2, 32], strides = [1, 1]} : vector<2x96xf32> to vector<2x32xf32>
    %589 = arith.mulf %585, %588 : vector<2x32xf32>
    %590 = arith.addf %587, %589 : vector<2x32xf32>
    %591 = math.tanh %590 : vector<2x32xf32>
    %cst_212 = arith.constant 1.000000e+00 : f32
    %592 = vector.broadcast %cst_212 : f32 to vector<2x32xf32>
    %593 = arith.subf %592, %586 : vector<2x32xf32>
    %594 = arith.mulf %593, %591 : vector<2x32xf32>
    %595 = arith.mulf %586, %546 : vector<2x32xf32>
    %596 = arith.addf %594, %595 : vector<2x32xf32>
    %cst_213 = arith.constant dense<0.000000e+00> : vector<2x96xf32>
    %597 = tpu.matmul %569, %465, %cst_213 {dimension_numbers = #tpu.dot_dimension_numbers<[1], [0], [0], [1], [0, 0, 1, 1], [], []>} : vector<2x32xf32>, vector<32x96xf32>, vector<2x96xf32> -> vector<2x96xf32>
    %598 = vector.broadcast %467 : vector<1x96xf32> to vector<2x96xf32>
    %599 = arith.addf %597, %598 : vector<2x96xf32>
    %600 = vector.extract_strided_slice %573 {offsets = [0, 0], sizes = [2, 64], strides = [1, 1]} : vector<2x96xf32> to vector<2x64xf32>
    %601 = vector.extract_strided_slice %599 {offsets = [0, 0], sizes = [2, 64], strides = [1, 1]} : vector<2x96xf32> to vector<2x64xf32>
    %602 = arith.addf %600, %601 : vector<2x64xf32>
    %603 = arith.negf %602 : vector<2x64xf32>
    %604 = math.exp %603 : vector<2x64xf32>
    %cst_214 = arith.constant 1.000000e+00 : f32
    %605 = vector.broadcast %cst_214 : f32 to vector<2x64xf32>
    %606 = arith.addf %605, %604 : vector<2x64xf32>
    %607 = arith.divf %605, %606 : vector<2x64xf32>
    %608 = vector.extract_strided_slice %607 {offsets = [0, 0], sizes = [2, 32], strides = [1, 1]} : vector<2x64xf32> to vector<2x32xf32>
    %609 = vector.extract_strided_slice %607 {offsets = [0, 32], sizes = [2, 32], strides = [1, 1]} : vector<2x64xf32> to vector<2x32xf32>
    %610 = vector.extract_strided_slice %573 {offsets = [0, 64], sizes = [2, 32], strides = [1, 1]} : vector<2x96xf32> to vector<2x32xf32>
    %611 = vector.extract_strided_slice %599 {offsets = [0, 64], sizes = [2, 32], strides = [1, 1]} : vector<2x96xf32> to vector<2x32xf32>
    %612 = arith.mulf %608, %611 : vector<2x32xf32>
    %613 = arith.addf %610, %612 : vector<2x32xf32>
    %614 = math.tanh %613 : vector<2x32xf32>
    %cst_215 = arith.constant 1.000000e+00 : f32
    %615 = vector.broadcast %cst_215 : f32 to vector<2x32xf32>
    %616 = arith.subf %615, %609 : vector<2x32xf32>
    %617 = arith.mulf %616, %614 : vector<2x32xf32>
    %618 = arith.mulf %609, %569 : vector<2x32xf32>
    %619 = arith.addf %617, %618 : vector<2x32xf32>
    %c0_216 = arith.constant 0 : index
    %c6_217 = arith.constant 6 : index
    %c0_218 = arith.constant 0 : index
    %620 = vector.load %arg9[%c0_216, %c6_217, %c0_218] : memref<2x16x96xf32, #tpu.memory_space<vmem>>, vector<1x2x96xf32>
    %621 = vector.shape_cast %620 : vector<1x2x96xf32> to vector<2x96xf32>
    %c1_219 = arith.constant 1 : index
    %c8_220 = arith.constant 8 : index
    %c0_221 = arith.constant 0 : index
    %622 = vector.load %arg9[%c1_219, %c8_220, %c0_221] : memref<2x16x96xf32, #tpu.memory_space<vmem>>, vector<1x2x96xf32>
    %623 = vector.shape_cast %622 : vector<1x2x96xf32> to vector<2x96xf32>
    %cst_222 = arith.constant dense<0.000000e+00> : vector<2x96xf32>
    %624 = tpu.matmul %596, %463, %cst_222 {dimension_numbers = #tpu.dot_dimension_numbers<[1], [0], [0], [1], [0, 0, 1, 1], [], []>} : vector<2x32xf32>, vector<32x96xf32>, vector<2x96xf32> -> vector<2x96xf32>
    %625 = vector.broadcast %466 : vector<1x96xf32> to vector<2x96xf32>
    %626 = arith.addf %624, %625 : vector<2x96xf32>
    %627 = vector.extract_strided_slice %621 {offsets = [0, 0], sizes = [2, 64], strides = [1, 1]} : vector<2x96xf32> to vector<2x64xf32>
    %628 = vector.extract_strided_slice %626 {offsets = [0, 0], sizes = [2, 64], strides = [1, 1]} : vector<2x96xf32> to vector<2x64xf32>
    %629 = arith.addf %627, %628 : vector<2x64xf32>
    %630 = arith.negf %629 : vector<2x64xf32>
    %631 = math.exp %630 : vector<2x64xf32>
    %cst_223 = arith.constant 1.000000e+00 : f32
    %632 = vector.broadcast %cst_223 : f32 to vector<2x64xf32>
    %633 = arith.addf %632, %631 : vector<2x64xf32>
    %634 = arith.divf %632, %633 : vector<2x64xf32>
    %635 = vector.extract_strided_slice %634 {offsets = [0, 0], sizes = [2, 32], strides = [1, 1]} : vector<2x64xf32> to vector<2x32xf32>
    %636 = vector.extract_strided_slice %634 {offsets = [0, 32], sizes = [2, 32], strides = [1, 1]} : vector<2x64xf32> to vector<2x32xf32>
    %637 = vector.extract_strided_slice %621 {offsets = [0, 64], sizes = [2, 32], strides = [1, 1]} : vector<2x96xf32> to vector<2x32xf32>
    %638 = vector.extract_strided_slice %626 {offsets = [0, 64], sizes = [2, 32], strides = [1, 1]} : vector<2x96xf32> to vector<2x32xf32>
    %639 = arith.mulf %635, %638 : vector<2x32xf32>
    %640 = arith.addf %637, %639 : vector<2x32xf32>
    %641 = math.tanh %640 : vector<2x32xf32>
    %cst_224 = arith.constant 1.000000e+00 : f32
    %642 = vector.broadcast %cst_224 : f32 to vector<2x32xf32>
    %643 = arith.subf %642, %636 : vector<2x32xf32>
    %644 = arith.mulf %643, %641 : vector<2x32xf32>
    %645 = arith.mulf %636, %596 : vector<2x32xf32>
    %646 = arith.addf %644, %645 : vector<2x32xf32>
    %cst_225 = arith.constant dense<0.000000e+00> : vector<2x96xf32>
    %647 = tpu.matmul %619, %465, %cst_225 {dimension_numbers = #tpu.dot_dimension_numbers<[1], [0], [0], [1], [0, 0, 1, 1], [], []>} : vector<2x32xf32>, vector<32x96xf32>, vector<2x96xf32> -> vector<2x96xf32>
    %648 = vector.broadcast %467 : vector<1x96xf32> to vector<2x96xf32>
    %649 = arith.addf %647, %648 : vector<2x96xf32>
    %650 = vector.extract_strided_slice %623 {offsets = [0, 0], sizes = [2, 64], strides = [1, 1]} : vector<2x96xf32> to vector<2x64xf32>
    %651 = vector.extract_strided_slice %649 {offsets = [0, 0], sizes = [2, 64], strides = [1, 1]} : vector<2x96xf32> to vector<2x64xf32>
    %652 = arith.addf %650, %651 : vector<2x64xf32>
    %653 = arith.negf %652 : vector<2x64xf32>
    %654 = math.exp %653 : vector<2x64xf32>
    %cst_226 = arith.constant 1.000000e+00 : f32
    %655 = vector.broadcast %cst_226 : f32 to vector<2x64xf32>
    %656 = arith.addf %655, %654 : vector<2x64xf32>
    %657 = arith.divf %655, %656 : vector<2x64xf32>
    %658 = vector.extract_strided_slice %657 {offsets = [0, 0], sizes = [2, 32], strides = [1, 1]} : vector<2x64xf32> to vector<2x32xf32>
    %659 = vector.extract_strided_slice %657 {offsets = [0, 32], sizes = [2, 32], strides = [1, 1]} : vector<2x64xf32> to vector<2x32xf32>
    %660 = vector.extract_strided_slice %623 {offsets = [0, 64], sizes = [2, 32], strides = [1, 1]} : vector<2x96xf32> to vector<2x32xf32>
    %661 = vector.extract_strided_slice %649 {offsets = [0, 64], sizes = [2, 32], strides = [1, 1]} : vector<2x96xf32> to vector<2x32xf32>
    %662 = arith.mulf %658, %661 : vector<2x32xf32>
    %663 = arith.addf %660, %662 : vector<2x32xf32>
    %664 = math.tanh %663 : vector<2x32xf32>
    %cst_227 = arith.constant 1.000000e+00 : f32
    %665 = vector.broadcast %cst_227 : f32 to vector<2x32xf32>
    %666 = arith.subf %665, %659 : vector<2x32xf32>
    %667 = arith.mulf %666, %664 : vector<2x32xf32>
    %668 = arith.mulf %659, %619 : vector<2x32xf32>
    %669 = arith.addf %667, %668 : vector<2x32xf32>
    %c0_228 = arith.constant 0 : index
    %c8_229 = arith.constant 8 : index
    %c0_230 = arith.constant 0 : index
    %670 = vector.load %arg9[%c0_228, %c8_229, %c0_230] : memref<2x16x96xf32, #tpu.memory_space<vmem>>, vector<1x2x96xf32>
    %671 = vector.shape_cast %670 : vector<1x2x96xf32> to vector<2x96xf32>
    %c1_231 = arith.constant 1 : index
    %c6_232 = arith.constant 6 : index
    %c0_233 = arith.constant 0 : index
    %672 = vector.load %arg9[%c1_231, %c6_232, %c0_233] : memref<2x16x96xf32, #tpu.memory_space<vmem>>, vector<1x2x96xf32>
    %673 = vector.shape_cast %672 : vector<1x2x96xf32> to vector<2x96xf32>
    %cst_234 = arith.constant dense<0.000000e+00> : vector<2x96xf32>
    %674 = tpu.matmul %646, %463, %cst_234 {dimension_numbers = #tpu.dot_dimension_numbers<[1], [0], [0], [1], [0, 0, 1, 1], [], []>} : vector<2x32xf32>, vector<32x96xf32>, vector<2x96xf32> -> vector<2x96xf32>
    %675 = vector.broadcast %466 : vector<1x96xf32> to vector<2x96xf32>
    %676 = arith.addf %674, %675 : vector<2x96xf32>
    %677 = vector.extract_strided_slice %671 {offsets = [0, 0], sizes = [2, 64], strides = [1, 1]} : vector<2x96xf32> to vector<2x64xf32>
    %678 = vector.extract_strided_slice %676 {offsets = [0, 0], sizes = [2, 64], strides = [1, 1]} : vector<2x96xf32> to vector<2x64xf32>
    %679 = arith.addf %677, %678 : vector<2x64xf32>
    %680 = arith.negf %679 : vector<2x64xf32>
    %681 = math.exp %680 : vector<2x64xf32>
    %cst_235 = arith.constant 1.000000e+00 : f32
    %682 = vector.broadcast %cst_235 : f32 to vector<2x64xf32>
    %683 = arith.addf %682, %681 : vector<2x64xf32>
    %684 = arith.divf %682, %683 : vector<2x64xf32>
    %685 = vector.extract_strided_slice %684 {offsets = [0, 0], sizes = [2, 32], strides = [1, 1]} : vector<2x64xf32> to vector<2x32xf32>
    %686 = vector.extract_strided_slice %684 {offsets = [0, 32], sizes = [2, 32], strides = [1, 1]} : vector<2x64xf32> to vector<2x32xf32>
    %687 = vector.extract_strided_slice %671 {offsets = [0, 64], sizes = [2, 32], strides = [1, 1]} : vector<2x96xf32> to vector<2x32xf32>
    %688 = vector.extract_strided_slice %676 {offsets = [0, 64], sizes = [2, 32], strides = [1, 1]} : vector<2x96xf32> to vector<2x32xf32>
    %689 = arith.mulf %685, %688 : vector<2x32xf32>
    %690 = arith.addf %687, %689 : vector<2x32xf32>
    %691 = math.tanh %690 : vector<2x32xf32>
    %cst_236 = arith.constant 1.000000e+00 : f32
    %692 = vector.broadcast %cst_236 : f32 to vector<2x32xf32>
    %693 = arith.subf %692, %686 : vector<2x32xf32>
    %694 = arith.mulf %693, %691 : vector<2x32xf32>
    %695 = arith.mulf %686, %646 : vector<2x32xf32>
    %696 = arith.addf %694, %695 : vector<2x32xf32>
    %cst_237 = arith.constant dense<0.000000e+00> : vector<2x96xf32>
    %697 = tpu.matmul %669, %465, %cst_237 {dimension_numbers = #tpu.dot_dimension_numbers<[1], [0], [0], [1], [0, 0, 1, 1], [], []>} : vector<2x32xf32>, vector<32x96xf32>, vector<2x96xf32> -> vector<2x96xf32>
    %698 = vector.broadcast %467 : vector<1x96xf32> to vector<2x96xf32>
    %699 = arith.addf %697, %698 : vector<2x96xf32>
    %700 = vector.extract_strided_slice %673 {offsets = [0, 0], sizes = [2, 64], strides = [1, 1]} : vector<2x96xf32> to vector<2x64xf32>
    %701 = vector.extract_strided_slice %699 {offsets = [0, 0], sizes = [2, 64], strides = [1, 1]} : vector<2x96xf32> to vector<2x64xf32>
    %702 = arith.addf %700, %701 : vector<2x64xf32>
    %703 = arith.negf %702 : vector<2x64xf32>
    %704 = math.exp %703 : vector<2x64xf32>
    %cst_238 = arith.constant 1.000000e+00 : f32
    %705 = vector.broadcast %cst_238 : f32 to vector<2x64xf32>
    %706 = arith.addf %705, %704 : vector<2x64xf32>
    %707 = arith.divf %705, %706 : vector<2x64xf32>
    %708 = vector.extract_strided_slice %707 {offsets = [0, 0], sizes = [2, 32], strides = [1, 1]} : vector<2x64xf32> to vector<2x32xf32>
    %709 = vector.extract_strided_slice %707 {offsets = [0, 32], sizes = [2, 32], strides = [1, 1]} : vector<2x64xf32> to vector<2x32xf32>
    %710 = vector.extract_strided_slice %673 {offsets = [0, 64], sizes = [2, 32], strides = [1, 1]} : vector<2x96xf32> to vector<2x32xf32>
    %711 = vector.extract_strided_slice %699 {offsets = [0, 64], sizes = [2, 32], strides = [1, 1]} : vector<2x96xf32> to vector<2x32xf32>
    %712 = arith.mulf %708, %711 : vector<2x32xf32>
    %713 = arith.addf %710, %712 : vector<2x32xf32>
    %714 = math.tanh %713 : vector<2x32xf32>
    %cst_239 = arith.constant 1.000000e+00 : f32
    %715 = vector.broadcast %cst_239 : f32 to vector<2x32xf32>
    %716 = arith.subf %715, %709 : vector<2x32xf32>
    %717 = arith.mulf %716, %714 : vector<2x32xf32>
    %718 = arith.mulf %709, %669 : vector<2x32xf32>
    %719 = arith.addf %717, %718 : vector<2x32xf32>
    %c0_240 = arith.constant 0 : index
    %c10_241 = arith.constant 10 : index
    %c0_242 = arith.constant 0 : index
    %720 = vector.load %arg9[%c0_240, %c10_241, %c0_242] : memref<2x16x96xf32, #tpu.memory_space<vmem>>, vector<1x2x96xf32>
    %721 = vector.shape_cast %720 : vector<1x2x96xf32> to vector<2x96xf32>
    %c1_243 = arith.constant 1 : index
    %c4_244 = arith.constant 4 : index
    %c0_245 = arith.constant 0 : index
    %722 = vector.load %arg9[%c1_243, %c4_244, %c0_245] : memref<2x16x96xf32, #tpu.memory_space<vmem>>, vector<1x2x96xf32>
    %723 = vector.shape_cast %722 : vector<1x2x96xf32> to vector<2x96xf32>
    %cst_246 = arith.constant dense<0.000000e+00> : vector<2x96xf32>
    %724 = tpu.matmul %696, %463, %cst_246 {dimension_numbers = #tpu.dot_dimension_numbers<[1], [0], [0], [1], [0, 0, 1, 1], [], []>} : vector<2x32xf32>, vector<32x96xf32>, vector<2x96xf32> -> vector<2x96xf32>
    %725 = vector.broadcast %466 : vector<1x96xf32> to vector<2x96xf32>
    %726 = arith.addf %724, %725 : vector<2x96xf32>
    %727 = vector.extract_strided_slice %721 {offsets = [0, 0], sizes = [2, 64], strides = [1, 1]} : vector<2x96xf32> to vector<2x64xf32>
    %728 = vector.extract_strided_slice %726 {offsets = [0, 0], sizes = [2, 64], strides = [1, 1]} : vector<2x96xf32> to vector<2x64xf32>
    %729 = arith.addf %727, %728 : vector<2x64xf32>
    %730 = arith.negf %729 : vector<2x64xf32>
    %731 = math.exp %730 : vector<2x64xf32>
    %cst_247 = arith.constant 1.000000e+00 : f32
    %732 = vector.broadcast %cst_247 : f32 to vector<2x64xf32>
    %733 = arith.addf %732, %731 : vector<2x64xf32>
    %734 = arith.divf %732, %733 : vector<2x64xf32>
    %735 = vector.extract_strided_slice %734 {offsets = [0, 0], sizes = [2, 32], strides = [1, 1]} : vector<2x64xf32> to vector<2x32xf32>
    %736 = vector.extract_strided_slice %734 {offsets = [0, 32], sizes = [2, 32], strides = [1, 1]} : vector<2x64xf32> to vector<2x32xf32>
    %737 = vector.extract_strided_slice %721 {offsets = [0, 64], sizes = [2, 32], strides = [1, 1]} : vector<2x96xf32> to vector<2x32xf32>
    %738 = vector.extract_strided_slice %726 {offsets = [0, 64], sizes = [2, 32], strides = [1, 1]} : vector<2x96xf32> to vector<2x32xf32>
    %739 = arith.mulf %735, %738 : vector<2x32xf32>
    %740 = arith.addf %737, %739 : vector<2x32xf32>
    %741 = math.tanh %740 : vector<2x32xf32>
    %cst_248 = arith.constant 1.000000e+00 : f32
    %742 = vector.broadcast %cst_248 : f32 to vector<2x32xf32>
    %743 = arith.subf %742, %736 : vector<2x32xf32>
    %744 = arith.mulf %743, %741 : vector<2x32xf32>
    %745 = arith.mulf %736, %696 : vector<2x32xf32>
    %746 = arith.addf %744, %745 : vector<2x32xf32>
    %cst_249 = arith.constant dense<0.000000e+00> : vector<2x96xf32>
    %747 = tpu.matmul %719, %465, %cst_249 {dimension_numbers = #tpu.dot_dimension_numbers<[1], [0], [0], [1], [0, 0, 1, 1], [], []>} : vector<2x32xf32>, vector<32x96xf32>, vector<2x96xf32> -> vector<2x96xf32>
    %748 = vector.broadcast %467 : vector<1x96xf32> to vector<2x96xf32>
    %749 = arith.addf %747, %748 : vector<2x96xf32>
    %750 = vector.extract_strided_slice %723 {offsets = [0, 0], sizes = [2, 64], strides = [1, 1]} : vector<2x96xf32> to vector<2x64xf32>
    %751 = vector.extract_strided_slice %749 {offsets = [0, 0], sizes = [2, 64], strides = [1, 1]} : vector<2x96xf32> to vector<2x64xf32>
    %752 = arith.addf %750, %751 : vector<2x64xf32>
    %753 = arith.negf %752 : vector<2x64xf32>
    %754 = math.exp %753 : vector<2x64xf32>
    %cst_250 = arith.constant 1.000000e+00 : f32
    %755 = vector.broadcast %cst_250 : f32 to vector<2x64xf32>
    %756 = arith.addf %755, %754 : vector<2x64xf32>
    %757 = arith.divf %755, %756 : vector<2x64xf32>
    %758 = vector.extract_strided_slice %757 {offsets = [0, 0], sizes = [2, 32], strides = [1, 1]} : vector<2x64xf32> to vector<2x32xf32>
    %759 = vector.extract_strided_slice %757 {offsets = [0, 32], sizes = [2, 32], strides = [1, 1]} : vector<2x64xf32> to vector<2x32xf32>
    %760 = vector.extract_strided_slice %723 {offsets = [0, 64], sizes = [2, 32], strides = [1, 1]} : vector<2x96xf32> to vector<2x32xf32>
    %761 = vector.extract_strided_slice %749 {offsets = [0, 64], sizes = [2, 32], strides = [1, 1]} : vector<2x96xf32> to vector<2x32xf32>
    %762 = arith.mulf %758, %761 : vector<2x32xf32>
    %763 = arith.addf %760, %762 : vector<2x32xf32>
    %764 = math.tanh %763 : vector<2x32xf32>
    %cst_251 = arith.constant 1.000000e+00 : f32
    %765 = vector.broadcast %cst_251 : f32 to vector<2x32xf32>
    %766 = arith.subf %765, %759 : vector<2x32xf32>
    %767 = arith.mulf %766, %764 : vector<2x32xf32>
    %768 = arith.mulf %759, %719 : vector<2x32xf32>
    %769 = arith.addf %767, %768 : vector<2x32xf32>
    %c0_252 = arith.constant 0 : index
    %c12_253 = arith.constant 12 : index
    %c0_254 = arith.constant 0 : index
    %770 = vector.load %arg9[%c0_252, %c12_253, %c0_254] : memref<2x16x96xf32, #tpu.memory_space<vmem>>, vector<1x2x96xf32>
    %771 = vector.shape_cast %770 : vector<1x2x96xf32> to vector<2x96xf32>
    %c1_255 = arith.constant 1 : index
    %c2_256 = arith.constant 2 : index
    %c0_257 = arith.constant 0 : index
    %772 = vector.load %arg9[%c1_255, %c2_256, %c0_257] : memref<2x16x96xf32, #tpu.memory_space<vmem>>, vector<1x2x96xf32>
    %773 = vector.shape_cast %772 : vector<1x2x96xf32> to vector<2x96xf32>
    %cst_258 = arith.constant dense<0.000000e+00> : vector<2x96xf32>
    %774 = tpu.matmul %746, %463, %cst_258 {dimension_numbers = #tpu.dot_dimension_numbers<[1], [0], [0], [1], [0, 0, 1, 1], [], []>} : vector<2x32xf32>, vector<32x96xf32>, vector<2x96xf32> -> vector<2x96xf32>
    %775 = vector.broadcast %466 : vector<1x96xf32> to vector<2x96xf32>
    %776 = arith.addf %774, %775 : vector<2x96xf32>
    %777 = vector.extract_strided_slice %771 {offsets = [0, 0], sizes = [2, 64], strides = [1, 1]} : vector<2x96xf32> to vector<2x64xf32>
    %778 = vector.extract_strided_slice %776 {offsets = [0, 0], sizes = [2, 64], strides = [1, 1]} : vector<2x96xf32> to vector<2x64xf32>
    %779 = arith.addf %777, %778 : vector<2x64xf32>
    %780 = arith.negf %779 : vector<2x64xf32>
    %781 = math.exp %780 : vector<2x64xf32>
    %cst_259 = arith.constant 1.000000e+00 : f32
    %782 = vector.broadcast %cst_259 : f32 to vector<2x64xf32>
    %783 = arith.addf %782, %781 : vector<2x64xf32>
    %784 = arith.divf %782, %783 : vector<2x64xf32>
    %785 = vector.extract_strided_slice %784 {offsets = [0, 0], sizes = [2, 32], strides = [1, 1]} : vector<2x64xf32> to vector<2x32xf32>
    %786 = vector.extract_strided_slice %784 {offsets = [0, 32], sizes = [2, 32], strides = [1, 1]} : vector<2x64xf32> to vector<2x32xf32>
    %787 = vector.extract_strided_slice %771 {offsets = [0, 64], sizes = [2, 32], strides = [1, 1]} : vector<2x96xf32> to vector<2x32xf32>
    %788 = vector.extract_strided_slice %776 {offsets = [0, 64], sizes = [2, 32], strides = [1, 1]} : vector<2x96xf32> to vector<2x32xf32>
    %789 = arith.mulf %785, %788 : vector<2x32xf32>
    %790 = arith.addf %787, %789 : vector<2x32xf32>
    %791 = math.tanh %790 : vector<2x32xf32>
    %cst_260 = arith.constant 1.000000e+00 : f32
    %792 = vector.broadcast %cst_260 : f32 to vector<2x32xf32>
    %793 = arith.subf %792, %786 : vector<2x32xf32>
    %794 = arith.mulf %793, %791 : vector<2x32xf32>
    %795 = arith.mulf %786, %746 : vector<2x32xf32>
    %796 = arith.addf %794, %795 : vector<2x32xf32>
    %cst_261 = arith.constant dense<0.000000e+00> : vector<2x96xf32>
    %797 = tpu.matmul %769, %465, %cst_261 {dimension_numbers = #tpu.dot_dimension_numbers<[1], [0], [0], [1], [0, 0, 1, 1], [], []>} : vector<2x32xf32>, vector<32x96xf32>, vector<2x96xf32> -> vector<2x96xf32>
    %798 = vector.broadcast %467 : vector<1x96xf32> to vector<2x96xf32>
    %799 = arith.addf %797, %798 : vector<2x96xf32>
    %800 = vector.extract_strided_slice %773 {offsets = [0, 0], sizes = [2, 64], strides = [1, 1]} : vector<2x96xf32> to vector<2x64xf32>
    %801 = vector.extract_strided_slice %799 {offsets = [0, 0], sizes = [2, 64], strides = [1, 1]} : vector<2x96xf32> to vector<2x64xf32>
    %802 = arith.addf %800, %801 : vector<2x64xf32>
    %803 = arith.negf %802 : vector<2x64xf32>
    %804 = math.exp %803 : vector<2x64xf32>
    %cst_262 = arith.constant 1.000000e+00 : f32
    %805 = vector.broadcast %cst_262 : f32 to vector<2x64xf32>
    %806 = arith.addf %805, %804 : vector<2x64xf32>
    %807 = arith.divf %805, %806 : vector<2x64xf32>
    %808 = vector.extract_strided_slice %807 {offsets = [0, 0], sizes = [2, 32], strides = [1, 1]} : vector<2x64xf32> to vector<2x32xf32>
    %809 = vector.extract_strided_slice %807 {offsets = [0, 32], sizes = [2, 32], strides = [1, 1]} : vector<2x64xf32> to vector<2x32xf32>
    %810 = vector.extract_strided_slice %773 {offsets = [0, 64], sizes = [2, 32], strides = [1, 1]} : vector<2x96xf32> to vector<2x32xf32>
    %811 = vector.extract_strided_slice %799 {offsets = [0, 64], sizes = [2, 32], strides = [1, 1]} : vector<2x96xf32> to vector<2x32xf32>
    %812 = arith.mulf %808, %811 : vector<2x32xf32>
    %813 = arith.addf %810, %812 : vector<2x32xf32>
    %814 = math.tanh %813 : vector<2x32xf32>
    %cst_263 = arith.constant 1.000000e+00 : f32
    %815 = vector.broadcast %cst_263 : f32 to vector<2x32xf32>
    %816 = arith.subf %815, %809 : vector<2x32xf32>
    %817 = arith.mulf %816, %814 : vector<2x32xf32>
    %818 = arith.mulf %809, %769 : vector<2x32xf32>
    %819 = arith.addf %817, %818 : vector<2x32xf32>
    %c0_264 = arith.constant 0 : index
    %c14_265 = arith.constant 14 : index
    %c0_266 = arith.constant 0 : index
    %820 = vector.load %arg9[%c0_264, %c14_265, %c0_266] : memref<2x16x96xf32, #tpu.memory_space<vmem>>, vector<1x2x96xf32>
    %821 = vector.shape_cast %820 : vector<1x2x96xf32> to vector<2x96xf32>
    %c1_267 = arith.constant 1 : index
    %c0_268 = arith.constant 0 : index
    %c0_269 = arith.constant 0 : index
    %822 = vector.load %arg9[%c1_267, %c0_268, %c0_269] : memref<2x16x96xf32, #tpu.memory_space<vmem>>, vector<1x2x96xf32>
    %823 = vector.shape_cast %822 : vector<1x2x96xf32> to vector<2x96xf32>
    %cst_270 = arith.constant dense<0.000000e+00> : vector<2x96xf32>
    %824 = tpu.matmul %796, %463, %cst_270 {dimension_numbers = #tpu.dot_dimension_numbers<[1], [0], [0], [1], [0, 0, 1, 1], [], []>} : vector<2x32xf32>, vector<32x96xf32>, vector<2x96xf32> -> vector<2x96xf32>
    %825 = vector.broadcast %466 : vector<1x96xf32> to vector<2x96xf32>
    %826 = arith.addf %824, %825 : vector<2x96xf32>
    %827 = vector.extract_strided_slice %821 {offsets = [0, 0], sizes = [2, 64], strides = [1, 1]} : vector<2x96xf32> to vector<2x64xf32>
    %828 = vector.extract_strided_slice %826 {offsets = [0, 0], sizes = [2, 64], strides = [1, 1]} : vector<2x96xf32> to vector<2x64xf32>
    %829 = arith.addf %827, %828 : vector<2x64xf32>
    %830 = arith.negf %829 : vector<2x64xf32>
    %831 = math.exp %830 : vector<2x64xf32>
    %cst_271 = arith.constant 1.000000e+00 : f32
    %832 = vector.broadcast %cst_271 : f32 to vector<2x64xf32>
    %833 = arith.addf %832, %831 : vector<2x64xf32>
    %834 = arith.divf %832, %833 : vector<2x64xf32>
    %835 = vector.extract_strided_slice %834 {offsets = [0, 0], sizes = [2, 32], strides = [1, 1]} : vector<2x64xf32> to vector<2x32xf32>
    %836 = vector.extract_strided_slice %834 {offsets = [0, 32], sizes = [2, 32], strides = [1, 1]} : vector<2x64xf32> to vector<2x32xf32>
    %837 = vector.extract_strided_slice %821 {offsets = [0, 64], sizes = [2, 32], strides = [1, 1]} : vector<2x96xf32> to vector<2x32xf32>
    %838 = vector.extract_strided_slice %826 {offsets = [0, 64], sizes = [2, 32], strides = [1, 1]} : vector<2x96xf32> to vector<2x32xf32>
    %839 = arith.mulf %835, %838 : vector<2x32xf32>
    %840 = arith.addf %837, %839 : vector<2x32xf32>
    %841 = math.tanh %840 : vector<2x32xf32>
    %cst_272 = arith.constant 1.000000e+00 : f32
    %842 = vector.broadcast %cst_272 : f32 to vector<2x32xf32>
    %843 = arith.subf %842, %836 : vector<2x32xf32>
    %844 = arith.mulf %843, %841 : vector<2x32xf32>
    %845 = arith.mulf %836, %796 : vector<2x32xf32>
    %846 = arith.addf %844, %845 : vector<2x32xf32>
    %cst_273 = arith.constant dense<0.000000e+00> : vector<2x96xf32>
    %847 = tpu.matmul %819, %465, %cst_273 {dimension_numbers = #tpu.dot_dimension_numbers<[1], [0], [0], [1], [0, 0, 1, 1], [], []>} : vector<2x32xf32>, vector<32x96xf32>, vector<2x96xf32> -> vector<2x96xf32>
    %848 = vector.broadcast %467 : vector<1x96xf32> to vector<2x96xf32>
    %849 = arith.addf %847, %848 : vector<2x96xf32>
    %850 = vector.extract_strided_slice %823 {offsets = [0, 0], sizes = [2, 64], strides = [1, 1]} : vector<2x96xf32> to vector<2x64xf32>
    %851 = vector.extract_strided_slice %849 {offsets = [0, 0], sizes = [2, 64], strides = [1, 1]} : vector<2x96xf32> to vector<2x64xf32>
    %852 = arith.addf %850, %851 : vector<2x64xf32>
    %853 = arith.negf %852 : vector<2x64xf32>
    %854 = math.exp %853 : vector<2x64xf32>
    %cst_274 = arith.constant 1.000000e+00 : f32
    %855 = vector.broadcast %cst_274 : f32 to vector<2x64xf32>
    %856 = arith.addf %855, %854 : vector<2x64xf32>
    %857 = arith.divf %855, %856 : vector<2x64xf32>
    %858 = vector.extract_strided_slice %857 {offsets = [0, 0], sizes = [2, 32], strides = [1, 1]} : vector<2x64xf32> to vector<2x32xf32>
    %859 = vector.extract_strided_slice %857 {offsets = [0, 32], sizes = [2, 32], strides = [1, 1]} : vector<2x64xf32> to vector<2x32xf32>
    %860 = vector.extract_strided_slice %823 {offsets = [0, 64], sizes = [2, 32], strides = [1, 1]} : vector<2x96xf32> to vector<2x32xf32>
    %861 = vector.extract_strided_slice %849 {offsets = [0, 64], sizes = [2, 32], strides = [1, 1]} : vector<2x96xf32> to vector<2x32xf32>
    %862 = arith.mulf %858, %861 : vector<2x32xf32>
    %863 = arith.addf %860, %862 : vector<2x32xf32>
    %864 = math.tanh %863 : vector<2x32xf32>
    %cst_275 = arith.constant 1.000000e+00 : f32
    %865 = vector.broadcast %cst_275 : f32 to vector<2x32xf32>
    %866 = arith.subf %865, %859 : vector<2x32xf32>
    %867 = arith.mulf %866, %864 : vector<2x32xf32>
    %868 = arith.mulf %859, %819 : vector<2x32xf32>
    %869 = arith.addf %867, %868 : vector<2x32xf32>
    %870 = tpu.concatenate %417, %440, %846, %869 in 1 : vector<2x32xf32>, vector<2x32xf32>, vector<2x32xf32>, vector<2x32xf32> -> vector<2x128xf32>
    %c0_276 = arith.constant 0 : index
    %c0_277 = arith.constant 0 : index
    %871 = vector.load %arg7[%c0_276, %c0_277] : memref<2x128xf32, #tpu.memory_space<vmem>>, vector<2x128xf32>
    tpu.vector_store %arg7[%c0_276, %c0_277], %870 {strides = array<i32>} : memref<2x128xf32, #tpu.memory_space<vmem>>, vector<2x128xf32>,
    return
  }
  func.func @transform_0(%arg0: i32) -> (i32, i32) {
    %c0_i32 = arith.constant 0 : i32
    %c0_i32_0 = arith.constant 0 : i32
    %c0_i32_1 = arith.constant 0 : i32
    return %c0_i32, %c0_i32_0 : i32, i32
  }
  func.func @transform_1(%arg0: i32) -> (i32, i32, i32) {
    %c0_i32 = arith.constant 0 : i32
    %c0_i32_0 = arith.constant 0 : i32
    %c0_i32_1 = arith.constant 0 : i32
    %c0_i32_2 = arith.constant 0 : i32
    return %c0_i32, %c0_i32_0, %c0_i32_1 : i32, i32, i32
  }
  func.func @transform_2(%arg0: i32) -> (i32, i32, i32) {
    %c0_i32 = arith.constant 0 : i32
    %c0_i32_0 = arith.constant 0 : i32
    %c0_i32_1 = arith.constant 0 : i32
    %c0_i32_2 = arith.constant 0 : i32
    return %c0_i32, %c0_i32_0, %c0_i32_1 : i32, i32, i32
  }
  func.func @transform_3(%arg0: i32) -> (i32, i32, i32) {
    %c0_i32 = arith.constant 0 : i32
    %c0_i32_0 = arith.constant 0 : i32
    %c0_i32_1 = arith.constant 0 : i32
    %c0_i32_2 = arith.constant 0 : i32
    return %c0_i32, %c0_i32_0, %c0_i32_1 : i32, i32, i32
  }
  func.func @transform_4(%arg0: i32) -> (i32, i32) {
    %c0_i32 = arith.constant 0 : i32
    %c0_i32_0 = arith.constant 0 : i32
    %c0_i32_1 = arith.constant 0 : i32
    return %c0_i32, %c0_i32_0 : i32, i32
  }
  func.func @transform_5(%arg0: i32) -> (i32, i32) {
    %c0_i32 = arith.constant 0 : i32
    %c0_i32_0 = arith.constant 0 : i32
    %c0_i32_1 = arith.constant 0 : i32
    return %c0_i32, %c0_i32_0 : i32, i32
  }
  func.func @transform_6(%arg0: i32) -> (i32, i32) {
    %c0_i32 = arith.constant 0 : i32
    %c0_i32_0 = arith.constant 0 : i32
    %c0_i32_1 = arith.constant 0 : i32
    return %c0_i32, %c0_i32_0 : i32, i32
  }
}

</mosaic_0001>

<bundles_post_ra>
// kernel: encoder_forward.1
= control target key start
LH: loop header
LB: loop body
LE: loop exit
PB: predicated region body
PF: predicated region fallthrough
CT: control target
= control target key end

     0   :  { %vm30_vm0 = vcmask 130048   ;;  %s3382_s0 = inlined_call_operand.vmem [shape: f32[16,16], index: 0, kind: input, shape index: {}]   ;;  %s3383_s1 = inlined_call_operand.vmem [shape: f32[2,16,96], index: 1, kind: input, shape index: {}]   ;;  %s3384_s2 = inlined_call_operand.vmem [shape: f32[2,64,96], index: 2, kind: input, shape index: {}]   ;;  %s3385_s3 = inlined_call_operand.vmem [shape: f32[4,32,96], index: 3, kind: input, shape index: {}]   ;;  %s3386_s4 = inlined_call_operand.vmem [shape: f32[4,96], index: 4, kind: input, shape index: {}]   ;;  %s3387_s5 = inlined_call_operand.vmem [shape: f32[4,96], index: 5, kind: input, shape index: {}]   ;;  %s3388_s6 = inlined_call_operand.hbm [shape: f32[2,128], index: 6, kind: output, shape index: {}]  }
   0x1   :  { %v2690_v0 = vld [vmem:[%s3385_s3 + $0x18] sm:$0xff]  ;;  %v27_v1 = vld [vmem:[%s3383_s1 + $0x8] sm:$0xff]  ;;  %v2698_v2 = vld [vmem:[%s3385_s3 + $0x10] sm:$0xff] }
   0x2   :  { %124 = vmatpush.msra.mxu2 %v2690_v0  ;;  %51 = vmatpush.msra.mxu0 %v27_v1  ;;  %v26_v3 = vld [vmem:[%s3383_s1] sm:$0xff]  ;;  %v2710_v5 = vld [vmem:[%s3385_s3 + $0x8] sm:$0xff]  ;;  %v2715_v6 = vld [vmem:[%s3385_s3 + $0x38] sm:$0xff] }
   0x3   :  { %v24_v4 = vld [vmem:[%s3382_s0] sm:$0xff]  ;;  %v2726_v8 = vld [vmem:[%s3385_s3 + $0x30] sm:$0xff]  ;;  %v2325_v9 = vld [vmem:[%s3383_s1 + $0x18] sm:$0xff]  ;;  %184 = vmatpush.msra.mxu3 %v2715_v6 }
   0x4   :  { %125 = vmatpush.msra.mxu2 %v2698_v2  ;;  %52 = vmatpush.msra.mxu0 %v26_v3  ;;  %v2721_v7 = vld [vmem:[%s3385_s3] sm:$0xff]  ;;  %v2736_v10 = vld [vmem:[%s3385_s3 + $0x28] sm:$0xff]  ;;  %v2324_v11 = vld [vmem:[%s3383_s1 + $0x10] sm:$0xff] }
   0x5   :  { %2322 = vmatmul.msk.f32.vlgmr.msra.gmra.mxu0 %vm30_vm0, %v24_v4  ;;  %v2745_v12 = vld [vmem:[%s3385_s3 + $0x20] sm:$0xff]  ;;  %82 = vmatpush.msra.mxu1 %v2325_v9 }
   0x6   :  { %126 = vmatpush.msra.mxu2 %v2710_v5  ;;  %185 = vmatpush.msra.mxu3 %v2726_v8 }
   0x7   :  { %388 = vmatpush.msrb.mxu0 %v2690_v0  ;;  %83 = vmatpush.msra.mxu1 %v2324_v11 }
   0x8   :  { %127 = vmatpush.msra.mxu2 %v2721_v7 }
   0x9   :  { %11 = vsyncpa [#allocation5], 0  ;;  %v2647_v13 = vmov 0.0   ;;  %186 = vmatpush.msra.mxu3 %v2736_v10  ;;  %2326 = vmatmul.msk.f32.vlgmr.msra.gmra.mxu1 %vm30_vm0, %v24_v4  ;;  %v25_v14 = vld [vmem:[%s3382_s0 + $0x8] sm:$0xff]  ;;  %v2794_v15 = vld [vmem:[%s3386_s4] ss:$0 sm:$0xff] }
   0xa   :  { %128 = vmatmul.f32.vlgmr.msra.gmra.mxu2 %v2647_v13  ;;  %389 = vmatpush.msrb.mxu0 %v2698_v2  ;;  %vm60_vm1 = vcmask 785408   ;;  %v2420_v18 = vld [vmem:[%s3386_s4 + $0x1] ss:$0 sm:$0xff]  ;;  %v2804_v21 = vld [vmem:[%s3387_s5] ss:$0 sm:$0xff]  ;;  %s2648_s29 = smov 64  }
   0xb   :  { %255 = vmatpush.msrb.mxu2 %v2690_v0  ;;  %187 = vmatpush.msra.mxu3 %v2745_v12  ;;  %v2812_v24 = vld [vmem:[%s3387_s5 + $0x1] ss:$0 sm:$0xff]  ;;  %s2649_s8 = smov 96   ;;  %vm237_vm10 = vcmask 517376   ;;  %vm235_vm11 = vcmask 254976   ;;  %vm108_vm12 = vcmask 261120  }
   0xc   :  { %188 = vmatmul.f32.vlgmr.msra.gmra.mxu3 %v2647_v13  ;;  %390 = vmatpush.msrb.mxu0 %v2710_v5  ;;  %s2651_s22 = smov [#allocation4]   ;;  %s2313_s0 = sshll.u32 %s3388_s6, 4  ;;  %s2314_s0 = int_to_ptr.hbm [resolvable:$true] %s2313_s0 }
   0xd   :  { %256 = vmatpush.msrb.mxu2 %v2698_v2  ;;  %319 = vmatpush.msrb.mxu3 %v2715_v6  ;;  %s2311_s1 = sshll.u32 %s2651_s22, 4  ;;  %s2312_s1 = int_to_ptr.vmem [resolvable:$true] %s2311_s1 }
   0xe   :  { %2323 = vmatmul.msk.f32.gmra.mxu0 %vm30_vm0, %v25_v14  ;;  %452 = vmatpush.msrb.mxu1 %v2715_v6 }
   0xf   :  { %257 = vmatpush.msrb.mxu2 %v2710_v5  ;;  %320 = vmatpush.msrb.mxu3 %v2726_v8 }
  0x10   :  { %391 = vmatpush.msrb.mxu0 %v2721_v7  ;;  %453 = vmatpush.msrb.mxu1 %v2726_v8 }
  0x11   :  { %258 = vmatpush.msrb.mxu2 %v2721_v7  ;;  %321 = vmatpush.msrb.mxu3 %v2736_v10 }
  0x12   :  { %2327 = vmatmul.msk.f32.gmra.mxu1 %vm30_vm0, %v25_v14  ;;  %654 = vmatpush.msra.mxu0 %v2690_v0 }
  0x13   :  { %521 = vmatpush.msra.mxu2 %v2690_v0  ;;  %322 = vmatpush.msrb.mxu3 %v2745_v12 }
  0x14   :  { %454 = vmatpush.msrb.mxu1 %v2736_v10  ;;  %655 = vmatpush.msra.mxu0 %v2698_v2 }
  0x15   :  { %522 = vmatpush.msra.mxu2 %v2698_v2  ;;  %585 = vmatpush.msra.mxu3 %v2715_v6 }
  0x16   :  { %455 = vmatpush.msrb.mxu1 %v2745_v12  ;;  %656 = vmatpush.msra.mxu0 %v2710_v5 }
  0x17   :  { %523 = vmatpush.msra.mxu2 %v2710_v5  ;;  %586 = vmatpush.msra.mxu3 %v2726_v8 }
  0x18   :  { %718 = vmatpush.msra.mxu1 %v2715_v6  ;;  %657 = vmatpush.msra.mxu0 %v2721_v7 }
  0x19   :  { %524 = vmatpush.msra.mxu2 %v2721_v7  ;;  %587 = vmatpush.msra.mxu3 %v2736_v10 }
  0x1a   :  { %719 = vmatpush.msra.mxu1 %v2726_v8 }
  0x1b   :  { %588 = vmatpush.msra.mxu3 %v2745_v12 }
  0x1c   :  { %720 = vmatpush.msra.mxu1 %v2736_v10 }
  0x1e   :  { %721 = vmatpush.msra.mxu1 %v2745_v12 }
  0x82   :  { %v54_v16 = vpop.f32.mrf.mxu0 }
  0x83   :  { %v55_v17 = vadd.f32 %v2794_v15, %v54_v16 }
  0x85   :  { %61 = vst.msk [vmem:[#allocation3] sm:$0xff] %vm60_vm1, %v55_v17 }
  0x86   :  { %v85_v19 = vpop.f32.mrf.mxu1 }
  0x87   :  { %v86_v20 = vadd.f32 %v2420_v18, %v85_v19 }
  0x89   :  { %92 = vst.msk [vmem:[#allocation3 + $0x10] sm:$0xff] %vm60_vm1, %v86_v20 }
  0x8c   :  { %v105_v29 = vld [vmem:[#allocation3] sm:$0x3] }
  0x8d   :  { %v129_v22 = vpop.f32.mrf.mxu2 }
  0x8e   :  { %v130_v23 = vadd.f32 %v2804_v21, %v129_v22 }
  0x8f   :  { %v88_v25 = vpop.f32.mrf.mxu1  ;;  %v189_v26 = vpop.f32.mrf.mxu3 }
  0x90   :  { %153 = vrot.lane.b32.xlu0 %v130_v23, %s2648_s29  ;;  %v89_v27 = vadd.f32 %v2420_v18, %v88_v25  ;;  %v190_v28 = vadd.f32 %v2812_v24, %v189_v26  ;;  %v132_v30 = vadd.f32 %v130_v23, %v105_v29 }
  0x92   :  { %93 = vst.msk [vmem:[#allocation3 + $0x18] sm:$0xff] %vm60_vm1, %v89_v27  ;;  %v2332_v31 = vmul.f32 -1.442695, %v132_v30 }
  0x94   :  { %2425 = vpow2.f32 %v2332_v31 }
  0x98   :  { %213 = vrot.lane.b32.xlu0 %v190_v28, %s2648_s29 }
  0x99   :  { %v106_v32 = vld [vmem:[#allocation3 + $0x1e] sm:$0x3] }
  0x9a   :  { %v192_v33 = vadd.f32 %v190_v28, %v106_v32  ;;  %v2426_v35 = vpop.eup %2425 }
  0x9b   :  { %v136_v36 = vadd.f32 1.0, %v2426_v35 }
  0x9c   :  { %v2333_v34 = vmul.f32 -1.442695, %v192_v33  ;;  %v239_v33 = vld [vmem:[#allocation3 + $0x2] sm:$0x3] }
  0x9d   :  { %v148_v47 = vand.u32 2147483648, %v136_v36  ;;  %vm142_vm3 = vweird.f32 %v136_v36  ;;  %v146_v48 = vand.u32 2147483647, %v136_v36 }
  0x9e   :  { %2427 = vpow2.f32 %v2333_v34 }
  0x9f   :  { %2429 = vrcp.f32 %v136_v36  ;;  %v149_v51 = vor.u32 1.1754944e-38, %v148_v47  ;;  %vm147_vm5 = vcmp.eq.f32.partialorder %v146_v48, 8.507059e+37 }
  0xa4   :  { %v2428_v37 = vpop.eup %2427 }
  0xa5   :  { %v196_v38 = vadd.f32 1.0, %v2428_v37  ;;  %v2430_v39 = vpop.eup %2429 }
  0xa6   :  { %v138_v40 = vmul.f32 %v2430_v39, %v136_v36  ;;  %vm143_vm2 = vweird.f32 %v2430_v39 }
  0xa7   :  { %2431 = vrcp.f32 %v196_v38  ;;  %vm144_vm4 = vmor %vm142_vm3, %vm143_vm2  ;;  %vm202_vm6 = vweird.f32 %v196_v38  ;;  %v208_v54 = vand.u32 2147483648, %v196_v38  ;;  %v206_v57 = vand.u32 2147483647, %v196_v38 }
  0xa8   :  { %v139_v41 = vsub.f32 1.0, %v138_v40  ;;  %v240_v40 = vld [vmem:[#allocation3 + $0x1c] sm:$0x3] }
  0xa9   :  { %v209_v58 = vor.u32 1.1754944e-38, %v208_v54  ;;  %vm207_vm9 = vcmp.eq.f32.partialorder %v206_v57, 8.507059e+37 }
  0xaa   :  { %v140_v43 = vmul.f32 %v2430_v39, %v139_v41 }
  0xac   :  { %v141_v45 = vadd.f32 %v2430_v39, %v140_v43 }
  0xad   :  { %v2432_v42 = vpop.eup %2431 }
  0xae   :  { %v198_v44 = vmul.f32 %v2432_v42, %v196_v38  ;;  %v145_v49 = vsel %vm144_vm4, %v2430_v39, %v141_v45  ;;  %vm203_vm7 = vweird.f32 %v2432_v42 }
  0xaf   :  { %v150_v53 = vsel %vm147_vm5, %v149_v51, %v145_v49  ;;  %vm204_vm8 = vmor %vm202_vm6, %vm203_vm7 }
  0xb0   :  { %v199_v46 = vsub.f32 1.0, %v198_v44  ;;  %v163_v14 = vsub.f32 1.0, %v150_v53  ;;  %v169_v17 = vmul.f32 0.0, %v150_v53 }
  0xb2   :  { %v200_v50 = vmul.f32 %v2432_v42, %v199_v46 }
  0xb4   :  { %v201_v56 = vadd.f32 %v2432_v42, %v200_v50 }
  0xb6   :  { %v205_v59 = vsel %vm204_vm8, %v2432_v42, %v201_v56 }
  0xb7   :  { %v210_v61 = vsel %vm207_vm9, %v209_v58, %v205_v59 }
  0xb8   :  { %v223_v20 = vsub.f32 1.0, %v210_v61  ;;  %v229_v23 = vmul.f32 0.0, %v210_v61 }
 0x102   :  { %v154_v52 = vpop.permute.xlu0 %153 }
 0x103   :  { %v156_v55 = vmul.f32 %v154_v52, %v150_v53 }
 0x105   :  { %158 = vrot.lane.b32.xlu1 %v156_v55, %s2648_s29 }
 0x10a   :  { %v214_v60 = vpop.permute.xlu0 %213 }
 0x10b   :  { %v216_v62 = vmul.f32 %v214_v60, %v210_v61 }
 0x10d   :  { %218 = vrot.lane.b32.xlu1 %v216_v62, %s2648_s29 }
 0x177   :  { %v159_v63 = vpop.permute.xlu1 %158 }
 0x178   :  { %v161_v1 = vadd.f32 %v159_v63, %v105_v29 }
 0x17a   :  { %2433 = vtanh.f32 %v161_v1 }
 0x17f   :  { %v219_v3 = vpop.permute.xlu1 %218 }
 0x180   :  { %v2434_v4 = vpop.eup %2433  ;;  %v221_v9 = vadd.f32 %v219_v3, %v106_v32 }
 0x181   :  { %165 = vrot.lane.b32.xlu2 %v2434_v4, %s2649_s8 }
 0x182   :  { %2435 = vtanh.f32 %v221_v9 }
 0x188   :  { %v2436_v11 = vpop.eup %2435 }
 0x189   :  { %225 = vrot.lane.b32.xlu2 %v2436_v11, %s2649_s8 }
 0x1db   :  { %v166_v16 = vpop.permute.xlu2 %165 }
 0x1dc   :  { %v168_v18 = vmul.f32 %v166_v16, %v163_v14 }
 0x1de   :  { %v2821_v19 = vadd.f32 %v169_v17, %v168_v18 }
 0x1e0   :  { %232 = vrot.lane.b32.xlu0 %v2821_v19, %s2649_s8 }
 0x1e3   :  { %v226_v22 = vpop.permute.xlu2 %225 }
 0x1e4   :  { %v228_v25 = vmul.f32 %v226_v22, %v223_v20 }
 0x1e6   :  { %v2825_v26 = vadd.f32 %v229_v23, %v228_v25 }
 0x1e8   :  { %303 = vrot.lane.b32.xlu1 %v2825_v26, %s2649_s8  ;;  %238 = vst.msk [vmem:[#allocation2 + $0xe] sm:$0x3] %vm237_vm10, %v2825_v26 }
 0x252   :  { %v233_v27 = vpop.permute.xlu0 %232 }
 0x253   :  { %236 = vst.msk [vmem:[#allocation2] sm:$0x3] %vm235_vm11, %v233_v27  ;;  %2334 = vmatmul.msk.f32.vlgmr.msrb.gmra.mxu2 %vm108_vm12, %v233_v27 }
 0x254   :  { %787 = vmatpush.msrb.mxu2 %v2690_v0 }
 0x256   :  { %788 = vmatpush.msrb.mxu2 %v2698_v2 }
 0x258   :  { %789 = vmatpush.msrb.mxu2 %v2710_v5 }
 0x25a   :  { %v304_v28 = vpop.permute.xlu1 %303  ;;  %790 = vmatpush.msrb.mxu2 %v2721_v7 }
 0x25b   :  { %2336 = vmatmul.msk.f32.vlgmr.msrb.gmra.mxu3 %vm108_vm12, %v304_v28 }
 0x25c   :  { %851 = vmatpush.msrb.mxu3 %v2715_v6 }
 0x25e   :  { %852 = vmatpush.msrb.mxu3 %v2726_v8 }
 0x260   :  { %853 = vmatpush.msrb.mxu3 %v2736_v10 }
 0x262   :  { %854 = vmatpush.msrb.mxu3 %v2745_v12 }
 0x2d6   :  { %v260_v29 = vpop.f32.mrf.mxu2 }
 0x2d7   :  { %v261_v30 = vadd.f32 %v2804_v21, %v260_v29 }
 0x2d9   :  { %284 = vrot.lane.b32.xlu2 %v261_v30, %s2648_s29  ;;  %v263_v34 = vadd.f32 %v261_v30, %v239_v33 }
 0x2db   :  { %v2335_v35 = vmul.f32 -1.442695, %v263_v34 }
 0x2dd   :  { %2437 = vpow2.f32 %v2335_v35 }
 0x2de   :  { %v324_v31 = vpop.f32.mrf.mxu3 }
 0x2df   :  { %v325_v32 = vadd.f32 %v2812_v24, %v324_v31 }
 0x2e1   :  { %348 = vrot.lane.b32.xlu0 %v325_v32, %s2648_s29  ;;  %v327_v41 = vadd.f32 %v325_v32, %v240_v40 }
 0x2e3   :  { %v2438_v36 = vpop.eup %2437  ;;  %v2337_v43 = vmul.f32 -1.442695, %v327_v41  ;;  %v373_v41 = vld [vmem:[#allocation3 + $0x1a] sm:$0x3] }
 0x2e4   :  { %v267_v37 = vadd.f32 1.0, %v2438_v36 }
 0x2e6   :  { %2439 = vrcp.f32 %v267_v37  ;;  %v279_v46 = vand.u32 2147483648, %v267_v37  ;;  %vm273_vm14 = vweird.f32 %v267_v37  ;;  %v277_v47 = vand.u32 2147483647, %v267_v37 }
 0x2e7   :  { %2441 = vpow2.f32 %v2337_v43 }
 0x2e8   :  { %v280_v50 = vor.u32 1.1754944e-38, %v279_v46  ;;  %vm278_vm0 = vcmp.eq.f32.partialorder %v277_v47, 8.507059e+37 }
 0x2ec   :  { %v2440_v38 = vpop.eup %2439 }
 0x2ed   :  { %v269_v39 = vmul.f32 %v2440_v38, %v267_v37  ;;  %vm274_vm13 = vweird.f32 %v2440_v38  ;;  %v2442_v48 = vpop.eup %2441 }
 0x2ee   :  { %vm275_vm15 = vmor %vm273_vm14, %vm274_vm13  ;;  %v331_v51 = vadd.f32 1.0, %v2442_v48 }
 0x2ef   :  { %v270_v42 = vsub.f32 1.0, %v269_v39 }
 0x2f0   :  { %2443 = vrcp.f32 %v331_v51  ;;  %v343_v60 = vand.u32 2147483648, %v331_v51  ;;  %vm337_vm3 = vweird.f32 %v331_v51  ;;  %v341_v61 = vand.u32 2147483647, %v331_v51 }
 0x2f1   :  { %v271_v44 = vmul.f32 %v2440_v38, %v270_v42 }
 0x2f2   :  { %v344_v63 = vor.u32 1.1754944e-38, %v343_v60  ;;  %vm342_vm5 = vcmp.eq.f32.partialorder %v341_v61, 8.507059e+37 }
 0x2f3   :  { %v272_v45 = vadd.f32 %v2440_v38, %v271_v44 }
 0x2f5   :  { %v276_v49 = vsel %vm275_vm15, %v2440_v38, %v272_v45  ;;  %v372_v38 = vld [vmem:[#allocation3 + $0x4] sm:$0x3] }
 0x2f6   :  { %v281_v52 = vsel %vm278_vm0, %v280_v50, %v276_v49  ;;  %v2444_v55 = vpop.eup %2443 }
 0x2f7   :  { %v333_v56 = vmul.f32 %v2444_v55, %v331_v51  ;;  %vm338_vm2 = vweird.f32 %v2444_v55  ;;  %v294_v20 = vsub.f32 1.0, %v281_v52  ;;  %v300_v23 = vmul.f32 %v281_v52, %v2821_v19 }
 0x2f8   :  { %vm339_vm4 = vmor %vm337_vm3, %vm338_vm2 }
 0x2f9   :  { %v334_v57 = vsub.f32 1.0, %v333_v56 }
 0x2fb   :  { %v335_v58 = vmul.f32 %v2444_v55, %v334_v57 }
 0x2fd   :  { %v336_v59 = vadd.f32 %v2444_v55, %v335_v58 }
 0x2ff   :  { %v340_v62 = vsel %vm339_vm4, %v2444_v55, %v336_v59 }
 0x300   :  { %v345_v3 = vsel %vm342_vm5, %v344_v63, %v340_v62 }
 0x301   :  { %v358_v28 = vsub.f32 1.0, %v345_v3  ;;  %v364_v30 = vmul.f32 %v345_v3, %v2825_v26 }
 0x333   :  { %v285_v53 = vpop.permute.xlu2 %284 }
 0x334   :  { %v287_v54 = vmul.f32 %v285_v53, %v281_v52 }
 0x336   :  { %289 = vrot.lane.b32.xlu1 %v287_v54, %s2648_s29 }
 0x353   :  { %v349_v1 = vpop.permute.xlu0 %348 }
 0x354   :  { %v351_v4 = vmul.f32 %v349_v1, %v345_v3 }
 0x356   :  { %353 = vrot.lane.b32.xlu2 %v351_v4, %s2648_s29 }
 0x3a8   :  { %v290_v9 = vpop.permute.xlu1 %289 }
 0x3a9   :  { %v292_v11 = vadd.f32 %v290_v9, %v239_v33  ;;  %v57_v33 = vpop.f32.mrf.mxu0 }
 0x3aa   :  { %v58_v34 = vadd.f32 %v2794_v15, %v57_v33 }
 0x3ab   :  { %2445 = vtanh.f32 %v292_v11 }
 0x3ac   :  { %62 = vst.msk [vmem:[#allocation3 + $0x8] sm:$0xff] %vm60_vm1, %v58_v34 }
 0x3b0   :  { %v354_v14 = vpop.permute.xlu2 %353 }
 0x3b1   :  { %v2446_v16 = vpop.eup %2445  ;;  %v356_v17 = vadd.f32 %v354_v14, %v240_v40 }
 0x3b2   :  { %296 = vrot.lane.b32.xlu0 %v2446_v16, %s2649_s8 }
 0x3b3   :  { %2447 = vtanh.f32 %v356_v17 }
 0x3b9   :  { %v2448_v18 = vpop.eup %2447 }
 0x3ba   :  { %360 = vrot.lane.b32.xlu1 %v2448_v18, %s2649_s8 }
 0x424   :  { %v297_v22 = vpop.permute.xlu0 %296 }
 0x425   :  { %v299_v25 = vmul.f32 %v297_v22, %v294_v20 }
 0x427   :  { %v2851_v27 = vadd.f32 %v300_v23, %v299_v25 }
 0x429   :  { %367 = vrot.lane.b32.xlu2 %v2851_v27, %s2649_s8 }
 0x42c   :  { %v361_v29 = vpop.permute.xlu1 %360 }
 0x42d   :  { %v363_v31 = vmul.f32 %v361_v29, %v358_v28 }
 0x42f   :  { %v2856_v32 = vadd.f32 %v364_v30, %v363_v31 }
 0x431   :  { %436 = vrot.lane.b32.xlu0 %v2856_v32, %s2649_s8  ;;  %371 = vst.msk [vmem:[#allocation2 + $0xc] sm:$0x3] %vm237_vm10, %v2856_v32 }
 0x483   :  { %v368_v19 = vpop.permute.xlu2 %367 }
 0x484   :  { %370 = vst.msk [vmem:[#allocation2 + $0x2] sm:$0x3] %vm235_vm11, %v368_v19  ;;  %2338 = vmatmul.msk.f32.vlgmr.msrb.gmra.mxu0 %vm108_vm12, %v368_v19 }
 0x485   :  { %920 = vmatpush.msrb.mxu0 %v2690_v0 }
 0x487   :  { %921 = vmatpush.msrb.mxu0 %v2698_v2 }
 0x489   :  { %922 = vmatpush.msrb.mxu0 %v2710_v5 }
 0x48b   :  { %923 = vmatpush.msrb.mxu0 %v2721_v7 }
 0x4a3   :  { %v437_v26 = vpop.permute.xlu0 %436 }
 0x4a4   :  { %2340 = vmatmul.msk.f32.vlgmr.msrb.gmra.mxu1 %vm108_vm12, %v437_v26 }
 0x4a5   :  { %984 = vmatpush.msrb.mxu1 %v2715_v6 }
 0x4a7   :  { %985 = vmatpush.msrb.mxu1 %v2726_v8 }
 0x4a9   :  { %986 = vmatpush.msrb.mxu1 %v2736_v10 }
 0x4ab   :  { %987 = vmatpush.msrb.mxu1 %v2745_v12 }
 0x501   :  { %v393_v15 = vpop.f32.mrf.mxu0 }
 0x502   :  { %v394_v35 = vadd.f32 %v2804_v21, %v393_v15 }
 0x504   :  { %417 = vrot.lane.b32.xlu1 %v394_v35, %s2648_s29  ;;  %v396_v39 = vadd.f32 %v394_v35, %v372_v38 }
 0x506   :  { %v2339_v40 = vmul.f32 -1.442695, %v396_v39 }
 0x508   :  { %2449 = vpow2.f32 %v2339_v40 }
 0x50e   :  { %v2450_v44 = vpop.eup %2449 }
 0x50f   :  { %v400_v45 = vadd.f32 1.0, %v2450_v44 }
 0x511   :  { %v412_v56 = vand.u32 2147483648, %v400_v45  ;;  %vm406_vm7 = vweird.f32 %v400_v45  ;;  %v410_v57 = vand.u32 2147483647, %v400_v45 }
 0x513   :  { %v413_v60 = vor.u32 1.1754944e-38, %v412_v56  ;;  %vm411_vm9 = vcmp.eq.f32.partialorder %v410_v57, 8.507059e+37 }
 0x521   :  { %v457_v36 = vpop.f32.mrf.mxu1 }
 0x522   :  { %v458_v37 = vadd.f32 %v2812_v24, %v457_v36 }
 0x524   :  { %481 = vrot.lane.b32.xlu2 %v458_v37, %s2648_s29  ;;  %v460_v42 = vadd.f32 %v458_v37, %v373_v41 }
 0x526   :  { %v2341_v43 = vmul.f32 -1.442695, %v460_v42 }
 0x528   :  { %2451 = vpow2.f32 %v2341_v43 }
 0x529   :  { %2453 = vrcp.f32 %v400_v45 }
 0x52e   :  { %v2452_v46 = vpop.eup %2451 }
 0x52f   :  { %v464_v47 = vadd.f32 1.0, %v2452_v46  ;;  %v2454_v48 = vpop.eup %2453 }
 0x530   :  { %v402_v49 = vmul.f32 %v2454_v48, %v400_v45  ;;  %vm407_vm6 = vweird.f32 %v2454_v48 }
 0x531   :  { %2455 = vrcp.f32 %v464_v47  ;;  %vm408_vm8 = vmor %vm406_vm7, %vm407_vm6  ;;  %v476_v3 = vand.u32 2147483648, %v464_v47  ;;  %vm470_vm14 = vweird.f32 %v464_v47  ;;  %v474_v4 = vand.u32 2147483647, %v464_v47 }
 0x532   :  { %v403_v50 = vsub.f32 1.0, %v402_v49 }
 0x533   :  { %v477_v11 = vor.u32 1.1754944e-38, %v476_v3  ;;  %vm475_vm0 = vcmp.eq.f32.partialorder %v474_v4, 8.507059e+37 }
 0x534   :  { %v404_v52 = vmul.f32 %v2454_v48, %v403_v50 }
 0x536   :  { %v405_v54 = vadd.f32 %v2454_v48, %v404_v52 }
 0x537   :  { %v2456_v51 = vpop.eup %2455 }
 0x538   :  { %v466_v53 = vmul.f32 %v2456_v51, %v464_v47  ;;  %v409_v58 = vsel %vm408_vm8, %v2454_v48, %v405_v54  ;;  %vm471_vm13 = vweird.f32 %v2456_v51 }
 0x539   :  { %v414_v62 = vsel %vm411_vm9, %v413_v60, %v409_v58  ;;  %vm472_vm15 = vmor %vm470_vm14, %vm471_vm13 }
 0x53a   :  { %v467_v55 = vsub.f32 1.0, %v466_v53  ;;  %v427_v29 = vsub.f32 1.0, %v414_v62  ;;  %v433_v31 = vmul.f32 %v414_v62, %v2851_v27 }
 0x53c   :  { %v468_v59 = vmul.f32 %v2456_v51, %v467_v55 }
 0x53e   :  { %v469_v1 = vadd.f32 %v2456_v51, %v468_v59 }
 0x540   :  { %v473_v9 = vsel %vm472_vm15, %v2456_v51, %v469_v1 }
 0x541   :  { %v478_v14 = vsel %vm475_vm0, %v477_v11, %v473_v9 }
 0x542   :  { %v491_v34 = vsub.f32 1.0, %v478_v14  ;;  %v497_v15 = vmul.f32 %v478_v14, %v2856_v32 }
 0x576   :  { %v418_v61 = vpop.permute.xlu1 %417 }
 0x577   :  { %v420_v63 = vmul.f32 %v418_v61, %v414_v62 }
 0x579   :  { %422 = vrot.lane.b32.xlu0 %v420_v63, %s2648_s29 }
 0x57e   :  { %v482_v16 = vpop.permute.xlu2 %481 }
 0x57f   :  { %v484_v17 = vmul.f32 %v482_v16, %v478_v14 }
 0x581   :  { %486 = vrot.lane.b32.xlu1 %v484_v17, %s2648_s29 }
 0x5eb   :  { %v423_v18 = vpop.permute.xlu0 %422 }
 0x5ec   :  { %v425_v20 = vadd.f32 %v423_v18, %v372_v38 }
 0x5ee   :  { %2457 = vtanh.f32 %v425_v20 }
 0x5f3   :  { %v487_v22 = vpop.permute.xlu1 %486 }
 0x5f4   :  { %v2458_v23 = vpop.eup %2457  ;;  %v489_v25 = vadd.f32 %v487_v22, %v373_v41 }
 0x5f5   :  { %429 = vrot.lane.b32.xlu2 %v2458_v23, %s2649_s8 }
 0x5f6   :  { %2459 = vtanh.f32 %v489_v25 }
 0x5fc   :  { %v2460_v28 = vpop.eup %2459 }
 0x5fd   :  { %493 = vrot.lane.b32.xlu0 %v2460_v28, %s2649_s8 }
 0x64f   :  { %v430_v30 = vpop.permute.xlu2 %429 }
 0x650   :  { %v432_v19 = vmul.f32 %v430_v30, %v427_v29 }
 0x652   :  { %v2884_v33 = vadd.f32 %v433_v31, %v432_v19 }
 0x654   :  { %500 = vrot.lane.b32.xlu1 %v2884_v33, %s2649_s8 }
 0x66f   :  { %v494_v26 = vpop.permute.xlu0 %493 }
 0x670   :  { %v496_v35 = vmul.f32 %v494_v26, %v491_v34 }
 0x672   :  { %v2889_v36 = vadd.f32 %v497_v15, %v496_v35 }
 0x674   :  { %569 = vrot.lane.b32.xlu2 %v2889_v36, %s2649_s8  ;;  %504 = vst.msk [vmem:[#allocation2 + $0xa] sm:$0x3] %vm237_vm10, %v2889_v36 }
 0x6c6   :  { %v501_v27 = vpop.permute.xlu1 %500 }
 0x6c7   :  { %503 = vst.msk [vmem:[#allocation2 + $0x4] sm:$0x3] %vm235_vm11, %v501_v27  ;;  %2342 = vmatmul.msk.f32.vlgmr.msra.gmra.mxu2 %vm108_vm12, %v501_v27 }
 0x6c8   :  { %1053 = vmatpush.msra.mxu2 %v2690_v0 }
 0x6ca   :  { %1054 = vmatpush.msra.mxu2 %v2698_v2 }
 0x6cc   :  { %1055 = vmatpush.msra.mxu2 %v2710_v5 }
 0x6ce   :  { %v570_v32 = vpop.permute.xlu2 %569  ;;  %1056 = vmatpush.msra.mxu2 %v2721_v7  ;;  %v505_v7 = vld [vmem:[#allocation3 + $0x6] sm:$0x3] }
 0x6cf   :  { %2344 = vmatmul.msk.f32.vlgmr.msra.gmra.mxu3 %vm108_vm12, %v570_v32  ;;  %v638_v32 = vld [vmem:[#allocation3 + $0x8] sm:$0x3] }
 0x6d0   :  { %1117 = vmatpush.msra.mxu3 %v2715_v6  ;;  %v506_v6 = vld [vmem:[#allocation3 + $0x18] sm:$0x3] }
 0x6d2   :  { %1118 = vmatpush.msra.mxu3 %v2726_v8 }
 0x6d4   :  { %1119 = vmatpush.msra.mxu3 %v2736_v10 }
 0x6d6   :  { %1120 = vmatpush.msra.mxu3 %v2745_v12 }
 0x74a   :  { %v526_v37 = vpop.f32.mrf.mxu2 }
 0x74b   :  { %v527_v0 = vadd.f32 %v2804_v21, %v526_v37 }
 0x74d   :  { %550 = vrot.lane.b32.xlu0 %v527_v0, %s2648_s29  ;;  %v529_v38 = vadd.f32 %v527_v0, %v505_v7 }
 0x74f   :  { %v2343_v39 = vmul.f32 -1.442695, %v529_v38 }
 0x751   :  { %2461 = vpow2.f32 %v2343_v39  ;;  %v639_v39 = vld [vmem:[#allocation3 + $0x16] sm:$0x3] }
 0x752   :  { %v590_v2 = vpop.f32.mrf.mxu3 }
 0x753   :  { %v591_v5 = vadd.f32 %v2812_v24, %v590_v2 }
 0x755   :  { %614 = vrot.lane.b32.xlu1 %v591_v5, %s2648_s29  ;;  %v593_v8 = vadd.f32 %v591_v5, %v506_v6 }
 0x757   :  { %v2345_v40 = vmul.f32 -1.442695, %v593_v8  ;;  %v2462_v10 = vpop.eup %2461 }
 0x758   :  { %v533_v12 = vadd.f32 1.0, %v2462_v10 }
 0x759   :  { %2463 = vpow2.f32 %v2345_v40 }
 0x75a   :  { %2465 = vrcp.f32 %v533_v12  ;;  %v545_v51 = vand.u32 2147483648, %v533_v12  ;;  %vm539_vm3 = vweird.f32 %v533_v12  ;;  %v543_v52 = vand.u32 2147483647, %v533_v12 }
 0x75c   :  { %v546_v55 = vor.u32 1.1754944e-38, %v545_v51  ;;  %vm544_vm5 = vcmp.eq.f32.partialorder %v543_v52, 8.507059e+37 }
 0x75f   :  { %v2464_v41 = vpop.eup %2463 }
 0x760   :  { %v597_v42 = vadd.f32 1.0, %v2464_v41  ;;  %v2466_v43 = vpop.eup %2465 }
 0x761   :  { %v535_v44 = vmul.f32 %v2466_v43, %v533_v12  ;;  %vm540_vm2 = vweird.f32 %v2466_v43 }
 0x762   :  { %2467 = vrcp.f32 %v597_v42  ;;  %vm541_vm4 = vmor %vm539_vm3, %vm540_vm2  ;;  %v609_v60 = vand.u32 2147483648, %v597_v42  ;;  %vm603_vm7 = vweird.f32 %v597_v42  ;;  %v607_v61 = vand.u32 2147483647, %v597_v42 }
 0x763   :  { %v536_v45 = vsub.f32 1.0, %v535_v44 }
 0x764   :  { %v610_v63 = vor.u32 1.1754944e-38, %v609_v60  ;;  %vm608_vm9 = vcmp.eq.f32.partialorder %v607_v61, 8.507059e+37 }
 0x765   :  { %v537_v47 = vmul.f32 %v2466_v43, %v536_v45 }
 0x767   :  { %v538_v49 = vadd.f32 %v2466_v43, %v537_v47 }
 0x768   :  { %v2468_v46 = vpop.eup %2467 }
 0x769   :  { %v599_v48 = vmul.f32 %v2468_v46, %v597_v42  ;;  %v542_v53 = vsel %vm541_vm4, %v2466_v43, %v538_v49  ;;  %vm604_vm6 = vweird.f32 %v2468_v46 }
 0x76a   :  { %v547_v57 = vsel %vm544_vm5, %v546_v55, %v542_v53  ;;  %vm605_vm8 = vmor %vm603_vm7, %vm604_vm6 }
 0x76b   :  { %v600_v50 = vsub.f32 1.0, %v599_v48  ;;  %v560_v20 = vsub.f32 1.0, %v547_v57  ;;  %v566_v23 = vmul.f32 %v547_v57, %v2884_v33 }
 0x76d   :  { %v601_v54 = vmul.f32 %v2468_v46, %v600_v50 }
 0x76f   :  { %v602_v59 = vadd.f32 %v2468_v46, %v601_v54 }
 0x771   :  { %v606_v62 = vsel %vm605_vm8, %v2468_v46, %v602_v59 }
 0x772   :  { %v611_v3 = vsel %vm608_vm9, %v610_v63, %v606_v62 }
 0x773   :  { %v624_v29 = vsub.f32 1.0, %v611_v3  ;;  %v630_v31 = vmul.f32 %v611_v3, %v2889_v36 }
 0x7bf   :  { %v551_v56 = vpop.permute.xlu0 %550 }
 0x7c0   :  { %v553_v58 = vmul.f32 %v551_v56, %v547_v57 }
 0x7c2   :  { %555 = vrot.lane.b32.xlu2 %v553_v58, %s2648_s29 }
 0x7c7   :  { %v615_v1 = vpop.permute.xlu1 %614 }
 0x7c8   :  { %v617_v4 = vmul.f32 %v615_v1, %v611_v3 }
 0x7ca   :  { %619 = vrot.lane.b32.xlu0 %v617_v4, %s2648_s29 }
 0x81c   :  { %v556_v9 = vpop.permute.xlu2 %555 }
 0x81d   :  { %v558_v11 = vadd.f32 %v556_v9, %v505_v7 }
 0x81f   :  { %2469 = vtanh.f32 %v558_v11 }
 0x825   :  { %v2470_v14 = vpop.eup %2469 }
 0x826   :  { %562 = vrot.lane.b32.xlu1 %v2470_v14, %s2649_s8 }
 0x83c   :  { %v620_v16 = vpop.permute.xlu0 %619 }
 0x83d   :  { %v622_v17 = vadd.f32 %v620_v16, %v506_v6 }
 0x83f   :  { %2471 = vtanh.f32 %v622_v17 }
 0x845   :  { %v2472_v18 = vpop.eup %2471 }
 0x846   :  { %626 = vrot.lane.b32.xlu2 %v2472_v18, %s2649_s8 }
 0x898   :  { %v563_v22 = vpop.permute.xlu1 %562 }
 0x899   :  { %v565_v25 = vmul.f32 %v563_v22, %v560_v20 }
 0x89b   :  { %v2915_v28 = vadd.f32 %v566_v23, %v565_v25 }
 0x89d   :  { %633 = vrot.lane.b32.xlu0 %v2915_v28, %s2649_s8 }
 0x8a0   :  { %v627_v30 = vpop.permute.xlu2 %626 }
 0x8a1   :  { %v629_v19 = vmul.f32 %v627_v30, %v624_v29 }
 0x8a3   :  { %v2920_v34 = vadd.f32 %v630_v31, %v629_v19 }
 0x8a5   :  { %702 = vrot.lane.b32.xlu1 %v2920_v34, %s2649_s8  ;;  %637 = vst.msk [vmem:[#allocation2 + $0x8] sm:$0x3] %vm237_vm10, %v2920_v34 }
 0x90f   :  { %v634_v33 = vpop.permute.xlu0 %633 }
 0x910   :  { %636 = vst.msk [vmem:[#allocation2 + $0x6] sm:$0x3] %vm235_vm11, %v634_v33  ;;  %2346 = vmatmul.msk.f32.vlgmr.msra.gmra.mxu0 %vm108_vm12, %v634_v33 }
 0x917   :  { %v703_v26 = vpop.permute.xlu1 %702 }
 0x918   :  { %2348 = vmatmul.msk.f32.vlgmr.msra.gmra.mxu1 %vm108_vm12, %v703_v26  ;;  %v771_v26 = vld [vmem:[#allocation3 + $0xa] sm:$0x3] }
 0x98d   :  { %v659_v15 = vpop.f32.mrf.mxu0 }
 0x98e   :  { %v660_v35 = vadd.f32 %v2804_v21, %v659_v15 }
 0x990   :  { %683 = vrot.lane.b32.xlu2 %v660_v35, %s2648_s29  ;;  %v662_v37 = vadd.f32 %v660_v35, %v638_v32 }
 0x992   :  { %v2347_v0 = vmul.f32 -1.442695, %v662_v37 }
 0x994   :  { %2473 = vpow2.f32 %v2347_v0 }
 0x995   :  { %v723_v36 = vpop.f32.mrf.mxu1 }
 0x996   :  { %v724_v27 = vadd.f32 %v2812_v24, %v723_v36  ;;  %v772_v36 = vld [vmem:[#allocation3 + $0x14] sm:$0x3] }
 0x998   :  { %747 = vrot.lane.b32.xlu0 %v724_v27, %s2648_s29  ;;  %v726_v6 = vadd.f32 %v724_v27, %v639_v39 }
 0x99a   :  { %v2474_v2 = vpop.eup %2473  ;;  %v2349_v40 = vmul.f32 -1.442695, %v726_v6 }
 0x99b   :  { %v666_v5 = vadd.f32 1.0, %v2474_v2 }
 0x99d   :  { %2475 = vrcp.f32 %v666_v5  ;;  %v678_v41 = vand.u32 2147483648, %v666_v5  ;;  %vm672_vm14 = vweird.f32 %v666_v5  ;;  %v676_v42 = vand.u32 2147483647, %v666_v5 }
 0x99e   :  { %2477 = vpow2.f32 %v2349_v40 }
 0x99f   :  { %v679_v45 = vor.u32 1.1754944e-38, %v678_v41  ;;  %vm677_vm0 = vcmp.eq.f32.partialorder %v676_v42, 8.507059e+37 }
 0x9a3   :  { %v2476_v7 = vpop.eup %2475 }
 0x9a4   :  { %v668_v38 = vmul.f32 %v2476_v7, %v666_v5  ;;  %vm673_vm13 = vweird.f32 %v2476_v7  ;;  %v2478_v43 = vpop.eup %2477 }
 0x9a5   :  { %vm674_vm15 = vmor %vm672_vm14, %vm673_vm13  ;;  %v730_v46 = vadd.f32 1.0, %v2478_v43 }
 0x9a6   :  { %v669_v8 = vsub.f32 1.0, %v668_v38 }
 0x9a7   :  { %2479 = vrcp.f32 %v730_v46  ;;  %v742_v55 = vand.u32 2147483648, %v730_v46  ;;  %vm736_vm3 = vweird.f32 %v730_v46  ;;  %v740_v56 = vand.u32 2147483647, %v730_v46 }
 0x9a8   :  { %v670_v10 = vmul.f32 %v2476_v7, %v669_v8 }
 0x9a9   :  { %v743_v58 = vor.u32 1.1754944e-38, %v742_v55  ;;  %vm741_vm5 = vcmp.eq.f32.partialorder %v740_v56, 8.507059e+37 }
 0x9aa   :  { %v671_v12 = vadd.f32 %v2476_v7, %v670_v10 }
 0x9ac   :  { %v675_v44 = vsel %vm674_vm15, %v2476_v7, %v671_v12 }
 0x9ad   :  { %v680_v47 = vsel %vm677_vm0, %v679_v45, %v675_v44  ;;  %v2480_v50 = vpop.eup %2479 }
 0x9ae   :  { %v732_v51 = vmul.f32 %v2480_v50, %v730_v46  ;;  %vm737_vm2 = vweird.f32 %v2480_v50  ;;  %v693_v11 = vsub.f32 1.0, %v680_v47  ;;  %v699_v16 = vmul.f32 %v680_v47, %v2915_v28 }
 0x9af   :  { %vm738_vm4 = vmor %vm736_vm3, %vm737_vm2 }
 0x9b0   :  { %v733_v52 = vsub.f32 1.0, %v732_v51 }
 0x9b2   :  { %v734_v53 = vmul.f32 %v2480_v50, %v733_v52 }
 0x9b4   :  { %v735_v54 = vadd.f32 %v2480_v50, %v734_v53 }
 0x9b6   :  { %v739_v57 = vsel %vm738_vm4, %v2480_v50, %v735_v54 }
 0x9b7   :  { %v744_v60 = vsel %vm741_vm5, %v743_v58, %v739_v57 }
 0x9b8   :  { %v757_v20 = vsub.f32 1.0, %v744_v60  ;;  %v763_v23 = vmul.f32 %v744_v60, %v2920_v34 }
 0x9ea   :  { %v684_v48 = vpop.permute.xlu2 %683 }
 0x9eb   :  { %v686_v49 = vmul.f32 %v684_v48, %v680_v47 }
 0x9ed   :  { %688 = vrot.lane.b32.xlu1 %v686_v49, %s2648_s29 }
 0xa0a   :  { %v748_v59 = vpop.permute.xlu0 %747 }
 0xa0b   :  { %v750_v61 = vmul.f32 %v748_v59, %v744_v60 }
 0xa0d   :  { %752 = vrot.lane.b32.xlu2 %v750_v61, %s2648_s29 }
 0xa5f   :  { %v689_v62 = vpop.permute.xlu1 %688 }
 0xa60   :  { %v691_v63 = vadd.f32 %v689_v62, %v638_v32 }
 0xa62   :  { %2481 = vtanh.f32 %v691_v63 }
 0xa67   :  { %v753_v1 = vpop.permute.xlu2 %752 }
 0xa68   :  { %v2482_v3 = vpop.eup %2481  ;;  %v755_v4 = vadd.f32 %v753_v1, %v639_v39 }
 0xa69   :  { %695 = vrot.lane.b32.xlu0 %v2482_v3, %s2649_s8 }
 0xa6a   :  { %2483 = vtanh.f32 %v755_v4 }
 0xa70   :  { %v2484_v9 = vpop.eup %2483 }
 0xa71   :  { %759 = vrot.lane.b32.xlu1 %v2484_v9, %s2649_s8 }
 0xadb   :  { %v696_v14 = vpop.permute.xlu0 %695 }
 0xadc   :  { %v698_v17 = vmul.f32 %v696_v14, %v693_v11 }
 0xade   :  { %v2938_v18 = vadd.f32 %v699_v16, %v698_v17 }
 0xae0   :  { %766 = vrot.lane.b32.xlu2 %v2938_v18, %s2649_s8 }
 0xae3   :  { %v760_v22 = vpop.permute.xlu1 %759 }
 0xae4   :  { %v762_v25 = vmul.f32 %v760_v22, %v757_v20  ;;  %v2978_v22 = vld [vmem:[%s3387_s5] ss:$0 sm:$0xff] }
 0xae6   :  { %v2943_v29 = vadd.f32 %v763_v23, %v762_v25 }
 0xae8   :  { %770 = vst.msk [vmem:[#allocation2 + $0x6] sm:$0x3] %vm237_vm10, %v2943_v29  ;;  %835 = vrot.lane.b32.xlu0 %v2943_v29, %s2649_s8 }
 0xb3a   :  { %v767_v28 = vpop.permute.xlu2 %766 }
 0xb3b   :  { %769 = vst.msk [vmem:[#allocation2 + $0x8] sm:$0x3] %vm235_vm11, %v767_v28  ;;  %2350 = vmatmul.msk.f32.vlgmr.msrb.gmra.mxu2 %vm108_vm12, %v767_v28 }
 0xb5a   :  { %v836_v30 = vpop.permute.xlu0 %835 }
 0xb5b   :  { %2352 = vmatmul.msk.f32.vlgmr.msrb.gmra.mxu3 %vm108_vm12, %v836_v30  ;;  %v904_v30 = vld [vmem:[#allocation3 + $0xc] sm:$0x3] }
 0xbbe   :  { %v792_v31 = vpop.f32.mrf.mxu2 }
 0xbbf   :  { %v793_v19 = vadd.f32 %v2804_v21, %v792_v31 }
 0xbc1   :  { %816 = vrot.lane.b32.xlu1 %v793_v19, %s2648_s29  ;;  %v795_v15 = vadd.f32 %v793_v19, %v771_v26 }
 0xbc3   :  { %v2351_v35 = vmul.f32 -1.442695, %v795_v15 }
 0xbc5   :  { %2485 = vpow2.f32 %v2351_v35 }
 0xbcb   :  { %v2486_v37 = vpop.eup %2485 }
 0xbcc   :  { %v799_v0 = vadd.f32 1.0, %v2486_v37 }
 0xbce   :  { %v811_v10 = vand.u32 2147483648, %v799_v0  ;;  %vm805_vm7 = vweird.f32 %v799_v0  ;;  %v809_v12 = vand.u32 2147483647, %v799_v0 }
 0xbd0   :  { %v812_v43 = vor.u32 1.1754944e-38, %v811_v10  ;;  %vm810_vm9 = vcmp.eq.f32.partialorder %v809_v12, 8.507059e+37 }
 0xbde   :  { %v856_v34 = vpop.f32.mrf.mxu3 }
 0xbdf   :  { %v857_v33 = vadd.f32 %v2812_v24, %v856_v34  ;;  %v905_v34 = vld [vmem:[#allocation3 + $0x12] sm:$0x3] }
 0xbe1   :  { %880 = vrot.lane.b32.xlu2 %v857_v33, %s2648_s29  ;;  %v859_v27 = vadd.f32 %v857_v33, %v772_v36 }
 0xbe3   :  { %v2353_v32 = vmul.f32 -1.442695, %v859_v27 }
 0xbe5   :  { %2487 = vpow2.f32 %v2353_v32 }
 0xbe6   :  { %2489 = vrcp.f32 %v799_v0 }
 0xbeb   :  { %v2488_v2 = vpop.eup %2487 }
 0xbec   :  { %v863_v21 = vadd.f32 1.0, %v2488_v2  ;;  %v2490_v5 = vpop.eup %2489 }
 0xbed   :  { %v801_v7 = vmul.f32 %v2490_v5, %v799_v0  ;;  %vm806_vm6 = vweird.f32 %v2490_v5 }
 0xbee   :  { %2491 = vrcp.f32 %v863_v21  ;;  %vm807_vm8 = vmor %vm805_vm7, %vm806_vm6  ;;  %v875_v48 = vand.u32 2147483648, %v863_v21  ;;  %vm869_vm14 = vweird.f32 %v863_v21  ;;  %v873_v49 = vand.u32 2147483647, %v863_v21 }
 0xbef   :  { %v802_v38 = vsub.f32 1.0, %v801_v7 }
 0xbf0   :  { %v876_v51 = vor.u32 1.1754944e-38, %v875_v48  ;;  %vm874_vm0 = vcmp.eq.f32.partialorder %v873_v49, 8.507059e+37 }
 0xbf1   :  { %v803_v39 = vmul.f32 %v2490_v5, %v802_v38 }
 0xbf3   :  { %v804_v8 = vadd.f32 %v2490_v5, %v803_v39 }
 0xbf4   :  { %v2492_v24 = vpop.eup %2491 }
 0xbf5   :  { %v865_v6 = vmul.f32 %v2492_v24, %v863_v21  ;;  %v808_v41 = vsel %vm807_vm8, %v2490_v5, %v804_v8  ;;  %vm870_vm13 = vweird.f32 %v2492_v24 }
 0xbf6   :  { %v813_v45 = vsel %vm810_vm9, %v812_v43, %v808_v41  ;;  %vm871_vm15 = vmor %vm869_vm14, %vm870_vm13 }
 0xbf7   :  { %v866_v40 = vsub.f32 1.0, %v865_v6  ;;  %v826_v61 = vsub.f32 1.0, %v813_v45  ;;  %v832_v63 = vmul.f32 %v813_v45, %v2938_v18 }
 0xbf9   :  { %v867_v42 = vmul.f32 %v2492_v24, %v866_v40 }
 0xbfb   :  { %v868_v47 = vadd.f32 %v2492_v24, %v867_v42 }
 0xbfd   :  { %v872_v50 = vsel %vm871_vm15, %v2492_v24, %v868_v47 }
 0xbfe   :  { %v877_v52 = vsel %vm874_vm0, %v876_v51, %v872_v50 }
 0xbff   :  { %v890_v4 = vsub.f32 1.0, %v877_v52  ;;  %v896_v11 = vmul.f32 %v877_v52, %v2943_v29  ;;  %v2985_v29 = vld [vmem:[%s3387_s5 + $0x1] ss:$0 sm:$0xff] }
 0xc33   :  { %v817_v44 = vpop.permute.xlu1 %816 }
 0xc34   :  { %v819_v46 = vmul.f32 %v817_v44, %v813_v45 }
 0xc36   :  { %821 = vrot.lane.b32.xlu0 %v819_v46, %s2648_s29 }
 0xc3b   :  { %v881_v53 = vpop.permute.xlu2 %880 }
 0xc3c   :  { %v883_v54 = vmul.f32 %v881_v53, %v877_v52 }
 0xc3e   :  { %885 = vrot.lane.b32.xlu1 %v883_v54, %s2648_s29 }
 0xca8   :  { %v822_v55 = vpop.permute.xlu0 %821 }
 0xca9   :  { %v824_v56 = vadd.f32 %v822_v55, %v771_v26 }
 0xcab   :  { %2493 = vtanh.f32 %v824_v56 }
 0xcb0   :  { %v886_v57 = vpop.permute.xlu1 %885 }
 0xcb1   :  { %v2494_v58 = vpop.eup %2493  ;;  %v888_v59 = vadd.f32 %v886_v57, %v772_v36 }
 0xcb2   :  { %828 = vrot.lane.b32.xlu2 %v2494_v58, %s2649_s8 }
 0xcb3   :  { %2495 = vtanh.f32 %v888_v59 }
 0xcb9   :  { %v2496_v60 = vpop.eup %2495 }
 0xcba   :  { %892 = vrot.lane.b32.xlu0 %v2496_v60, %s2649_s8 }
 0xd0c   :  { %v829_v62 = vpop.permute.xlu2 %828 }
 0xd0d   :  { %v831_v1 = vmul.f32 %v829_v62, %v826_v61 }
 0xd0f   :  { %v2961_v3 = vadd.f32 %v832_v63, %v831_v1 }
 0xd11   :  { %899 = vrot.lane.b32.xlu1 %v2961_v3, %s2649_s8 }
 0xd2c   :  { %v893_v9 = vpop.permute.xlu0 %892 }
 0xd2d   :  { %v895_v14 = vmul.f32 %v893_v9, %v890_v4 }
 0xd2f   :  { %v2966_v16 = vadd.f32 %v896_v11, %v895_v14 }
 0xd31   :  { %903 = vst.msk [vmem:[#allocation2 + $0x4] sm:$0x3] %vm237_vm10, %v2966_v16  ;;  %968 = vrot.lane.b32.xlu2 %v2966_v16, %s2649_s8 }
 0xd83   :  { %v900_v17 = vpop.permute.xlu1 %899 }
 0xd84   :  { %902 = vst.msk [vmem:[#allocation2 + $0xa] sm:$0x3] %vm235_vm11, %v900_v17  ;;  %2354 = vmatmul.msk.f32.vlgmr.msrb.gmra.mxu0 %vm108_vm12, %v900_v17 }
 0xd8b   :  { %v969_v18 = vpop.permute.xlu2 %968 }
 0xd8c   :  { %2356 = vmatmul.msk.f32.vlgmr.msrb.gmra.mxu1 %vm108_vm12, %v969_v18  ;;  %v1037_v18 = vld [vmem:[#allocation3 + $0xe] sm:$0x3] }
 0xe01   :  { %v925_v20 = vpop.f32.mrf.mxu0 }
 0xe02   :  { %v926_v23 = vadd.f32 %v2978_v22, %v925_v20 }
 0xe04   :  { %949 = vrot.lane.b32.xlu0 %v926_v23, %s2648_s29  ;;  %v928_v31 = vadd.f32 %v926_v23, %v904_v30 }
 0xe06   :  { %v2355_v19 = vmul.f32 -1.442695, %v928_v31 }
 0xe08   :  { %2497 = vpow2.f32 %v2355_v19  ;;  %v1038_v19 = vld [vmem:[#allocation3 + $0x10] sm:$0x3] }
 0xe09   :  { %v989_v25 = vpop.f32.mrf.mxu1 }
 0xe0a   :  { %v990_v28 = vadd.f32 %v2985_v29, %v989_v25 }
 0xe0c   :  { %1013 = vrot.lane.b32.xlu1 %v990_v28, %s2648_s29  ;;  %v992_v33 = vadd.f32 %v990_v28, %v905_v34 }
 0xe0e   :  { %v2357_v26 = vmul.f32 -1.442695, %v992_v33  ;;  %v2498_v15 = vpop.eup %2497 }
 0xe0f   :  { %v932_v35 = vadd.f32 1.0, %v2498_v15 }
 0xe10   :  { %2499 = vpow2.f32 %v2357_v26 }
 0xe11   :  { %2501 = vrcp.f32 %v932_v35  ;;  %v944_v24 = vand.u32 2147483648, %v932_v35  ;;  %vm938_vm3 = vweird.f32 %v932_v35  ;;  %v942_v39 = vand.u32 2147483647, %v932_v35 }
 0xe13   :  { %v945_v40 = vor.u32 1.1754944e-38, %v944_v24  ;;  %vm943_vm5 = vcmp.eq.f32.partialorder %v942_v39, 8.507059e+37 }
 0xe16   :  { %v2500_v36 = vpop.eup %2499 }
 0xe17   :  { %v996_v27 = vadd.f32 1.0, %v2500_v36  ;;  %v2502_v32 = vpop.eup %2501 }
 0xe18   :  { %v934_v37 = vmul.f32 %v2502_v32, %v932_v35  ;;  %vm939_vm2 = vweird.f32 %v2502_v32 }
 0xe19   :  { %2503 = vrcp.f32 %v996_v27  ;;  %vm940_vm4 = vmor %vm938_vm3, %vm939_vm2  ;;  %v1008_v43 = vand.u32 2147483648, %v996_v27  ;;  %vm1002_vm7 = vweird.f32 %v996_v27  ;;  %v1006_v44 = vand.u32 2147483647, %v996_v27 }
 0xe1a   :  { %v935_v0 = vsub.f32 1.0, %v934_v37 }
 0xe1b   :  { %v1009_v46 = vor.u32 1.1754944e-38, %v1008_v43  ;;  %vm1007_vm9 = vcmp.eq.f32.partialorder %v1006_v44, 8.507059e+37  ;;  %v3023_v43 = vld [vmem:[%s3385_s3 + $0x58] sm:$0xff]  ;;  %v3028_v44 = vld [vmem:[%s3385_s3 + $0x50] sm:$0xff] }
 0xe1c   :  { %v936_v21 = vmul.f32 %v2502_v32, %v935_v0  ;;  %1277 = vmatpush.msrb.mxu2 %v3023_v43 }
 0xe1e   :  { %v937_v7 = vadd.f32 %v2502_v32, %v936_v21  ;;  %1278 = vmatpush.msrb.mxu2 %v3028_v44 }
 0xe1f   :  { %v2504_v2 = vpop.eup %2503 }
 0xe20   :  { %v998_v5 = vmul.f32 %v2504_v2, %v996_v27  ;;  %v941_v6 = vsel %vm940_vm4, %v2502_v32, %v937_v7  ;;  %vm1003_vm6 = vweird.f32 %v2504_v2 }
 0xe21   :  { %v946_v12 = vsel %vm943_vm5, %v945_v40, %v941_v6  ;;  %vm1004_vm8 = vmor %vm1002_vm7, %vm1003_vm6  ;;  %vm1182_vm6 = vcmask 523264  }
 0xe22   :  { %v999_v38 = vsub.f32 1.0, %v998_v5  ;;  %v959_v56 = vsub.f32 1.0, %v946_v12  ;;  %v965_v58 = vmul.f32 %v946_v12, %v2961_v3 }
 0xe24   :  { %v1000_v8 = vmul.f32 %v2504_v2, %v999_v38 }
 0xe26   :  { %v1001_v42 = vadd.f32 %v2504_v2, %v1000_v8 }
 0xe28   :  { %v1005_v45 = vsel %vm1004_vm8, %v2504_v2, %v1001_v42 }
 0xe29   :  { %v1010_v48 = vsel %vm1007_vm9, %v1009_v46, %v1005_v45  ;;  %v3034_v45 = vld [vmem:[%s3385_s3 + $0x48] sm:$0xff]  ;;  %v3040_v46 = vld [vmem:[%s3385_s3 + $0x40] sm:$0xff] }
 0xe2a   :  { %v1023_v61 = vsub.f32 1.0, %v1010_v48  ;;  %v1029_v63 = vmul.f32 %v1010_v48, %v2966_v16  ;;  %1279 = vmatpush.msrb.mxu2 %v3034_v45 }
 0xe2c   :  { %1280 = vmatpush.msrb.mxu2 %v3040_v46 }
 0xe76   :  { %v950_v10 = vpop.permute.xlu0 %949 }
 0xe77   :  { %v952_v41 = vmul.f32 %v950_v10, %v946_v12 }
 0xe79   :  { %954 = vrot.lane.b32.xlu2 %v952_v41, %s2648_s29 }
 0xe7e   :  { %v1014_v47 = vpop.permute.xlu1 %1013 }
 0xe7f   :  { %v1016_v49 = vmul.f32 %v1014_v47, %v1010_v48 }
 0xe81   :  { %1018 = vrot.lane.b32.xlu0 %v1016_v49, %s2648_s29 }
 0xed3   :  { %v955_v50 = vpop.permute.xlu2 %954 }
 0xed4   :  { %v957_v51 = vadd.f32 %v955_v50, %v904_v30 }
 0xed6   :  { %2505 = vtanh.f32 %v957_v51 }
 0xedc   :  { %v2506_v52 = vpop.eup %2505 }
 0xedd   :  { %961 = vrot.lane.b32.xlu1 %v2506_v52, %s2649_s8 }
 0xef3   :  { %v1019_v53 = vpop.permute.xlu0 %1018 }
 0xef4   :  { %v1021_v54 = vadd.f32 %v1019_v53, %v905_v34  ;;  %v1179_v53 = vld [vmem:[%s3384_s2 + $0x38] sm:$0xff] }
 0xef5   :  { %1197 = vmatpush.msra.mxu0 %v1179_v53 }
 0xef6   :  { %2507 = vtanh.f32 %v1021_v54  ;;  %v2371_v54 = vld [vmem:[%s3384_s2 + $0x78] sm:$0xff] }
 0xef7   :  { %1233 = vmatpush.msra.mxu1 %v2371_v54 }
 0xefc   :  { %v2508_v55 = vpop.eup %2507 }
 0xefd   :  { %1025 = vrot.lane.b32.xlu2 %v2508_v55, %s2649_s8  ;;  %v1178_v55 = vld [vmem:[%s3384_s2 + $0x30] sm:$0xff] }
 0xefe   :  { %1198 = vmatpush.msra.mxu0 %v1178_v55 }
 0xf4f   :  { %v962_v57 = vpop.permute.xlu1 %961 }
 0xf50   :  { %v964_v59 = vmul.f32 %v962_v57, %v959_v56  ;;  %v2370_v56 = vld [vmem:[%s3384_s2 + $0x70] sm:$0xff]  ;;  %v1177_v57 = vld [vmem:[%s3384_s2 + $0x28] sm:$0xff] }
 0xf51   :  { %1234 = vmatpush.msra.mxu1 %v2370_v56  ;;  %1199 = vmatpush.msra.mxu0 %v1177_v57 }
 0xf52   :  { %v2994_v60 = vadd.f32 %v965_v58, %v964_v59  ;;  %v2369_v58 = vld [vmem:[%s3384_s2 + $0x68] sm:$0xff]  ;;  %v1176_v59 = vld [vmem:[%s3384_s2 + $0x20] sm:$0xff] }
 0xf53   :  { %1235 = vmatpush.msra.mxu1 %v2369_v58  ;;  %1200 = vmatpush.msra.mxu0 %v1176_v59 }
 0xf54   :  { %1032 = vrot.lane.b32.xlu0 %v2994_v60, %s2649_s8 }
 0xf57   :  { %v1026_v62 = vpop.permute.xlu2 %1025 }
 0xf58   :  { %v1028_v1 = vmul.f32 %v1026_v62, %v1023_v61  ;;  %v2368_v61 = vld [vmem:[%s3384_s2 + $0x60] sm:$0xff]  ;;  %v3082_v62 = vld [vmem:[%s3385_s3 + $0x78] sm:$0xff] }
 0xf59   :  { %1236 = vmatpush.msra.mxu1 %v2368_v61  ;;  %1337 = vmatpush.msrb.mxu3 %v3082_v62 }
 0xf5a   :  { %v2999_v4 = vadd.f32 %v1029_v63, %v1028_v1  ;;  %v1175_v63 = vld [vmem:[%s3384_s2 + $0x18] sm:$0xff] }
 0xf5b   :  { %v2367_v1 = vld [vmem:[%s3384_s2 + $0x58] sm:$0xff]  ;;  %1201 = vmatpush.msra.mxu0 %v1175_v63 }
 0xf5c   :  { %1036 = vst.msk [vmem:[#allocation2 + $0x2] sm:$0x3] %vm237_vm10, %v2999_v4  ;;  %1101 = vrot.lane.b32.xlu1 %v2999_v4, %s2649_s8  ;;  %1237 = vmatpush.msra.mxu1 %v2367_v1 }
 0xfc6   :  { %v1033_v3 = vpop.permute.xlu0 %1032 }
 0xfc7   :  { %1035 = vst.msk [vmem:[#allocation2 + $0xc] sm:$0x3] %vm235_vm11, %v1033_v3  ;;  %2358 = vmatmul.msk.f32.vlgmr.msra.gmra.mxu2 %vm108_vm12, %v1033_v3  ;;  %v3094_v3 = vld [vmem:[%s3385_s3 + $0x70] sm:$0xff] }
 0xfc8   :  { %1403 = vmatpush.msra.mxu2 %v3023_v43  ;;  %1338 = vmatpush.msrb.mxu3 %v3094_v3 }
 0xfca   :  { %1404 = vmatpush.msra.mxu2 %v3028_v44 }
 0xfcc   :  { %1405 = vmatpush.msra.mxu2 %v3034_v45 }
 0xfce   :  { %v1102_v9 = vpop.permute.xlu1 %1101  ;;  %1406 = vmatpush.msra.mxu2 %v3040_v46 }
 0xfcf   :  { %2360 = vmatmul.msk.f32.vlgmr.msra.gmra.mxu3 %vm108_vm12, %v1102_v9  ;;  %1281 = vmatmul.f32.vlgmr.msrb.gmra.mxu2 %v2647_v13  ;;  %v1174_v9 = vld [vmem:[%s3384_s2 + $0x10] sm:$0xff] }
 0xfd0   :  { %1533 = vmatpush.msrb.mxu2 %v3023_v43  ;;  %1202 = vmatpush.msra.mxu0 %v1174_v9 }
 0xfd2   :  { %1534 = vmatpush.msrb.mxu2 %v3028_v44 }
 0xfd4   :  { %1535 = vmatpush.msrb.mxu2 %v3034_v45 }
 0xfd6   :  { %1536 = vmatpush.msrb.mxu2 %v3040_v46 }
0x104a   :  { %v1058_v11 = vpop.f32.mrf.mxu2 }
0x104b   :  { %v1059_v14 = vadd.f32 %v2978_v22, %v1058_v11  ;;  %v2366_v11 = vld [vmem:[%s3384_s2 + $0x50] sm:$0xff] }
0x104c   :  { %1238 = vmatpush.msra.mxu1 %v2366_v11 }
0x104d   :  { %1082 = vrot.lane.b32.xlu2 %v1059_v14, %s2648_s29  ;;  %v1061_v20 = vadd.f32 %v1059_v14, %v1037_v18  ;;  %v3105_v14 = vld [vmem:[%s3385_s3 + $0x68] sm:$0xff] }
0x104e   :  { %1339 = vmatpush.msrb.mxu3 %v3105_v14 }
0x104f   :  { %v2359_v23 = vmul.f32 -1.442695, %v1061_v20  ;;  %v1172_v20 = vld [vmem:[%s3384_s2] sm:$0xff] }
0x1051   :  { %2509 = vpow2.f32 %v2359_v23  ;;  %v2364_v23 = vld [vmem:[%s3384_s2 + $0x40] sm:$0xff] }
0x1052   :  { %v1122_v16 = vpop.f32.mrf.mxu3 }
0x1053   :  { %v1123_v17 = vadd.f32 %v2985_v29, %v1122_v16  ;;  %v1173_v16 = vld [vmem:[%s3384_s2 + $0x8] sm:$0xff] }
0x1054   :  { %1203 = vmatpush.msra.mxu0 %v1173_v16 }
0x1055   :  { %1146 = vrot.lane.b32.xlu0 %v1123_v17, %s2648_s29  ;;  %v1125_v34 = vadd.f32 %v1123_v17, %v1038_v19  ;;  %v2365_v17 = vld [vmem:[%s3384_s2 + $0x48] sm:$0xff] }
0x1056   :  { %1239 = vmatpush.msra.mxu1 %v2365_v17  ;;  %1204 = vmatpush.msra.mxu0 %v1172_v20 }
0x1057   :  { %v2510_v25 = vpop.eup %2509  ;;  %v2361_v22 = vmul.f32 -1.442695, %v1125_v34 }
0x1058   :  { %v1065_v28 = vadd.f32 1.0, %v2510_v25  ;;  %1240 = vmatpush.msra.mxu1 %v2364_v23  ;;  %1663 = vmatpush.msrb.mxu0 %v3023_v43 }
0x105a   :  { %2511 = vrcp.f32 %v1065_v28  ;;  %v1077_v29 = vand.u32 2147483648, %v1065_v28  ;;  %vm1071_vm14 = vweird.f32 %v1065_v28  ;;  %v1075_v35 = vand.u32 2147483647, %v1065_v28  ;;  %1727 = vmatpush.msrb.mxu1 %v3082_v62  ;;  %1664 = vmatpush.msrb.mxu0 %v3028_v44 }
0x105b   :  { %2513 = vpow2.f32 %v2361_v22 }
0x105c   :  { %v1078_v32 = vor.u32 1.1754944e-38, %v1077_v29  ;;  %vm1076_vm0 = vcmp.eq.f32.partialorder %v1075_v35, 8.507059e+37  ;;  %1728 = vmatpush.msrb.mxu1 %v3094_v3  ;;  %1665 = vmatpush.msrb.mxu0 %v3034_v45 }
0x105e   :  { %1729 = vmatpush.msrb.mxu1 %v3105_v14  ;;  %1666 = vmatpush.msrb.mxu0 %v3040_v46 }
0x1060   :  { %v2512_v30 = vpop.eup %2511 }
0x1061   :  { %v1067_v31 = vmul.f32 %v2512_v30, %v1065_v28  ;;  %vm1072_vm13 = vweird.f32 %v2512_v30  ;;  %v2514_v36 = vpop.eup %2513 }
0x1062   :  { %vm1073_vm15 = vmor %vm1071_vm14, %vm1072_vm13  ;;  %v1129_v37 = vadd.f32 1.0, %v2514_v36 }
0x1063   :  { %v1068_v33 = vsub.f32 1.0, %v1067_v31 }
0x1064   :  { %2515 = vrcp.f32 %v1129_v37  ;;  %v1141_v6 = vand.u32 2147483648, %v1129_v37  ;;  %vm1135_vm3 = vweird.f32 %v1129_v37  ;;  %v1139_v8 = vand.u32 2147483647, %v1129_v37 }
0x1065   :  { %v1069_v26 = vmul.f32 %v2512_v30, %v1068_v33 }
0x1066   :  { %v1142_v10 = vor.u32 1.1754944e-38, %v1141_v6  ;;  %vm1140_vm5 = vcmp.eq.f32.partialorder %v1139_v8, 8.507059e+37 }
0x1067   :  { %v1070_v15 = vadd.f32 %v2512_v30, %v1069_v26 }
0x1069   :  { %v1074_v27 = vsel %vm1073_vm15, %v2512_v30, %v1070_v15 }
0x106a   :  { %v3012_v0 = vsel %vm1076_vm0, %v1078_v32, %v1074_v27  ;;  %v2516_v5 = vpop.eup %2515  ;;  %v3181_v27 = vld [vmem:[%s3387_s5 + $0x3] ss:$0 sm:$0xff] }
0x106b   :  { %v1131_v7 = vmul.f32 %v2516_v5, %v1129_v37  ;;  %vm1136_vm2 = vweird.f32 %v2516_v5  ;;  %v1092_v25 = vsub.f32 1.0, %v3012_v0  ;;  %v1098_v30 = vmul.f32 %v3012_v0, %v2994_v60 }
0x106c   :  { %vm1137_vm4 = vmor %vm1135_vm3, %vm1136_vm2 }
0x106d   :  { %v1132_v38 = vsub.f32 1.0, %v1131_v7 }
0x106f   :  { %v1133_v24 = vmul.f32 %v2516_v5, %v1132_v38 }
0x1071   :  { %v1134_v39 = vadd.f32 %v2516_v5, %v1133_v24 }
0x1073   :  { %v1138_v40 = vsel %vm1137_vm4, %v2516_v5, %v1134_v39 }
0x1074   :  { %v3016_v41 = vsel %vm1140_vm5, %v1142_v10, %v1138_v40 }
0x1075   :  { %v1156_v22 = vsub.f32 1.0, %v3016_v41  ;;  %v1162_v15 = vmul.f32 %v3016_v41, %v2999_v4 }
0x10a7   :  { %v1083_v2 = vpop.permute.xlu2 %1082 }
0x10a8   :  { %v1085_v21 = vmul.f32 %v1083_v2, %v3012_v0  ;;  %v2422_v0 = vld [vmem:[%s3386_s4 + $0x2] ss:$0 sm:$0xff]  ;;  %v2423_v2 = vld [vmem:[%s3386_s4 + $0x3] ss:$0 sm:$0xff] }
0x10aa   :  { %1087 = vrot.lane.b32.xlu1 %v1085_v21, %s2648_s29 }
0x10c7   :  { %v1147_v12 = vpop.permute.xlu0 %1146 }
0x10c8   :  { %v1149_v42 = vmul.f32 %v1147_v12, %v3016_v41 }
0x10ca   :  { %1151 = vrot.lane.b32.xlu2 %v1149_v42, %s2648_s29 }
0x111c   :  { %v1088_v47 = vpop.permute.xlu1 %1087 }
0x111d   :  { %v1090_v48 = vadd.f32 %v1088_v47, %v1037_v18  ;;  %v3117_v18 = vld [vmem:[%s3385_s3 + $0x60] sm:$0xff] }
0x111e   :  { %1340 = vmatpush.msrb.mxu3 %v3117_v18  ;;  %1730 = vmatpush.msrb.mxu1 %v3117_v18 }
0x111f   :  { %2517 = vtanh.f32 %v1090_v48  ;;  %1341 = vmatmul.f32.vlgmr.msrb.gmra.mxu3 %v2647_v13  ;;  %v3144_v13 = vld [vmem:[%s3387_s5 + $0x2] ss:$0 sm:$0xff] }
0x1120   :  { %1467 = vmatpush.msra.mxu3 %v3082_v62 }
0x1122   :  { %1468 = vmatpush.msra.mxu3 %v3094_v3 }
0x1124   :  { %v1152_v49 = vpop.permute.xlu2 %1151  ;;  %1469 = vmatpush.msra.mxu3 %v3105_v14 }
0x1125   :  { %v2518_v50 = vpop.eup %2517  ;;  %v1154_v51 = vadd.f32 %v1152_v49, %v1038_v19  ;;  %v1282_v19 = vpop.f32.mrf.mxu2 }
0x1126   :  { %1094 = vrot.lane.b32.xlu0 %v2518_v50, %s2649_s8  ;;  %1470 = vmatpush.msra.mxu3 %v3117_v18  ;;  %v1283_v34 = vadd.f32 %v3144_v13, %v1282_v19 }
0x1127   :  { %2519 = vtanh.f32 %v1154_v51 }
0x1128   :  { %1597 = vmatpush.msrb.mxu3 %v3082_v62 }
0x112a   :  { %1598 = vmatpush.msrb.mxu3 %v3094_v3 }
0x112c   :  { %1599 = vmatpush.msrb.mxu3 %v3105_v14 }
0x112d   :  { %v2520_v52 = vpop.eup %2519 }
0x112e   :  { %1158 = vrot.lane.b32.xlu1 %v2520_v52, %s2649_s8  ;;  %1600 = vmatpush.msrb.mxu3 %v3117_v18 }
0x112f   :  { %1306 = vrot.lane.b32.xlu0 %v1283_v34, %s2648_s29 }
0x1198   :  { %v1095_v28 = vpop.permute.xlu0 %1094 }
0x1199   :  { %v1097_v31 = vmul.f32 %v1095_v28, %v1092_v25 }
0x119b   :  { %v1099_v33 = vadd.f32 %v1098_v30, %v1097_v31 }
0x119d   :  { %1165 = vrot.lane.b32.xlu2 %v1099_v33, %s2649_s8 }
0x11a0   :  { %v1159_v26 = vpop.permute.xlu1 %1158 }
0x11a1   :  { %v1161_v60 = vmul.f32 %v1159_v26, %v1156_v22  ;;  %v1307_v50 = vpop.permute.xlu0 %1306 }
0x11a2   :  { %v1342_v32 = vpop.f32.mrf.mxu3 }
0x11a3   :  { %v3158_v29 = vadd.f32 %v1162_v15, %v1161_v60  ;;  %v1343_v37 = vadd.f32 %v3181_v27, %v1342_v32 }
0x11a5   :  { %1169 = vst.msk [vmem:[#allocation2] sm:$0x3] %vm237_vm10, %v3158_v29  ;;  %1366 = vrot.lane.b32.xlu1 %v1343_v37, %s2648_s29 }
0x11ac   :  { %v1170_v35 = vld [vmem:[#allocation2] sm:$0xff] }
0x11ad   :  { %2362 = vmatmul.msk.f32.vlgmr.msra.gmra.mxu0 %vm1182_vm6, %v1170_v35  ;;  %2372 = vmatmul.msk.f32.vlgmr.msra.gmra.mxu1 %vm1182_vm6, %v1170_v35 }
0x11ae   :  { %1923 = vmatpush.msra.mxu0 %v3023_v43  ;;  %1987 = vmatpush.msra.mxu1 %v3082_v62 }
0x11b0   :  { %1924 = vmatpush.msra.mxu0 %v3028_v44  ;;  %1988 = vmatpush.msra.mxu1 %v3094_v3 }
0x11b2   :  { %1925 = vmatpush.msra.mxu0 %v3034_v45  ;;  %1989 = vmatpush.msra.mxu1 %v3105_v14 }
0x11b4   :  { %1926 = vmatpush.msra.mxu0 %v3040_v46  ;;  %1990 = vmatpush.msra.mxu1 %v3117_v18 }
0x11f7   :  { %v3172_v4 = vpop.permute.xlu2 %1165 }
0x11f8   :  { %1168 = vst.msk [vmem:[#allocation2 + $0xe] sm:$0x3] %vm235_vm11, %v3172_v4 }
0x11ff   :  { %v1171_v36 = vld [vmem:[#allocation2 + $0x8] sm:$0xff] }
0x1200   :  { %2363 = vmatmul.msk.f32.gmra.mxu0 %vm1182_vm6, %v1171_v36  ;;  %2373 = vmatmul.msk.f32.gmra.mxu1 %vm1182_vm6, %v1171_v36 }
0x1217   :  { %v1367_v30 = vpop.permute.xlu1 %1366 }
0x122a   :  { %v1206_v21 = vpop.f32.mrf.mxu0  ;;  %v1242_v5 = vpop.f32.mrf.mxu1 }
0x122b   :  { %v1207_v7 = vadd.f32 %v2422_v0, %v1206_v21  ;;  %v1243_v38 = vadd.f32 %v2423_v2, %v1242_v5 }
0x122d   :  { %1212 = vst.msk [vmem:[#allocation3] sm:$0xff] %vm60_vm1, %v1207_v7 }
0x122e   :  { %1248 = vst.msk [vmem:[#allocation3 + $0x10] sm:$0xff] %vm60_vm1, %v1243_v38 }
0x1234   :  { %v1262_v24 = vld [vmem:[#allocation3] sm:$0x3] }
0x1235   :  { %v1285_v39 = vadd.f32 %v1283_v34, %v1262_v24 }
0x1237   :  { %v2382_v6 = vmul.f32 -1.442695, %v1285_v39 }
0x1239   :  { %2521 = vpow2.f32 %v2382_v6 }
0x123f   :  { %v2522_v8 = vpop.eup %2521 }
0x1240   :  { %v1289_v40 = vadd.f32 1.0, %v2522_v8 }
0x1242   :  { %2523 = vrcp.f32 %v1289_v40  ;;  %v1301_v42 = vand.u32 2147483648, %v1289_v40  ;;  %v1299_v48 = vand.u32 2147483647, %v1289_v40  ;;  %vm1295_vm11 = vweird.f32 %v1289_v40 }
0x1244   :  { %v1302_v51 = vor.u32 1.1754944e-38, %v1301_v42  ;;  %vm1300_vm8 = vcmp.eq.f32.partialorder %v1299_v48, 8.507059e+37 }
0x1248   :  { %v2524_v10 = vpop.eup %2523 }
0x1249   :  { %v1291_v12 = vmul.f32 %v2524_v10, %v1289_v40  ;;  %vm1296_vm10 = vweird.f32 %v2524_v10 }
0x124a   :  { %vm1297_vm7 = vmor %vm1295_vm11, %vm1296_vm10 }
0x124b   :  { %v1292_v41 = vsub.f32 1.0, %v1291_v12  ;;  %v1384_v12 = vld [vmem:[#allocation3 + $0x2] sm:$0x3] }
0x124d   :  { %v1293_v47 = vmul.f32 %v2524_v10, %v1292_v41 }
0x124f   :  { %v1294_v49 = vadd.f32 %v2524_v10, %v1293_v47 }
0x1251   :  { %v1298_v52 = vsel %vm1297_vm7, %v2524_v10, %v1294_v49 }
0x1252   :  { %v1303_v53 = vsel %vm1300_vm8, %v1302_v51, %v1298_v52 }
0x1253   :  { %v1309_v54 = vmul.f32 %v1307_v50, %v1303_v53  ;;  %v1316_v32 = vsub.f32 1.0, %v1303_v53 }
0x1255   :  { %1311 = vrot.lane.b32.xlu2 %v1309_v54, %s2648_s29 }
0x127d   :  { %v1209_v55 = vpop.f32.mrf.mxu0  ;;  %v1245_v56 = vpop.f32.mrf.mxu1 }
0x127e   :  { %v1210_v57 = vadd.f32 %v2422_v0, %v1209_v55  ;;  %v1246_v58 = vadd.f32 %v2423_v2, %v1245_v56  ;;  %v1322_v0 = vmul.f32 0.0, %v1303_v53 }
0x1280   :  { %1213 = vst.msk [vmem:[#allocation3 + $0x8] sm:$0xff] %vm60_vm1, %v1210_v57 }
0x1281   :  { %1249 = vst.msk [vmem:[#allocation3 + $0x18] sm:$0xff] %vm60_vm1, %v1246_v58 }
0x1288   :  { %v1263_v59 = vld [vmem:[#allocation3 + $0x1e] sm:$0x3] }
0x1289   :  { %v1345_v61 = vadd.f32 %v1343_v37, %v1263_v59 }
0x128b   :  { %v2383_v63 = vmul.f32 -1.442695, %v1345_v61 }
0x128d   :  { %2525 = vpow2.f32 %v2383_v63 }
0x1293   :  { %v2526_v1 = vpop.eup %2525 }
0x1294   :  { %v1349_v9 = vadd.f32 1.0, %v2526_v1 }
0x1296   :  { %2527 = vrcp.f32 %v1349_v9  ;;  %v1361_v20 = vand.u32 2147483648, %v1349_v9  ;;  %v1359_v25 = vand.u32 2147483647, %v1349_v9  ;;  %vm1355_vm13 = vweird.f32 %v1349_v9 }
0x1298   :  { %v1362_v31 = vor.u32 1.1754944e-38, %v1361_v20  ;;  %vm1360_vm15 = vcmp.eq.f32.partialorder %v1359_v25, 8.507059e+37 }
0x129c   :  { %v2528_v11 = vpop.eup %2527 }
0x129d   :  { %v1351_v16 = vmul.f32 %v2528_v11, %v1349_v9  ;;  %vm1356_vm9 = vweird.f32 %v2528_v11  ;;  %v1385_v9 = vld [vmem:[#allocation3 + $0x1c] sm:$0x3] }
0x129e   :  { %vm1357_vm14 = vmor %vm1355_vm13, %vm1356_vm9 }
0x129f   :  { %v1352_v17 = vsub.f32 1.0, %v1351_v16 }
0x12a1   :  { %v1353_v23 = vmul.f32 %v2528_v11, %v1352_v17 }
0x12a3   :  { %v1354_v28 = vadd.f32 %v2528_v11, %v1353_v23 }
0x12a5   :  { %v1358_v19 = vsel %vm1357_vm14, %v2528_v11, %v1354_v28 }
0x12a6   :  { %v1363_v34 = vsel %vm1360_vm15, %v1362_v31, %v1358_v19 }
0x12a7   :  { %v1369_v33 = vmul.f32 %v1367_v30, %v1363_v34  ;;  %v1376_v5 = vsub.f32 1.0, %v1363_v34  ;;  %v1382_v38 = vmul.f32 0.0, %v1363_v34 }
0x12a9   :  { %1371 = vrot.lane.b32.xlu0 %v1369_v33, %s2648_s29 }
0x12af   :  { %v1312_v22 = vpop.permute.xlu2 %1311 }
0x12b0   :  { %v1314_v26 = vadd.f32 %v1312_v22, %v1262_v24 }
0x12b2   :  { %2529 = vtanh.f32 %v1314_v26 }
0x12b8   :  { %v2530_v15 = vpop.eup %2529 }
0x12b9   :  { %1318 = vrot.lane.b32.xlu1 %v2530_v15, %s2649_s8 }
0x131b   :  { %v1372_v60 = vpop.permute.xlu0 %1371 }
0x131c   :  { %v1374_v35 = vadd.f32 %v1372_v60, %v1263_v59 }
0x131e   :  { %2531 = vtanh.f32 %v1374_v35 }
0x1324   :  { %v2532_v36 = vpop.eup %2531 }
0x1325   :  { %1378 = vrot.lane.b32.xlu2 %v2532_v36, %s2649_s8 }
0x132b   :  { %v1319_v37 = vpop.permute.xlu1 %1318 }
0x132c   :  { %v1321_v2 = vmul.f32 %v1319_v37, %v1316_v32 }
0x132e   :  { %v3199_v21 = vadd.f32 %v1322_v0, %v1321_v2 }
0x1330   :  { %1387 = vrot.lane.b32.xlu0 %v3199_v21, %s2649_s8 }
0x137f   :  { %v1379_v7 = vpop.permute.xlu2 %1378 }
0x1380   :  { %v1381_v24 = vmul.f32 %v1379_v7, %v1376_v5 }
0x1382   :  { %v3203_v39 = vadd.f32 %v1382_v38, %v1381_v24 }
0x1384   :  { %1451 = vrot.lane.b32.xlu1 %v3203_v39, %s2649_s8 }
0x13a2   :  { %v1388_v6 = vpop.permute.xlu0 %1387 }
0x13a3   :  { %2384 = vmatmul.msk.f32.vlgmr.msra.gmra.mxu2 %vm108_vm12, %v1388_v6 }
0x13a4   :  { %1793 = vmatpush.msra.mxu2 %v3023_v43 }
0x13a6   :  { %1794 = vmatpush.msra.mxu2 %v3028_v44 }
0x13a8   :  { %1795 = vmatpush.msra.mxu2 %v3034_v45 }
0x13aa   :  { %1796 = vmatpush.msra.mxu2 %v3040_v46 }
0x13f6   :  { %v1452_v8 = vpop.permute.xlu1 %1451 }
0x13f7   :  { %2386 = vmatmul.msk.f32.vlgmr.msra.gmra.mxu3 %vm108_vm12, %v1452_v8 }
0x13f8   :  { %1857 = vmatpush.msra.mxu3 %v3082_v62 }
0x13fa   :  { %1858 = vmatpush.msra.mxu3 %v3094_v3 }
0x13fc   :  { %1859 = vmatpush.msra.mxu3 %v3105_v14 }
0x13fe   :  { %1860 = vmatpush.msra.mxu3 %v3117_v18 }
0x1426   :  { %v1408_v40 = vpop.f32.mrf.mxu2 }
0x1427   :  { %v1409_v10 = vadd.f32 %v3144_v13, %v1408_v40 }
0x1429   :  { %1432 = vrot.lane.b32.xlu2 %v1409_v10, %s2648_s29  ;;  %v1411_v41 = vadd.f32 %v1409_v10, %v1384_v12 }
0x142b   :  { %v2385_v42 = vmul.f32 -1.442695, %v1411_v41 }
0x142d   :  { %2533 = vpow2.f32 %v2385_v42 }
0x1433   :  { %v2534_v47 = vpop.eup %2533 }
0x1434   :  { %v1415_v48 = vadd.f32 1.0, %v2534_v47 }
0x1436   :  { %2535 = vrcp.f32 %v1415_v48  ;;  %v1427_v56 = vand.u32 2147483648, %v1415_v48  ;;  %vm1421_vm2 = vweird.f32 %v1415_v48  ;;  %v1425_v57 = vand.u32 2147483647, %v1415_v48 }
0x1438   :  { %v1428_v59 = vor.u32 1.1754944e-38, %v1427_v56  ;;  %vm1426_vm4 = vcmp.eq.f32.partialorder %v1425_v57, 8.507059e+37 }
0x143c   :  { %v2536_v49 = vpop.eup %2535 }
0x143d   :  { %v1417_v50 = vmul.f32 %v2536_v49, %v1415_v48  ;;  %vm1422_vm0 = vweird.f32 %v2536_v49  ;;  %v1514_v48 = vld [vmem:[#allocation3 + $0x4] sm:$0x3] }
0x143e   :  { %vm1423_vm3 = vmor %vm1421_vm2, %vm1422_vm0 }
0x143f   :  { %v1418_v51 = vsub.f32 1.0, %v1417_v50 }
0x1441   :  { %v1419_v52 = vmul.f32 %v2536_v49, %v1418_v51 }
0x1443   :  { %v1420_v55 = vadd.f32 %v2536_v49, %v1419_v52 }
0x1445   :  { %v1424_v58 = vsel %vm1423_vm3, %v2536_v49, %v1420_v55 }
0x1446   :  { %v1429_v61 = vsel %vm1426_vm4, %v1428_v59, %v1424_v58 }
0x1447   :  { %v1442_v5 = vsub.f32 1.0, %v1429_v61  ;;  %v1448_v38 = vmul.f32 %v1429_v61, %v3199_v21 }
0x147a   :  { %v1472_v53 = vpop.f32.mrf.mxu3 }
0x147b   :  { %v1473_v54 = vadd.f32 %v3181_v27, %v1472_v53 }
0x147d   :  { %1496 = vrot.lane.b32.xlu0 %v1473_v54, %s2648_s29  ;;  %v1475_v11 = vadd.f32 %v1473_v54, %v1385_v9 }
0x147f   :  { %v2387_v16 = vmul.f32 -1.442695, %v1475_v11 }
0x1481   :  { %2537 = vpow2.f32 %v2387_v16 }
0x1483   :  { %v1433_v63 = vpop.permute.xlu2 %1432 }
0x1484   :  { %v1435_v1 = vmul.f32 %v1433_v63, %v1429_v61 }
0x1486   :  { %1437 = vrot.lane.b32.xlu1 %v1435_v1, %s2648_s29 }
0x1487   :  { %v2538_v17 = vpop.eup %2537 }
0x1488   :  { %v1479_v20 = vadd.f32 1.0, %v2538_v17 }
0x148a   :  { %2539 = vrcp.f32 %v1479_v20  ;;  %v1491_v19 = vand.u32 2147483648, %v1479_v20  ;;  %vm1485_vm10 = vweird.f32 %v1479_v20  ;;  %v1489_v34 = vand.u32 2147483647, %v1479_v20 }
0x148c   :  { %v1492_v22 = vor.u32 1.1754944e-38, %v1491_v19  ;;  %vm1490_vm7 = vcmp.eq.f32.partialorder %v1489_v34, 8.507059e+37 }
0x1490   :  { %v2540_v23 = vpop.eup %2539 }
0x1491   :  { %v1481_v25 = vmul.f32 %v2540_v23, %v1479_v20  ;;  %vm1486_vm5 = vweird.f32 %v2540_v23  ;;  %v1515_v20 = vld [vmem:[#allocation3 + $0x1a] sm:$0x3] }
0x1492   :  { %vm1487_vm11 = vmor %vm1485_vm10, %vm1486_vm5 }
0x1493   :  { %v1482_v28 = vsub.f32 1.0, %v1481_v25 }
0x1495   :  { %v1483_v30 = vmul.f32 %v2540_v23, %v1482_v28 }
0x1497   :  { %v1484_v31 = vadd.f32 %v2540_v23, %v1483_v30 }
0x1499   :  { %v1488_v33 = vsel %vm1487_vm11, %v2540_v23, %v1484_v31 }
0x149a   :  { %v1493_v15 = vsel %vm1490_vm7, %v1492_v22, %v1488_v33 }
0x149b   :  { %v1506_v8 = vsub.f32 1.0, %v1493_v15  ;;  %v1512_v10 = vmul.f32 %v1493_v15, %v3203_v39 }
0x14ef   :  { %v1497_v26 = vpop.permute.xlu0 %1496 }
0x14f0   :  { %v1499_v60 = vmul.f32 %v1497_v26, %v1493_v15 }
0x14f2   :  { %1501 = vrot.lane.b32.xlu2 %v1499_v60, %s2648_s29 }
0x14f8   :  { %v1438_v35 = vpop.permute.xlu1 %1437 }
0x14f9   :  { %v1440_v36 = vadd.f32 %v1438_v35, %v1384_v12 }
0x14fb   :  { %2541 = vtanh.f32 %v1440_v36 }
0x1501   :  { %v2542_v32 = vpop.eup %2541 }
0x1502   :  { %1444 = vrot.lane.b32.xlu0 %v2542_v32, %s2649_s8 }
0x154c   :  { %v1502_v37 = vpop.permute.xlu2 %1501 }
0x154d   :  { %v1504_v0 = vadd.f32 %v1502_v37, %v1385_v9 }
0x154f   :  { %2543 = vtanh.f32 %v1504_v0 }
0x1555   :  { %v2544_v2 = vpop.eup %2543 }
0x1556   :  { %1508 = vrot.lane.b32.xlu1 %v2544_v2, %s2649_s8 }
0x1574   :  { %v1445_v7 = vpop.permute.xlu0 %1444 }
0x1575   :  { %v1447_v24 = vmul.f32 %v1445_v7, %v1442_v5 }
0x1577   :  { %v3226_v6 = vadd.f32 %v1448_v38, %v1447_v24 }
0x1579   :  { %1517 = vrot.lane.b32.xlu2 %v3226_v6, %s2649_s8 }
0x15c8   :  { %v1509_v40 = vpop.permute.xlu1 %1508 }
0x15c9   :  { %v1511_v12 = vmul.f32 %v1509_v40, %v1506_v8 }
0x15cb   :  { %v3231_v41 = vadd.f32 %v1512_v10, %v1511_v12 }
0x15cd   :  { %1581 = vrot.lane.b32.xlu0 %v3231_v41, %s2649_s8 }
0x15d3   :  { %v1518_v42 = vpop.permute.xlu2 %1517 }
0x15d4   :  { %2388 = vmatmul.msk.f32.vlgmr.msrb.gmra.mxu2 %vm108_vm12, %v1518_v42 }
0x15d5   :  { %2053 = vmatpush.msrb.mxu2 %v3023_v43 }
0x15d7   :  { %2054 = vmatpush.msrb.mxu2 %v3028_v44 }
0x15d9   :  { %2055 = vmatpush.msrb.mxu2 %v3034_v45 }
0x15db   :  { %2056 = vmatpush.msrb.mxu2 %v3040_v46 }
0x163f   :  { %v1582_v21 = vpop.permute.xlu0 %1581 }
0x1640   :  { %2390 = vmatmul.msk.f32.vlgmr.msrb.gmra.mxu3 %vm108_vm12, %v1582_v21 }
0x1641   :  { %2117 = vmatpush.msrb.mxu3 %v3082_v62 }
0x1643   :  { %2118 = vmatpush.msrb.mxu3 %v3094_v3 }
0x1645   :  { %2119 = vmatpush.msrb.mxu3 %v3105_v14 }
0x1647   :  { %2120 = vmatpush.msrb.mxu3 %v3117_v18 }
0x1657   :  { %v1538_v39 = vpop.f32.mrf.mxu2 }
0x1658   :  { %v1539_v47 = vadd.f32 %v3144_v13, %v1538_v39 }
0x165a   :  { %1562 = vrot.lane.b32.xlu1 %v1539_v47, %s2648_s29  ;;  %v1541_v49 = vadd.f32 %v1539_v47, %v1514_v48 }
0x165c   :  { %v2389_v50 = vmul.f32 -1.442695, %v1541_v49 }
0x165e   :  { %2545 = vpow2.f32 %v2389_v50 }
0x1664   :  { %v2546_v51 = vpop.eup %2545 }
0x1665   :  { %v1545_v52 = vadd.f32 1.0, %v2546_v51 }
0x1667   :  { %2547 = vrcp.f32 %v1545_v52  ;;  %v1557_v61 = vand.u32 2147483648, %v1545_v52  ;;  %vm1551_vm9 = vweird.f32 %v1545_v52  ;;  %v1555_v63 = vand.u32 2147483647, %v1545_v52 }
0x1669   :  { %v1558_v9 = vor.u32 1.1754944e-38, %v1557_v61  ;;  %vm1556_vm14 = vcmp.eq.f32.partialorder %v1555_v63, 8.507059e+37 }
0x166d   :  { %v2548_v53 = vpop.eup %2547 }
0x166e   :  { %v1547_v54 = vmul.f32 %v2548_v53, %v1545_v52  ;;  %vm1552_vm8 = vweird.f32 %v2548_v53 }
0x166f   :  { %vm1553_vm13 = vmor %vm1551_vm9, %vm1552_vm8 }
0x1670   :  { %v1548_v55 = vsub.f32 1.0, %v1547_v54 }
0x1672   :  { %v1549_v56 = vmul.f32 %v2548_v53, %v1548_v55 }
0x1674   :  { %v1550_v59 = vadd.f32 %v2548_v53, %v1549_v56 }
0x1676   :  { %v1554_v1 = vsel %vm1553_vm13, %v2548_v53, %v1550_v59 }
0x1677   :  { %v1559_v16 = vsel %vm1556_vm14, %v1558_v9, %v1554_v1  ;;  %v1645_v9 = vld [vmem:[#allocation3 + $0x18] sm:$0x3] }
0x1678   :  { %v1572_v8 = vsub.f32 1.0, %v1559_v16  ;;  %v1578_v10 = vmul.f32 %v1559_v16, %v3226_v6 }
0x16c3   :  { %v1602_v57 = vpop.f32.mrf.mxu3 }
0x16c4   :  { %v1603_v58 = vadd.f32 %v3181_v27, %v1602_v57 }
0x16c6   :  { %1626 = vrot.lane.b32.xlu2 %v1603_v58, %s2648_s29  ;;  %v1605_v23 = vadd.f32 %v1603_v58, %v1515_v20 }
0x16c8   :  { %v2391_v25 = vmul.f32 -1.442695, %v1605_v23 }
0x16ca   :  { %2549 = vpow2.f32 %v2391_v25 }
0x16cc   :  { %v1563_v11 = vpop.permute.xlu1 %1562 }
0x16cd   :  { %v1565_v17 = vmul.f32 %v1563_v11, %v1559_v16 }
0x16cf   :  { %1567 = vrot.lane.b32.xlu0 %v1565_v17, %s2648_s29 }
0x16d0   :  { %v2550_v28 = vpop.eup %2549 }
0x16d1   :  { %v1609_v30 = vadd.f32 1.0, %v2550_v28 }
0x16d3   :  { %2551 = vrcp.f32 %v1609_v30  ;;  %v1621_v26 = vand.u32 2147483648, %v1609_v30  ;;  %vm1615_vm0 = vweird.f32 %v1609_v30  ;;  %v1619_v15 = vand.u32 2147483647, %v1609_v30 }
0x16d5   :  { %v1622_v35 = vor.u32 1.1754944e-38, %v1621_v26  ;;  %vm1620_vm3 = vcmp.eq.f32.partialorder %v1619_v15, 8.507059e+37 }
0x16d9   :  { %v2552_v31 = vpop.eup %2551 }
0x16da   :  { %v1611_v19 = vmul.f32 %v2552_v31, %v1609_v30  ;;  %vm1616_vm15 = vweird.f32 %v2552_v31 }
0x16db   :  { %vm1617_vm2 = vmor %vm1615_vm0, %vm1616_vm15 }
0x16dc   :  { %v1612_v34 = vsub.f32 1.0, %v1611_v19 }
0x16de   :  { %v1613_v33 = vmul.f32 %v2552_v31, %v1612_v34 }
0x16e0   :  { %v1614_v22 = vadd.f32 %v2552_v31, %v1613_v33 }
0x16e2   :  { %v1618_v60 = vsel %vm1617_vm2, %v2552_v31, %v1614_v22 }
0x16e3   :  { %v1623_v36 = vsel %vm1620_vm3, %v1622_v35, %v1618_v60 }
0x16e4   :  { %v1636_v21 = vsub.f32 1.0, %v1623_v36  ;;  %v1642_v47 = vmul.f32 %v1623_v36, %v3231_v41 }
0x1720   :  { %v1627_v32 = vpop.permute.xlu2 %1626 }
0x1721   :  { %v1629_v37 = vmul.f32 %v1627_v32, %v1623_v36 }
0x1723   :  { %1631 = vrot.lane.b32.xlu1 %v1629_v37, %s2648_s29 }
0x1741   :  { %v1568_v0 = vpop.permute.xlu0 %1567 }
0x1742   :  { %v1570_v2 = vadd.f32 %v1568_v0, %v1514_v48 }
0x1744   :  { %2553 = vtanh.f32 %v1570_v2 }
0x174a   :  { %v2554_v5 = vpop.eup %2553 }
0x174b   :  { %1574 = vrot.lane.b32.xlu2 %v2554_v5, %s2649_s8 }
0x1795   :  { %v1632_v7 = vpop.permute.xlu1 %1631 }
0x1796   :  { %v1634_v38 = vadd.f32 %v1632_v7, %v1515_v20 }
0x1798   :  { %2555 = vtanh.f32 %v1634_v38 }
0x179e   :  { %v2556_v24 = vpop.eup %2555 }
0x179f   :  { %1638 = vrot.lane.b32.xlu0 %v2556_v24, %s2649_s8 }
0x17a5   :  { %v1575_v40 = vpop.permute.xlu2 %1574 }
0x17a6   :  { %v1577_v12 = vmul.f32 %v1575_v40, %v1572_v8 }
0x17a8   :  { %v3254_v42 = vadd.f32 %v1578_v10, %v1577_v12 }
0x17aa   :  { %1647 = vrot.lane.b32.xlu1 %v3254_v42, %s2649_s8 }
0x1811   :  { %v1639_v39 = vpop.permute.xlu0 %1638 }
0x1812   :  { %v1641_v48 = vmul.f32 %v1639_v39, %v1636_v21 }
0x1814   :  { %v3259_v49 = vadd.f32 %v1642_v47, %v1641_v48 }
0x1816   :  { %1711 = vrot.lane.b32.xlu2 %v3259_v49, %s2649_s8 }
0x181c   :  { %v1648_v50 = vpop.permute.xlu1 %1647 }
0x181d   :  { %2392 = vmatmul.msk.f32.vlgmr.msrb.gmra.mxu0 %vm108_vm12, %v1648_v50 }
0x181e   :  { %2183 = vmatpush.msrb.mxu0 %v3023_v43 }
0x1820   :  { %2184 = vmatpush.msrb.mxu0 %v3028_v44  ;;  %v1644_v44 = vld [vmem:[#allocation3 + $0x6] sm:$0x3] }
0x1822   :  { %2185 = vmatpush.msrb.mxu0 %v3034_v45 }
0x1824   :  { %2186 = vmatpush.msrb.mxu0 %v3040_v46 }
0x1870   :  { %v1712_v6 = vpop.permute.xlu2 %1711 }
0x1871   :  { %2394 = vmatmul.msk.f32.vlgmr.msrb.gmra.mxu1 %vm108_vm12, %v1712_v6  ;;  %v1774_v6 = vld [vmem:[#allocation3 + $0x8] sm:$0x3] }
0x1872   :  { %2247 = vmatpush.msrb.mxu1 %v3082_v62 }
0x1874   :  { %2248 = vmatpush.msrb.mxu1 %v3094_v3 }
0x1876   :  { %2249 = vmatpush.msrb.mxu1 %v3105_v14 }
0x1878   :  { %2250 = vmatpush.msrb.mxu1 %v3117_v18 }
0x189a   :  { %v1668_v41 = vpop.f32.mrf.mxu0 }
0x189b   :  { %v1669_v43 = vadd.f32 %v3144_v13, %v1668_v41 }
0x189d   :  { %1692 = vrot.lane.b32.xlu0 %v1669_v43, %s2648_s29  ;;  %v1671_v45 = vadd.f32 %v1669_v43, %v1644_v44 }
0x189f   :  { %v2393_v51 = vmul.f32 -1.442695, %v1671_v45 }
0x18a1   :  { %2557 = vpow2.f32 %v2393_v51 }
0x18a7   :  { %v2558_v46 = vpop.eup %2557 }
0x18a8   :  { %v1675_v53 = vadd.f32 1.0, %v2558_v46 }
0x18aa   :  { %2559 = vrcp.f32 %v1675_v53  ;;  %v1687_v56 = vand.u32 2147483648, %v1675_v53  ;;  %vm1681_vm5 = vweird.f32 %v1675_v53  ;;  %v1685_v57 = vand.u32 2147483647, %v1675_v53 }
0x18ac   :  { %v1688_v59 = vor.u32 1.1754944e-38, %v1687_v56  ;;  %vm1686_vm11 = vcmp.eq.f32.partialorder %v1685_v57, 8.507059e+37 }
0x18b0   :  { %v2560_v3 = vpop.eup %2559 }
0x18b1   :  { %v1677_v14 = vmul.f32 %v2560_v3, %v1675_v53  ;;  %vm1682_vm4 = vweird.f32 %v2560_v3 }
0x18b2   :  { %vm1683_vm10 = vmor %vm1681_vm5, %vm1682_vm4 }
0x18b3   :  { %v1678_v18 = vsub.f32 1.0, %v1677_v14 }
0x18b5   :  { %v1679_v54 = vmul.f32 %v2560_v3, %v1678_v18 }
0x18b7   :  { %v1680_v55 = vadd.f32 %v2560_v3, %v1679_v54 }
0x18b9   :  { %v1684_v58 = vsel %vm1683_vm10, %v2560_v3, %v1680_v55 }
0x18ba   :  { %v1689_v63 = vsel %vm1686_vm11, %v1688_v59, %v1684_v58  ;;  %v1775_v59 = vld [vmem:[#allocation3 + $0x16] sm:$0x3] }
0x18bb   :  { %v1702_v5 = vsub.f32 1.0, %v1689_v63  ;;  %v1708_v38 = vmul.f32 %v1689_v63, %v3254_v42 }
0x18ee   :  { %v1732_v52 = vpop.f32.mrf.mxu1 }
0x18ef   :  { %v1733_v62 = vadd.f32 %v3181_v27, %v1732_v52 }
0x18f1   :  { %1756 = vrot.lane.b32.xlu1 %v1733_v62, %s2648_s29  ;;  %v1735_v11 = vadd.f32 %v1733_v62, %v1645_v9 }
0x18f3   :  { %v2395_v16 = vmul.f32 -1.442695, %v1735_v11 }
0x18f5   :  { %2561 = vpow2.f32 %v2395_v16 }
0x18fb   :  { %v2562_v17 = vpop.eup %2561 }
0x18fc   :  { %v1739_v20 = vadd.f32 1.0, %v2562_v17 }
0x18fe   :  { %2563 = vrcp.f32 %v1739_v20  ;;  %v1751_v19 = vand.u32 2147483648, %v1739_v20  ;;  %vm1745_vm8 = vweird.f32 %v1739_v20  ;;  %v1749_v34 = vand.u32 2147483647, %v1739_v20 }
0x1900   :  { %v1752_v22 = vor.u32 1.1754944e-38, %v1751_v19  ;;  %vm1750_vm13 = vcmp.eq.f32.partialorder %v1749_v34, 8.507059e+37 }
0x1904   :  { %v2564_v23 = vpop.eup %2563 }
0x1905   :  { %v1741_v25 = vmul.f32 %v2564_v23, %v1739_v20  ;;  %vm1746_vm7 = vweird.f32 %v2564_v23 }
0x1906   :  { %vm1747_vm9 = vmor %vm1745_vm8, %vm1746_vm7 }
0x1907   :  { %v1742_v28 = vsub.f32 1.0, %v1741_v25 }
0x1909   :  { %v1743_v30 = vmul.f32 %v2564_v23, %v1742_v28 }
0x190b   :  { %v1744_v31 = vadd.f32 %v2564_v23, %v1743_v30 }
0x190d   :  { %v1748_v33 = vsel %vm1747_vm9, %v2564_v23, %v1744_v31 }
0x190e   :  { %v1753_v15 = vsel %vm1750_vm13, %v1752_v22, %v1748_v33 }
0x190f   :  { %v1693_v61 = vpop.permute.xlu0 %1692  ;;  %v1766_v40 = vsub.f32 1.0, %v1753_v15  ;;  %v1772_v12 = vmul.f32 %v1753_v15, %v3259_v49 }
0x1910   :  { %v1695_v1 = vmul.f32 %v1693_v61, %v1689_v63 }
0x1912   :  { %1697 = vrot.lane.b32.xlu2 %v1695_v1, %s2648_s29 }
0x1963   :  { %v1757_v26 = vpop.permute.xlu1 %1756 }
0x1964   :  { %v1759_v60 = vmul.f32 %v1757_v26, %v1753_v15 }
0x1966   :  { %1761 = vrot.lane.b32.xlu0 %v1759_v60, %s2648_s29 }
0x196c   :  { %v1698_v35 = vpop.permute.xlu2 %1697 }
0x196d   :  { %v1700_v36 = vadd.f32 %v1698_v35, %v1644_v44 }
0x196f   :  { %2565 = vtanh.f32 %v1700_v36 }
0x1975   :  { %v2566_v32 = vpop.eup %2565 }
0x1976   :  { %1704 = vrot.lane.b32.xlu1 %v2566_v32, %s2649_s8 }
0x19d8   :  { %v1762_v37 = vpop.permute.xlu0 %1761 }
0x19d9   :  { %v1764_v0 = vadd.f32 %v1762_v37, %v1645_v9 }
0x19db   :  { %2567 = vtanh.f32 %v1764_v0 }
0x19e1   :  { %v2568_v2 = vpop.eup %2567 }
0x19e2   :  { %1768 = vrot.lane.b32.xlu2 %v2568_v2, %s2649_s8 }
0x19e8   :  { %v1705_v7 = vpop.permute.xlu1 %1704 }
0x19e9   :  { %v1707_v24 = vmul.f32 %v1705_v7, %v1702_v5 }
0x19eb   :  { %v3282_v8 = vadd.f32 %v1708_v38, %v1707_v24 }
0x19ed   :  { %1777 = vrot.lane.b32.xlu0 %v3282_v8, %s2649_s8 }
0x1a3c   :  { %v1769_v10 = vpop.permute.xlu2 %1768 }
0x1a3d   :  { %v1771_v21 = vmul.f32 %v1769_v10, %v1766_v40 }
0x1a3f   :  { %v3287_v39 = vadd.f32 %v1772_v12, %v1771_v21 }
0x1a41   :  { %1841 = vrot.lane.b32.xlu1 %v3287_v39, %s2649_s8 }
0x1a5f   :  { %v1778_v47 = vpop.permute.xlu0 %1777 }
0x1a60   :  { %2396 = vmatmul.msk.f32.vlgmr.msra.gmra.mxu2 %vm108_vm12, %v1778_v47 }
0x1ab3   :  { %v1842_v42 = vpop.permute.xlu1 %1841 }
0x1ab4   :  { %2398 = vmatmul.msk.f32.vlgmr.msra.gmra.mxu3 %vm108_vm12, %v1842_v42  ;;  %v1904_v42 = vld [vmem:[#allocation3 + $0xa] sm:$0x3] }
0x1ae3   :  { %v1798_v48 = vpop.f32.mrf.mxu2 }
0x1ae4   :  { %v1799_v50 = vadd.f32 %v3144_v13, %v1798_v48 }
0x1ae6   :  { %1822 = vrot.lane.b32.xlu2 %v1799_v50, %s2648_s29  ;;  %v1801_v41 = vadd.f32 %v1799_v50, %v1774_v6 }
0x1ae8   :  { %v2397_v49 = vmul.f32 -1.442695, %v1801_v41 }
0x1aea   :  { %2569 = vpow2.f32 %v2397_v49 }
0x1af0   :  { %v2570_v43 = vpop.eup %2569 }
0x1af1   :  { %v1805_v44 = vadd.f32 1.0, %v2570_v43 }
0x1af3   :  { %2571 = vrcp.f32 %v1805_v44  ;;  %v1817_v14 = vand.u32 2147483648, %v1805_v44  ;;  %vm1811_vm15 = vweird.f32 %v1805_v44  ;;  %v1815_v18 = vand.u32 2147483647, %v1805_v44 }
0x1af5   :  { %v1818_v55 = vor.u32 1.1754944e-38, %v1817_v14  ;;  %vm1816_vm2 = vcmp.eq.f32.partialorder %v1815_v18, 8.507059e+37 }
0x1af9   :  { %v2572_v45 = vpop.eup %2571 }
0x1afa   :  { %v1807_v51 = vmul.f32 %v2572_v45, %v1805_v44  ;;  %vm1812_vm14 = vweird.f32 %v2572_v45 }
0x1afb   :  { %vm1813_vm0 = vmor %vm1811_vm15, %vm1812_vm14 }
0x1afc   :  { %v1808_v46 = vsub.f32 1.0, %v1807_v51 }
0x1afe   :  { %v1809_v52 = vmul.f32 %v2572_v45, %v1808_v46 }
0x1b00   :  { %v1810_v3 = vadd.f32 %v2572_v45, %v1809_v52 }
0x1b02   :  { %v1814_v54 = vsel %vm1813_vm0, %v2572_v45, %v1810_v3 }
0x1b03   :  { %v1819_v56 = vsel %vm1816_vm2, %v1818_v55, %v1814_v54  ;;  %v1905_v54 = vld [vmem:[#allocation3 + $0x14] sm:$0x3] }
0x1b04   :  { %v1832_v32 = vsub.f32 1.0, %v1819_v56  ;;  %v1838_v0 = vmul.f32 %v1819_v56, %v3282_v8 }
0x1b37   :  { %v1862_v53 = vpop.f32.mrf.mxu3 }
0x1b38   :  { %v1863_v62 = vadd.f32 %v3181_v27, %v1862_v53 }
0x1b3a   :  { %1886 = vrot.lane.b32.xlu0 %v1863_v62, %s2648_s29  ;;  %v1865_v61 = vadd.f32 %v1863_v62, %v1775_v59 }
0x1b3c   :  { %v2399_v63 = vmul.f32 -1.442695, %v1865_v61 }
0x1b3e   :  { %2573 = vpow2.f32 %v2399_v63 }
0x1b40   :  { %v1823_v57 = vpop.permute.xlu2 %1822 }
0x1b41   :  { %v1825_v58 = vmul.f32 %v1823_v57, %v1819_v56 }
0x1b43   :  { %1827 = vrot.lane.b32.xlu1 %v1825_v58, %s2648_s29 }
0x1b44   :  { %v2574_v1 = vpop.eup %2573 }
0x1b45   :  { %v1869_v9 = vadd.f32 1.0, %v2574_v1 }
0x1b47   :  { %2575 = vrcp.f32 %v1869_v9  ;;  %v1881_v25 = vand.u32 2147483648, %v1869_v9  ;;  %vm1875_vm4 = vweird.f32 %v1869_v9  ;;  %v1879_v28 = vand.u32 2147483647, %v1869_v9 }
0x1b49   :  { %v1882_v31 = vor.u32 1.1754944e-38, %v1881_v25  ;;  %vm1880_vm10 = vcmp.eq.f32.partialorder %v1879_v28, 8.507059e+37 }
0x1b4d   :  { %v2576_v11 = vpop.eup %2575 }
0x1b4e   :  { %v1871_v16 = vmul.f32 %v2576_v11, %v1869_v9  ;;  %vm1876_vm3 = vweird.f32 %v2576_v11 }
0x1b4f   :  { %vm1877_vm5 = vmor %vm1875_vm4, %vm1876_vm3 }
0x1b50   :  { %v1872_v17 = vsub.f32 1.0, %v1871_v16 }
0x1b52   :  { %v1873_v20 = vmul.f32 %v2576_v11, %v1872_v17 }
0x1b54   :  { %v1874_v23 = vadd.f32 %v2576_v11, %v1873_v20 }
0x1b56   :  { %v1878_v30 = vsel %vm1877_vm5, %v2576_v11, %v1874_v23 }
0x1b57   :  { %v1883_v34 = vsel %vm1880_vm10, %v1882_v31, %v1878_v30 }
0x1b58   :  { %v1896_v7 = vsub.f32 1.0, %v1883_v34  ;;  %v1902_v24 = vmul.f32 %v1883_v34, %v3287_v39 }
0x1bac   :  { %v1887_v19 = vpop.permute.xlu0 %1886 }
0x1bad   :  { %v1889_v33 = vmul.f32 %v1887_v19, %v1883_v34 }
0x1baf   :  { %1891 = vrot.lane.b32.xlu2 %v1889_v33, %s2648_s29 }
0x1bb5   :  { %v1828_v22 = vpop.permute.xlu1 %1827 }
0x1bb6   :  { %v1830_v26 = vadd.f32 %v1828_v22, %v1774_v6 }
0x1bb8   :  { %2577 = vtanh.f32 %v1830_v26 }
0x1bbe   :  { %v2578_v15 = vpop.eup %2577 }
0x1bbf   :  { %1834 = vrot.lane.b32.xlu0 %v2578_v15, %s2649_s8 }
0x1c09   :  { %v1892_v60 = vpop.permute.xlu2 %1891 }
0x1c0a   :  { %v1894_v35 = vadd.f32 %v1892_v60, %v1775_v59 }
0x1c0c   :  { %2579 = vtanh.f32 %v1894_v35 }
0x1c12   :  { %v2580_v36 = vpop.eup %2579 }
0x1c13   :  { %1898 = vrot.lane.b32.xlu1 %v2580_v36, %s2649_s8 }
0x1c31   :  { %v1835_v37 = vpop.permute.xlu0 %1834 }
0x1c32   :  { %v1837_v2 = vmul.f32 %v1835_v37, %v1832_v32 }
0x1c34   :  { %v3302_v5 = vadd.f32 %v1838_v0, %v1837_v2 }
0x1c36   :  { %1907 = vrot.lane.b32.xlu2 %v3302_v5, %s2649_s8 }
0x1c85   :  { %v1899_v38 = vpop.permute.xlu1 %1898 }
0x1c86   :  { %v1901_v40 = vmul.f32 %v1899_v38, %v1896_v7 }
0x1c88   :  { %v3307_v10 = vadd.f32 %v1902_v24, %v1901_v40  ;;  %v3336_v24 = vld [vmem:[%s3387_s5 + $0x2] ss:$0 sm:$0xff] }
0x1c8a   :  { %1971 = vrot.lane.b32.xlu0 %v3307_v10, %s2649_s8 }
0x1c90   :  { %v1908_v12 = vpop.permute.xlu2 %1907 }
0x1c91   :  { %2400 = vmatmul.msk.f32.vlgmr.msra.gmra.mxu0 %vm108_vm12, %v1908_v12 }
0x1cfc   :  { %v1972_v8 = vpop.permute.xlu0 %1971 }
0x1cfd   :  { %2402 = vmatmul.msk.f32.vlgmr.msra.gmra.mxu1 %vm108_vm12, %v1972_v8 }
0x1d0e   :  { %v1928_v21 = vpop.f32.mrf.mxu0 }
0x1d0f   :  { %v1929_v47 = vadd.f32 %v3144_v13, %v1928_v21 }
0x1d11   :  { %1952 = vrot.lane.b32.xlu1 %v1929_v47, %s2648_s29  ;;  %v1931_v48 = vadd.f32 %v1929_v47, %v1904_v42 }
0x1d13   :  { %v2401_v39 = vmul.f32 -1.442695, %v1931_v48  ;;  %v3343_v48 = vld [vmem:[%s3387_s5 + $0x3] ss:$0 sm:$0xff]  ;;  %s2650_s5 = smov 32  }
0x1d15   :  { %2581 = vpow2.f32 %v2401_v39 }
0x1d1b   :  { %v2582_v50 = vpop.eup %2581 }
0x1d1c   :  { %v1935_v6 = vadd.f32 1.0, %v2582_v50 }
0x1d1e   :  { %2583 = vrcp.f32 %v1935_v6  ;;  %v1947_v13 = vand.u32 2147483648, %v1935_v6  ;;  %vm1941_vm7 = vweird.f32 %v1935_v6  ;;  %v1945_v52 = vand.u32 2147483647, %v1935_v6 }
0x1d20   :  { %v1948_v62 = vor.u32 1.1754944e-38, %v1947_v13  ;;  %vm1946_vm9 = vcmp.eq.f32.partialorder %v1945_v52, 8.507059e+37 }
0x1d24   :  { %v2584_v41 = vpop.eup %2583 }
0x1d25   :  { %v1937_v49 = vmul.f32 %v2584_v41, %v1935_v6  ;;  %vm1942_vm11 = vweird.f32 %v2584_v41 }
0x1d26   :  { %vm1943_vm8 = vmor %vm1941_vm7, %vm1942_vm11 }
0x1d27   :  { %v1938_v43 = vsub.f32 1.0, %v1937_v49 }
0x1d29   :  { %v1939_v44 = vmul.f32 %v2584_v41, %v1938_v43 }
0x1d2b   :  { %v1940_v46 = vadd.f32 %v2584_v41, %v1939_v44 }
0x1d2d   :  { %v1944_v53 = vsel %vm1943_vm8, %v2584_v41, %v1940_v46 }
0x1d2e   :  { %v1949_v14 = vsel %vm1946_vm9, %v1948_v62, %v1944_v53  ;;  %v2035_v62 = vld [vmem:[#allocation3 + $0x12] sm:$0x3] }
0x1d2f   :  { %v1962_v22 = vsub.f32 1.0, %v1949_v14  ;;  %v1968_v15 = vmul.f32 %v1949_v14, %v3302_v5 }
0x1d7a   :  { %v1992_v45 = vpop.f32.mrf.mxu1 }
0x1d7b   :  { %v1993_v51 = vadd.f32 %v3181_v27, %v1992_v45 }
0x1d7d   :  { %2016 = vrot.lane.b32.xlu2 %v1993_v51, %s2648_s29  ;;  %v1995_v55 = vadd.f32 %v1993_v51, %v1905_v54 }
0x1d7f   :  { %v2403_v56 = vmul.f32 -1.442695, %v1995_v55 }
0x1d81   :  { %2585 = vpow2.f32 %v2403_v56 }
0x1d83   :  { %v1953_v3 = vpop.permute.xlu1 %1952 }
0x1d84   :  { %v1955_v18 = vmul.f32 %v1953_v3, %v1949_v14 }
0x1d86   :  { %1957 = vrot.lane.b32.xlu0 %v1955_v18, %s2648_s29 }
0x1d87   :  { %v2586_v27 = vpop.eup %2585 }
0x1d88   :  { %v1999_v57 = vadd.f32 1.0, %v2586_v27 }
0x1d8a   :  { %2587 = vrcp.f32 %v1999_v57  ;;  %v2011_v9 = vand.u32 2147483648, %v1999_v57  ;;  %vm2005_vm14 = vweird.f32 %v1999_v57  ;;  %v2009_v11 = vand.u32 2147483647, %v1999_v57 }
0x1d8c   :  { %v2012_v17 = vor.u32 1.1754944e-38, %v2011_v9  ;;  %vm2010_vm0 = vcmp.eq.f32.partialorder %v2009_v11, 8.507059e+37 }
0x1d90   :  { %v2588_v58 = vpop.eup %2587 }
0x1d91   :  { %v2001_v59 = vmul.f32 %v2588_v58, %v1999_v57  ;;  %vm2006_vm13 = vweird.f32 %v2588_v58 }
0x1d92   :  { %vm2007_vm15 = vmor %vm2005_vm14, %vm2006_vm13 }
0x1d93   :  { %v2002_v61 = vsub.f32 1.0, %v2001_v59 }
0x1d95   :  { %v2003_v63 = vmul.f32 %v2588_v58, %v2002_v61 }
0x1d97   :  { %v2004_v1 = vadd.f32 %v2588_v58, %v2003_v63 }
0x1d99   :  { %v2008_v16 = vsel %vm2007_vm15, %v2588_v58, %v2004_v1 }
0x1d9a   :  { %v2013_v20 = vsel %vm2010_vm0, %v2012_v17, %v2008_v16 }
0x1d9b   :  { %v2026_v36 = vsub.f32 1.0, %v2013_v20  ;;  %v2032_v37 = vmul.f32 %v2013_v20, %v3307_v10  ;;  %v2034_v10 = vld [vmem:[#allocation3 + $0xc] sm:$0x3] }
0x1dd7   :  { %v2017_v23 = vpop.permute.xlu2 %2016 }
0x1dd8   :  { %v2019_v25 = vmul.f32 %v2017_v23, %v2013_v20 }
0x1dda   :  { %2021 = vrot.lane.b32.xlu1 %v2019_v25, %s2648_s29 }
0x1df8   :  { %v1958_v28 = vpop.permute.xlu0 %1957 }
0x1df9   :  { %v1960_v30 = vadd.f32 %v1958_v28, %v1904_v42 }
0x1dfb   :  { %2589 = vtanh.f32 %v1960_v30 }
0x1e01   :  { %v2590_v31 = vpop.eup %2589 }
0x1e02   :  { %1964 = vrot.lane.b32.xlu2 %v2590_v31, %s2649_s8 }
0x1e4c   :  { %v2022_v19 = vpop.permute.xlu1 %2021 }
0x1e4d   :  { %v2024_v34 = vadd.f32 %v2022_v19, %v1905_v54 }
0x1e4f   :  { %2591 = vtanh.f32 %v2024_v34 }
0x1e55   :  { %v2592_v33 = vpop.eup %2591 }
0x1e56   :  { %2028 = vrot.lane.b32.xlu0 %v2592_v33, %s2649_s8 }
0x1e5c   :  { %v1965_v26 = vpop.permute.xlu2 %1964 }
0x1e5d   :  { %v1967_v60 = vmul.f32 %v1965_v26, %v1962_v22 }
0x1e5f   :  { %v3322_v35 = vadd.f32 %v1968_v15, %v1967_v60 }
0x1e61   :  { %2037 = vrot.lane.b32.xlu1 %v3322_v35, %s2649_s8 }
0x1ec8   :  { %v2029_v32 = vpop.permute.xlu0 %2028 }
0x1ec9   :  { %v2031_v0 = vmul.f32 %v2029_v32, %v2026_v36 }
0x1ecb   :  { %v3327_v2 = vadd.f32 %v2032_v37, %v2031_v0 }
0x1ecd   :  { %2101 = vrot.lane.b32.xlu2 %v3327_v2, %s2649_s8 }
0x1ed3   :  { %v2038_v7 = vpop.permute.xlu1 %2037 }
0x1ed4   :  { %2404 = vmatmul.msk.f32.vlgmr.msrb.gmra.mxu2 %vm108_vm12, %v2038_v7 }
0x1f27   :  { %v2102_v5 = vpop.permute.xlu2 %2101 }
0x1f28   :  { %2406 = vmatmul.msk.f32.vlgmr.msrb.gmra.mxu3 %vm108_vm12, %v2102_v5  ;;  %v2164_v5 = vld [vmem:[#allocation3 + $0xe] sm:$0x3] }
0x1f57   :  { %v2058_v38 = vpop.f32.mrf.mxu2 }
0x1f58   :  { %v2059_v40 = vadd.f32 %v3336_v24, %v2058_v38 }
0x1f5a   :  { %2082 = vrot.lane.b32.xlu0 %v2059_v40, %s2648_s29  ;;  %v2061_v12 = vadd.f32 %v2059_v40, %v2034_v10 }
0x1f5c   :  { %v2405_v8 = vmul.f32 -1.442695, %v2061_v12 }
0x1f5e   :  { %2593 = vpow2.f32 %v2405_v8 }
0x1f64   :  { %v2594_v21 = vpop.eup %2593 }
0x1f65   :  { %v2065_v42 = vadd.f32 1.0, %v2594_v21 }
0x1f67   :  { %2595 = vrcp.f32 %v2065_v42  ;;  %v2077_v44 = vand.u32 2147483648, %v2065_v42  ;;  %vm2071_vm3 = vweird.f32 %v2065_v42  ;;  %v2075_v45 = vand.u32 2147483647, %v2065_v42 }
0x1f69   :  { %v2078_v46 = vor.u32 1.1754944e-38, %v2077_v44  ;;  %vm2076_vm5 = vcmp.eq.f32.partialorder %v2075_v45, 8.507059e+37 }
0x1f6d   :  { %v2596_v50 = vpop.eup %2595 }
0x1f6e   :  { %v2067_v6 = vmul.f32 %v2596_v50, %v2065_v42  ;;  %vm2072_vm2 = vweird.f32 %v2596_v50 }
0x1f6f   :  { %vm2073_vm4 = vmor %vm2071_vm3, %vm2072_vm2 }
0x1f70   :  { %v2068_v41 = vsub.f32 1.0, %v2067_v6 }
0x1f72   :  { %v2069_v49 = vmul.f32 %v2596_v50, %v2068_v41 }
0x1f74   :  { %v2070_v43 = vadd.f32 %v2596_v50, %v2069_v49 }
0x1f76   :  { %v2074_v51 = vsel %vm2073_vm4, %v2596_v50, %v2070_v43 }
0x1f77   :  { %v2079_v52 = vsel %vm2076_vm5, %v2078_v46, %v2074_v51  ;;  %v2165_v51 = vld [vmem:[#allocation3 + $0x10] sm:$0x3] }
0x1f78   :  { %v2092_v31 = vsub.f32 1.0, %v2079_v52  ;;  %v2098_v34 = vmul.f32 %v2079_v52, %v3322_v35 }
0x1fab   :  { %v2122_v47 = vpop.f32.mrf.mxu3 }
0x1fac   :  { %v2123_v39 = vadd.f32 %v3343_v48, %v2122_v47 }
0x1fae   :  { %2146 = vrot.lane.b32.xlu1 %v2123_v39, %s2648_s29  ;;  %v2125_v3 = vadd.f32 %v2123_v39, %v2035_v62 }
0x1fb0   :  { %v2407_v14 = vmul.f32 -1.442695, %v2125_v3 }
0x1fb2   :  { %2597 = vpow2.f32 %v2407_v14 }
0x1fb8   :  { %v2598_v18 = vpop.eup %2597 }
0x1fb9   :  { %v2129_v54 = vadd.f32 1.0, %v2598_v18 }
0x1fbb   :  { %2599 = vrcp.f32 %v2129_v54  ;;  %v2141_v59 = vand.u32 2147483648, %v2129_v54  ;;  %vm2135_vm11 = vweird.f32 %v2129_v54  ;;  %v2139_v61 = vand.u32 2147483647, %v2129_v54 }
0x1fbd   :  { %v2142_v1 = vor.u32 1.1754944e-38, %v2141_v59  ;;  %vm2140_vm8 = vcmp.eq.f32.partialorder %v2139_v61, 8.507059e+37 }
0x1fc1   :  { %v2600_v55 = vpop.eup %2599 }
0x1fc2   :  { %v2131_v56 = vmul.f32 %v2600_v55, %v2129_v54  ;;  %vm2136_vm10 = vweird.f32 %v2600_v55 }
0x1fc3   :  { %vm2137_vm7 = vmor %vm2135_vm11, %vm2136_vm10 }
0x1fc4   :  { %v2132_v27 = vsub.f32 1.0, %v2131_v56 }
0x1fc6   :  { %v2133_v57 = vmul.f32 %v2600_v55, %v2132_v27 }
0x1fc8   :  { %v2134_v58 = vadd.f32 %v2600_v55, %v2133_v57 }
0x1fca   :  { %v2138_v63 = vsel %vm2137_vm7, %v2600_v55, %v2134_v58 }
0x1fcb   :  { %v2143_v11 = vsel %vm2140_vm8, %v2142_v1, %v2138_v63 }
0x1fcc   :  { %v2083_v13 = vpop.permute.xlu0 %2082  ;;  %v2156_v26 = vsub.f32 1.0, %v2143_v11  ;;  %v2162_v60 = vmul.f32 %v2143_v11, %v3327_v2 }
0x1fcd   :  { %v2085_v53 = vmul.f32 %v2083_v13, %v2079_v52 }
0x1fcf   :  { %2087 = vrot.lane.b32.xlu2 %v2085_v53, %s2648_s29 }
0x2020   :  { %v2147_v9 = vpop.permute.xlu1 %2146 }
0x2021   :  { %v2149_v16 = vmul.f32 %v2147_v9, %v2143_v11 }
0x2023   :  { %2151 = vrot.lane.b32.xlu0 %v2149_v16, %s2648_s29 }
0x2029   :  { %v2088_v17 = vpop.permute.xlu2 %2087 }
0x202a   :  { %v2090_v20 = vadd.f32 %v2088_v17, %v2034_v10 }
0x202c   :  { %2601 = vtanh.f32 %v2090_v20 }
0x2032   :  { %v2602_v23 = vpop.eup %2601 }
0x2033   :  { %2094 = vrot.lane.b32.xlu1 %v2602_v23, %s2649_s8 }
0x2095   :  { %v2152_v25 = vpop.permute.xlu0 %2151 }
0x2096   :  { %v2154_v28 = vadd.f32 %v2152_v25, %v2035_v62 }
0x2098   :  { %2603 = vtanh.f32 %v2154_v28 }
0x209e   :  { %v2604_v30 = vpop.eup %2603 }
0x209f   :  { %2158 = vrot.lane.b32.xlu2 %v2604_v30, %s2649_s8 }
0x20a5   :  { %v2095_v19 = vpop.permute.xlu1 %2094 }
0x20a6   :  { %v2097_v33 = vmul.f32 %v2095_v19, %v2092_v31 }
0x20a8   :  { %v3352_v22 = vadd.f32 %v2098_v34, %v2097_v33 }
0x20aa   :  { %2167 = vrot.lane.b32.xlu0 %v3352_v22, %s2649_s8 }
0x20f9   :  { %v2159_v15 = vpop.permute.xlu2 %2158 }
0x20fa   :  { %v2161_v36 = vmul.f32 %v2159_v15, %v2156_v26 }
0x20fc   :  { %v3357_v32 = vadd.f32 %v2162_v60, %v2161_v36 }
0x20fe   :  { %2231 = vrot.lane.b32.xlu1 %v3357_v32, %s2649_s8 }
0x211c   :  { %v2168_v37 = vpop.permute.xlu0 %2167 }
0x211d   :  { %2408 = vmatmul.msk.f32.vlgmr.msrb.gmra.mxu0 %vm108_vm12, %v2168_v37 }
0x2170   :  { %v2232_v35 = vpop.permute.xlu1 %2231 }
0x2171   :  { %2410 = vmatmul.msk.f32.vlgmr.msrb.gmra.mxu1 %vm108_vm12, %v2232_v35 }
0x219a   :  { %v2188_v0 = vpop.f32.mrf.mxu0 }
0x219b   :  { %v2189_v7 = vadd.f32 %v3336_v24, %v2188_v0 }
0x219d   :  { %2212 = vrot.lane.b32.xlu2 %v2189_v7, %s2648_s29  ;;  %v2191_v38 = vadd.f32 %v2189_v7, %v2164_v5 }
0x219f   :  { %v2409_v2 = vmul.f32 -1.442695, %v2191_v38 }
0x21a1   :  { %2605 = vpow2.f32 %v2409_v2 }
0x21a7   :  { %v2606_v40 = vpop.eup %2605 }
0x21a8   :  { %v2195_v10 = vadd.f32 1.0, %v2606_v40 }
0x21aa   :  { %2607 = vrcp.f32 %v2195_v10  ;;  %v2207_v24 = vand.u32 2147483648, %v2195_v10  ;;  %vm2201_vm13 = vweird.f32 %v2195_v10  ;;  %v2205_v6 = vand.u32 2147483647, %v2195_v10 }
0x21ac   :  { %v2208_v49 = vor.u32 1.1754944e-38, %v2207_v24  ;;  %vm2206_vm15 = vcmp.eq.f32.partialorder %v2205_v6, 8.507059e+37 }
0x21b0   :  { %v2608_v12 = vpop.eup %2607 }
0x21b1   :  { %v2197_v8 = vmul.f32 %v2608_v12, %v2195_v10  ;;  %vm2202_vm9 = vweird.f32 %v2608_v12 }
0x21b2   :  { %vm2203_vm14 = vmor %vm2201_vm13, %vm2202_vm9 }
0x21b3   :  { %v2198_v21 = vsub.f32 1.0, %v2197_v8 }
0x21b5   :  { %v2199_v47 = vmul.f32 %v2608_v12, %v2198_v21 }
0x21b7   :  { %v2200_v50 = vadd.f32 %v2608_v12, %v2199_v47 }
0x21b9   :  { %v2204_v41 = vsel %vm2203_vm14, %v2608_v12, %v2200_v50 }
0x21ba   :  { %v2209_v43 = vsel %vm2206_vm15, %v2208_v49, %v2204_v41 }
0x21bb   :  { %v2222_v17 = vsub.f32 1.0, %v2209_v43  ;;  %v2228_v23 = vmul.f32 %v2209_v43, %v3352_v22  ;;  %v2302_v22 = vsel %vm108_vm12, %v3172_v4, %v3158_v29 }
0x21ee   :  { %v2252_v42 = vpop.f32.mrf.mxu1 }
0x21ef   :  { %v2253_v39 = vadd.f32 %v3343_v48, %v2252_v42 }
0x21f1   :  { %2276 = vrot.lane.b32.xlu0 %v2253_v39, %s2648_s29  ;;  %v2255_v46 = vadd.f32 %v2253_v39, %v2165_v51 }
0x21f3   :  { %v2411_v13 = vmul.f32 -1.442695, %v2255_v46 }
0x21f5   :  { %2609 = vpow2.f32 %v2411_v13 }
0x21f7   :  { %v2213_v44 = vpop.permute.xlu2 %2212 }
0x21f8   :  { %v2215_v45 = vmul.f32 %v2213_v44, %v2209_v43 }
0x21fa   :  { %2217 = vrot.lane.b32.xlu1 %v2215_v45, %s2648_s29 }
0x21fb   :  { %v2610_v48 = vpop.eup %2609 }
0x21fc   :  { %v2259_v52 = vadd.f32 1.0, %v2610_v48 }
0x21fe   :  { %2611 = vrcp.f32 %v2259_v52  ;;  %v2271_v54 = vand.u32 2147483648, %v2259_v52  ;;  %vm2265_vm2 = vweird.f32 %v2259_v52  ;;  %v2269_v55 = vand.u32 2147483647, %v2259_v52 }
0x2200   :  { %v2272_v27 = vor.u32 1.1754944e-38, %v2271_v54  ;;  %vm2270_vm4 = vcmp.eq.f32.partialorder %v2269_v55, 8.507059e+37 }
0x2204   :  { %v2612_v53 = vpop.eup %2611 }
0x2205   :  { %v2261_v62 = vmul.f32 %v2612_v53, %v2259_v52  ;;  %vm2266_vm0 = vweird.f32 %v2612_v53 }
0x2206   :  { %vm2267_vm3 = vmor %vm2265_vm2, %vm2266_vm0 }
0x2207   :  { %v2262_v3 = vsub.f32 1.0, %v2261_v62 }
0x2209   :  { %v2263_v14 = vmul.f32 %v2612_v53, %v2262_v3 }
0x220b   :  { %v2264_v18 = vadd.f32 %v2612_v53, %v2263_v14 }
0x220d   :  { %v2268_v56 = vsel %vm2267_vm3, %v2612_v53, %v2264_v18 }
0x220e   :  { %v2273_v58 = vsel %vm2270_vm4, %v2272_v27, %v2268_v56 }
0x220f   :  { %v2286_v30 = vsub.f32 1.0, %v2273_v58  ;;  %v2292_v19 = vmul.f32 %v2273_v58, %v3357_v32 }
0x2263   :  { %v2277_v57 = vpop.permute.xlu0 %2276 }
0x2264   :  { %v2279_v59 = vmul.f32 %v2277_v57, %v2273_v58 }
0x2266   :  { %2281 = vrot.lane.b32.xlu2 %v2279_v59, %s2648_s29 }
0x226c   :  { %v2218_v61 = vpop.permute.xlu1 %2217 }
0x226d   :  { %v2220_v63 = vadd.f32 %v2218_v61, %v2164_v5 }
0x226f   :  { %2613 = vtanh.f32 %v2220_v63 }
0x2275   :  { %v2614_v1 = vpop.eup %2613 }
0x2276   :  { %2224 = vrot.lane.b32.xlu0 %v2614_v1, %s2649_s8 }
0x22c0   :  { %v2282_v9 = vpop.permute.xlu2 %2281 }
0x22c1   :  { %v2284_v11 = vadd.f32 %v2282_v9, %v2165_v51 }
0x22c3   :  { %2615 = vtanh.f32 %v2284_v11 }
0x22c9   :  { %v2616_v16 = vpop.eup %2615 }
0x22ca   :  { %2288 = vrot.lane.b32.xlu1 %v2616_v16, %s2649_s8 }
0x22e8   :  { %v2225_v20 = vpop.permute.xlu0 %2224 }
0x22e9   :  { %v2227_v25 = vmul.f32 %v2225_v20, %v2222_v17 }
0x22eb   :  { %v2229_v28 = vadd.f32 %v2228_v23, %v2227_v25 }
0x22ed   :  { %2295 = vrot.lane.b32.xlu2 %v2229_v28, %s2650_s5 }
0x233c   :  { %v2289_v31 = vpop.permute.xlu1 %2288 }
0x233d   :  { %v2291_v34 = vmul.f32 %v2289_v31, %v2286_v30 }
0x233f   :  { %v2293_v33 = vadd.f32 %v2292_v19, %v2291_v34 }
0x2341   :  { %2299 = vrot.lane.b32.xlu0 %v2293_v33, %s2648_s29 }
0x2347   :  { %v2296_v26 = vpop.permute.xlu2 %2295 }
0x2348   :  { %v2303_v15 = vsel %vm1182_vm6, %v2302_v22, %v2296_v26 }
0x23b3   :  { %v2300_v60 = vpop.permute.xlu0 %2299 }
0x23b4   :  { %v2304_v36 = vsel %vm60_vm1, %v2303_v15, %v2300_v60 }
0x23b5   :  { %2305 = vst [vmem:[#allocation4] sm:$0x3] %v2304_v36 }
0x23b6   :  { %2316 = dma.vmem_to_hbm [thread:$0]  %s2312_s1, 32, %s2314_s0, [#allocation5]  }
0x23b7   :  { %2645 = dma.done.wait [#allocation5], 32  }
0x23b8   :  { %2646 = vsyncadd [#allocation5], 4294967264 }
0x23b9   :  { %2321 = vsyncpa [#allocation5], 1 }

</bundles_post_ra>
